<compile_context>
chip_gen: v7x
topology: tpu7x:2x2x1
jax: 0.10.0
libtpu: 0.0.40
codegen_flags: <defaults>
</compile_context>

<pallas_src>
import functools

import jax
import jax.numpy as jnp
from jax.experimental import pallas as pl
from jax.experimental.pallas import tpu as pltpu

SELU_ALPHA = 1.6732632423543772
SELU_SCALE = 1.0507009873554805
BN_EPS = 1e-5
_LOG_FLOOR = 1e-12                      # clamp for log() robustness
_VMEM_LIMIT = 32 * 1024 * 1024          # fits scoped VMEM on v5e / v6e / v7x


def _selu(x):
    return SELU_SCALE * jnp.where(x > 0, x, SELU_ALPHA * (jnp.exp(x) - 1.0))


def _cparams(n_grid):
    return pltpu.CompilerParams(
        dimension_semantics=("parallel",) * n_grid,
        vmem_limit_bytes=_VMEM_LIMIT,
    )


def _ceil_div(a, b):
    return -(-a // b)


# --------------------------------------------------------------------- strided-conv packing (glue)
def _pack_strided(x_blc, kernel_size, stride):
    """(B, L, C) -> (B, L_out + Q - 1, stride*C) with Q = ceil(K/stride).

    Groups every `stride` consecutive samples into the lane axis (free row-major reshape), so the
    strided conv becomes Q contiguous-slice matmuls inside the kernel (no im2col through HBM)."""
    B, L, C = x_blc.shape
    pad = kernel_size // 2
    l_out = (L + 2 * pad - kernel_size) // stride + 1
    q = _ceil_div(kernel_size, stride)
    total = stride * (l_out + q - 1)                 # covers position stride*(l_out-1) + K - 1
    pad_right = max(total - L - pad, 0)
    xp = jnp.pad(x_blc, ((0, 0), (pad, pad_right), (0, 0)))[:, :total, :]
    return xp.reshape(B, l_out + q - 1, stride * C), l_out


# ------------------------------------------------------------- fused Conv1d + BatchNorm + SELU
def _conv_bn_selu_kernel(x_ref, w_ref, s_ref, b_ref, o_ref, *, q_taps, l_out):
    # x_ref: (L4, SC) bf16 (one batch row) ; w_ref: (Q, SC, Cout) bf16
    # s_ref/b_ref: (1, Cout) f32 folded BN ; o_ref: (l_out, Cout)
    cout = w_ref.shape[2]
    acc = jnp.zeros((l_out, cout), jnp.float32)
    for q in range(q_taps):                                       # Q tap-group matmuls (fused im2col)
        acc = acc + jnp.dot(x_ref[q:q + l_out, :], w_ref[q],
                            preferred_element_type=jnp.float32)
    acc = acc * s_ref[...] + b_ref[...]                           # folded inference BatchNorm (f32)
    o_ref[...] = _selu(acc).astype(o_ref.dtype)


def conv_bn_selu(x4, w4, scale, bias, l_out, out_dtype=jnp.bfloat16):
    """x4: (B, L4, SC) packed input; w4: (Q, SC, Cout); scale/bias: (1, Cout) -> (B, l_out, Cout)."""
    B, L4, SC = x4.shape
    Q, _, Cout = w4.shape
    kernel = functools.partial(_conv_bn_selu_kernel, q_taps=Q, l_out=l_out)
    return pl.pallas_call(
        kernel,
        grid=(B,),
        in_specs=[
            pl.BlockSpec((None, L4, SC), lambda b: (b, 0, 0)),
            pl.BlockSpec((Q, SC, Cout), lambda b: (0, 0, 0)),     # weights stay resident
            pl.BlockSpec((1, Cout), lambda b: (0, 0)),
            pl.BlockSpec((1, Cout), lambda b: (0, 0)),
        ],
        out_specs=pl.BlockSpec((None, l_out, Cout), lambda b: (b, 0, 0)),
        out_shape=jax.ShapeDtypeStruct((B, l_out, Cout), out_dtype),
        compiler_params=_cparams(1),
    )(x4.astype(jnp.bfloat16), w4.astype(jnp.bfloat16),
      scale.astype(jnp.float32), bias.astype(jnp.float32))


# ----------------------------------------- fused per-head pipeline (split conv + mean + MLP + softmax)
def _head_kernel(x_ref, wsc_ref, ssc_ref, bsc_ref, *rest, n_hidden, q_taps, l_out):
    # x_ref  : (B, L4, SCs) bf16 shared features (same block for every head)
    # wsc_ref: (Q, SCs, Csp) bf16 ; ssc_ref/bsc_ref: (1, Csp) f32
    # rest   : [wh_0, bh_0, ..., wh_{n-1}, bh_{n-1}, wout, bout, o_ref]
    mlp_refs, o_ref = rest[:-1], rest[-1]
    nb = x_ref.shape[0]
    csp = wsc_ref.shape[2]

    # split conv + folded BN + SELU, then mean over the conv length (per batch row)
    rows = []
    for b in range(nb):
        acc = jnp.zeros((l_out, csp), jnp.float32)
        for q in range(q_taps):
            acc = acc + jnp.dot(x_ref[b, q:q + l_out, :], wsc_ref[q],
                                preferred_element_type=jnp.float32)
        acc = _selu(acc * ssc_ref[...] + bsc_ref[...])
        rows.append(jnp.mean(acc, axis=0, keepdims=True))          # (1, Csp)
    h = jnp.concatenate(rows, axis=0)                              # (B, Csp) f32

    # MLP hidden layers (Linear + SELU), bf16 operands / f32 accumulate
    for i in range(n_hidden):
        w_ref = mlp_refs[2 * i]
        b_ref = mlp_refs[2 * i + 1]
        h = jnp.dot(h.astype(w_ref.dtype), w_ref[...],
                    preferred_element_type=jnp.float32) + b_ref[...]
        h = _selu(h)

    # output Linear + softmax (f32 epilogue, EUP reciprocal)
    wout_ref = mlp_refs[2 * n_hidden]
    bout_ref = mlp_refs[2 * n_hidden + 1]
    logits = jnp.dot(h.astype(wout_ref.dtype), wout_ref[...],
                     preferred_element_type=jnp.float32) + bout_ref[...]
    logits = logits - jnp.max(logits, axis=-1, keepdims=True)
    e = jnp.exp(logits)
    probs = e * pl.reciprocal(jnp.sum(e, axis=-1, keepdims=True), approx=True)
    o_ref[...] = probs.astype(o_ref.dtype)


def head_forward(x4s, hp, l_out):
    """All heads in one pallas_call, grid over heads.  Returns softmax probs (H, B, classes) f32."""
    B, L4, SCs = x4s.shape
    wsc = hp["wsc"]                                  # (H, Q, SCs, Csp)
    H, Q, _, Csp = wsc.shape
    n_hidden = len(hp["mlp_hidden"])
    ccls = hp["wout"].shape[2]

    in_specs = [
        pl.BlockSpec((B, L4, SCs), lambda h: (0, 0, 0)),
        pl.BlockSpec((None, Q, SCs, Csp), lambda h: (h, 0, 0, 0)),
        pl.BlockSpec((None, 1, Csp), lambda h: (h, 0, 0)),
        pl.BlockSpec((None, 1, Csp), lambda h: (h, 0, 0)),
    ]
    args = [x4s.astype(jnp.bfloat16), wsc.astype(jnp.bfloat16),
            hp["ssc"].astype(jnp.float32), hp["bsc"].astype(jnp.float32)]
    for wh, bh in hp["mlp_hidden"]:
        ci, co = wh.shape[1], wh.shape[2]
        in_specs += [pl.BlockSpec((None, ci, co), lambda h: (h, 0, 0)),
                     pl.BlockSpec((None, 1, co), lambda h: (h, 0, 0))]
        args += [wh.astype(jnp.bfloat16), bh.astype(jnp.float32)]
    cm = hp["wout"].shape[1]
    in_specs += [pl.BlockSpec((None, cm, ccls), lambda h: (h, 0, 0)),
                 pl.BlockSpec((None, 1, ccls), lambda h: (h, 0, 0))]
    args += [hp["wout"].astype(jnp.bfloat16), hp["bout"].astype(jnp.float32)]

    kernel = functools.partial(_head_kernel, n_hidden=n_hidden, q_taps=Q, l_out=l_out)
    return pl.pallas_call(
        kernel,
        grid=(H,),
        in_specs=in_specs,
        out_specs=pl.BlockSpec((None, B, ccls), lambda h: (h, 0, 0)),
        out_shape=jax.ShapeDtypeStruct((H, B, ccls), jnp.float32),
        compiler_params=_cparams(1),
    )(*args)


# ----------------------------------------------------- SoftXOR + log via Walsh-Hadamard (in-kernel)
def _softxor_log_kernel(x_ref, y_ref, had_ref, o_ref):
    # rv[b, r] = sum_c x[b, c] * y[b, r ^ c]  ==  WHT(WHT(x) * WHT(y)) / N   (dyadic convolution)
    had = had_ref[...]                                            # (C, C) +/-1, symmetric
    inv_n = 1.0 / had.shape[0]
    fx = jnp.dot(x_ref[...], had, preferred_element_type=jnp.float32)
    fy = jnp.dot(y_ref[...], had, preferred_element_type=jnp.float32)
    rv = jnp.dot(fx * fy, had, preferred_element_type=jnp.float32) * inv_n
    o_ref[...] = jnp.log(jnp.maximum(rv, _LOG_FLOOR))             # clamped log (no -inf/NaN)


def softxor_log(pred0, rest):
    """pred0: (B, C); rest: (H-1, B, C) softmax probs -> log(SoftXOR(pred0, rest[h])) (H-1, B, C)."""
    Hm1, B, C = rest.shape
    idx = jnp.arange(C, dtype=jnp.int32)
    parity = jax.lax.population_count(idx[:, None] & idx[None, :]) % 2
    had = jnp.where(parity == 0, 1.0, -1.0).astype(jnp.float32)   # Walsh-Hadamard matrix (glue)
    return pl.pallas_call(
        _softxor_log_kernel,
        grid=(Hm1,),
        in_specs=[
            pl.BlockSpec((B, C), lambda h: (0, 0)),
            pl.BlockSpec((None, B, C), lambda h: (h, 0, 0)),
            pl.BlockSpec((C, C), lambda h: (0, 0)),               # Hadamard matrix stays resident
        ],
        out_specs=pl.BlockSpec((None, B, C), lambda h: (h, 0, 0)),
        out_shape=jax.ShapeDtypeStruct((Hm1, B, C), jnp.float32),
        compiler_params=_cparams(1),
    )(pred0.astype(jnp.float32), rest.astype(jnp.float32), had)


# ------------------------------------------------------------------------------ parameter building
def _init_conv_block(key, cin, cout, ksz, stride):
    kw, kg, kb = jax.random.split(key, 3)
    w = jax.random.normal(kw, (ksz, cin, cout), jnp.float32) / jnp.sqrt(float(ksz * cin))
    gamma = 1.0 + 0.1 * jax.random.normal(kg, (cout,), jnp.float32)
    beta = 0.1 * jax.random.normal(kb, (cout,), jnp.float32)
    run_mean = jnp.zeros((cout,), jnp.float32)
    run_var = jnp.ones((cout,), jnp.float32)
    scale = gamma / jnp.sqrt(run_var + BN_EPS)
    bias = beta - run_mean * scale
    q = _ceil_div(ksz, stride)
    w_pad = jnp.pad(w, ((0, q * stride - ksz), (0, 0), (0, 0)))   # zero taps beyond K
    w4 = w_pad.reshape(q, stride * cin, cout)                     # packed (Q, stride*Cin, Cout)
    return {"w4": w4, "bn_scale": scale.reshape(1, cout), "bn_bias": bias.reshape(1, cout)}


def _init_linear(key, cin, cout):
    kw, kb = jax.random.split(key)
    w = jax.random.normal(kw, (cin, cout), jnp.float32) / jnp.sqrt(float(cin))
    b = 0.01 * jax.random.normal(kb, (cout,), jnp.float32)
    return {"w": w, "b": b.reshape(1, cout)}


def build_params(key, *, input_shape, output_classes, target_bytes, kernel_size,
                 shared_cnn_kernels, split_cnn_kernels, mlp_layer_sizes, pool_size):
    assert len(split_cnn_kernels) == 1, "fused head kernel covers the default single split conv"
    stride = pool_size
    keys = iter(jax.random.split(key, 4096))

    shared = []
    chans = [input_shape[0]] + list(shared_cnn_kernels)
    for ci, co in zip(chans[:-1], chans[1:]):
        shared.append(_init_conv_block(next(keys), ci, co, kernel_size, stride))

    n_heads = len(target_bytes) + 1
    csp = split_cnn_kernels[0]
    sc_blocks = [_init_conv_block(next(keys), shared_cnn_kernels[-1], csp, kernel_size, stride)
                 for _ in range(n_heads)]
    heads = {
        "wsc": jnp.stack([b["w4"] for b in sc_blocks]),           # (H, Q, SC, Csp)
        "ssc": jnp.stack([b["bn_scale"] for b in sc_blocks]),     # (H, 1, Csp)
        "bsc": jnp.stack([b["bn_bias"] for b in sc_blocks]),
        "mlp_hidden": [],
    }
    mc = [csp] + list(mlp_layer_sizes)
    for ci, co in zip(mc[:-1], mc[1:]):
        lins = [_init_linear(next(keys), ci, co) for _ in range(n_heads)]
        heads["mlp_hidden"].append((jnp.stack([l["w"] for l in lins]),
                                    jnp.stack([l["b"] for l in lins])))
    outs = [_init_linear(next(keys), mlp_layer_sizes[-1], output_classes) for _ in range(n_heads)]
    heads["wout"] = jnp.stack([l["w"] for l in outs])
    heads["bout"] = jnp.stack([l["b"] for l in outs])
    return {"shared": shared, "heads": heads}


# ------------------------------------------------------------------------------------- forward pass
def multitask_cnn_forward(params, x_ncl, *, kernel_size, pool_size, output_classes):
    assert output_classes == 256, "SoftXOR requires 256 output classes"
    x = jnp.transpose(x_ncl, (0, 2, 1)).astype(jnp.float32)       # NCL -> NLC (channels-last)

    # shared feature extractor: one fused conv+BN+SELU call per layer, grid over batch
    for p in params["shared"]:
        x4, l_out = _pack_strided(x, kernel_size, pool_size)
        x = conv_bn_selu(x4, p["w4"], p["bn_scale"], p["bn_bias"], l_out,
                         out_dtype=jnp.bfloat16)                  # (B, l_out, Cout) bf16

    # all 5 heads in one call: split conv + BN + SELU + mean + MLP + softmax, grid over heads
    x4s, l_out_s = _pack_strided(x, kernel_size, pool_size)
    probs = head_forward(x4s, params["heads"], l_out_s)           # (H, B, 256) f32

    # SoftXOR(pred0, pred_h) + log, grid over the 4 byte heads (in-kernel WHT, no C^2 gather)
    log_xor = softxor_log(probs[0], probs[1:])                    # (H-1, B, 256)
    rv = jnp.transpose(log_xor, (1, 2, 0))                        # (B, 256, H-1)  == stack(dim=-1)
    return jnp.squeeze(rv)                                        # match torch .squeeze()


# --------------------------------------------------------------------------------------------- main
if __name__ == "__main__":
    # Small config consistent with the module: 2 input channels, 256 samples, 4 target bytes.
    B, C_IN, L = 2, 2, 256
    OUTPUT_CLASSES = 256
    TARGET_BYTES = tuple(range(4))            # -> 5 heads, 4 byte predictions
    KERNEL_SIZE = 11
    SHARED = (16, 32, 64)
    SPLIT = (256,)
    MLP = (256,)
    POOL = 4

    key = jax.random.PRNGKey(0)
    kparam, kx = jax.random.split(key)
    params = build_params(
        kparam,
        input_shape=(C_IN, L),
        output_classes=OUTPUT_CLASSES,
        target_bytes=TARGET_BYTES,
        kernel_size=KERNEL_SIZE,
        shared_cnn_kernels=SHARED,
        split_cnn_kernels=SPLIT,
        mlp_layer_sizes=MLP,
        pool_size=POOL,
    )
    x = jax.random.normal(kx, (B, C_IN, L), jnp.float32)          # PyTorch NCL layout

    fwd = jax.jit(functools.partial(
        multitask_cnn_forward,
        kernel_size=KERNEL_SIZE, pool_size=POOL, output_classes=OUTPUT_CLASSES))
    out = jax.block_until_ready(fwd(params, x))

    assert out.shape == (B, OUTPUT_CLASSES, len(TARGET_BYTES)), out.shape
    assert bool(jnp.all(jnp.isfinite(out))), "non-finite outputs"
    print("KERNEL_OK")
</pallas_src>

<mosaic_0001>
module attributes {stable_mosaic.version = 11 : i64} {
  func.func @_conv_bn_selu_kernel(%arg0: i32, %arg1: memref<1x66x8xbf16, #tpu.memory_space<vmem>>, %arg2: memref<3x8x16xbf16, #tpu.memory_space<vmem>>, %arg3: memref<1x16xf32, #tpu.memory_space<vmem>>, %arg4: memref<1x16xf32, #tpu.memory_space<vmem>>, %arg5: memref<1x64x16xbf16, #tpu.memory_space<vmem>>) attributes {dimension_semantics = [#tpu.dimension_semantics<parallel>], iteration_bounds = array<i64: 2>, scalar_prefetch = 0 : i64, scratch_operands = 0 : i64, tpu.core_type = #tpu.core_type<tc>, window_params = [{transform_indices = @transform_0, window_bounds = array<i64: 1, 66, 8>}, {pipeline_mode = #tpu.pipeline_mode<synchronous>, transform_indices = @transform_1, window_bounds = array<i64: 3, 8, 16>}, {pipeline_mode = #tpu.pipeline_mode<synchronous>, transform_indices = @transform_2, window_bounds = array<i64: 1, 16>}, {pipeline_mode = #tpu.pipeline_mode<synchronous>, transform_indices = @transform_3, window_bounds = array<i64: 1, 16>}, {transform_indices = @transform_4, window_bounds = array<i64: 1, 64, 16>}]} {
    %cst = arith.constant 0.000000e+00 : f32
    %0 = vector.broadcast %cst : f32 to vector<64x16xf32>
    %c0 = arith.constant 0 : index
    %c0_0 = arith.constant 0 : index
    %c0_1 = arith.constant 0 : index
    %1 = vector.load %arg1[%c0, %c0_0, %c0_1] : memref<1x66x8xbf16, #tpu.memory_space<vmem>>, vector<1x64x8xbf16>
    %2 = vector.shape_cast %1 : vector<1x64x8xbf16> to vector<64x8xbf16>
    %c0_2 = arith.constant 0 : index
    %c0_3 = arith.constant 0 : index
    %c0_4 = arith.constant 0 : index
    %3 = vector.load %arg2[%c0_2, %c0_3, %c0_4] : memref<3x8x16xbf16, #tpu.memory_space<vmem>>, vector<1x8x16xbf16>
    %4 = vector.shape_cast %3 : vector<1x8x16xbf16> to vector<8x16xbf16>
    %cst_5 = arith.constant dense<0.000000e+00> : vector<64x16xf32>
    %5 = tpu.matmul %2, %4, %cst_5 {dimension_numbers = #tpu.dot_dimension_numbers<[1], [0], [0], [1], [0, 0, 1, 1], [], []>} : vector<64x8xbf16>, vector<8x16xbf16>, vector<64x16xf32> -> vector<64x16xf32>
    %6 = arith.addf %0, %5 : vector<64x16xf32>
    %c0_6 = arith.constant 0 : index
    %c1 = arith.constant 1 : index
    %c0_7 = arith.constant 0 : index
    %7 = vector.load %arg1[%c0_6, %c1, %c0_7] : memref<1x66x8xbf16, #tpu.memory_space<vmem>>, vector<1x64x8xbf16>
    %8 = vector.shape_cast %7 : vector<1x64x8xbf16> to vector<64x8xbf16>
    %c1_8 = arith.constant 1 : index
    %c0_9 = arith.constant 0 : index
    %c0_10 = arith.constant 0 : index
    %9 = vector.load %arg2[%c1_8, %c0_9, %c0_10] : memref<3x8x16xbf16, #tpu.memory_space<vmem>>, vector<1x8x16xbf16>
    %10 = vector.shape_cast %9 : vector<1x8x16xbf16> to vector<8x16xbf16>
    %cst_11 = arith.constant dense<0.000000e+00> : vector<64x16xf32>
    %11 = tpu.matmul %8, %10, %cst_11 {dimension_numbers = #tpu.dot_dimension_numbers<[1], [0], [0], [1], [0, 0, 1, 1], [], []>} : vector<64x8xbf16>, vector<8x16xbf16>, vector<64x16xf32> -> vector<64x16xf32>
    %12 = arith.addf %6, %11 : vector<64x16xf32>
    %c0_12 = arith.constant 0 : index
    %c2 = arith.constant 2 : index
    %c0_13 = arith.constant 0 : index
    %13 = vector.load %arg1[%c0_12, %c2, %c0_13] : memref<1x66x8xbf16, #tpu.memory_space<vmem>>, vector<1x64x8xbf16>
    %14 = vector.shape_cast %13 : vector<1x64x8xbf16> to vector<64x8xbf16>
    %c2_14 = arith.constant 2 : index
    %c0_15 = arith.constant 0 : index
    %c0_16 = arith.constant 0 : index
    %15 = vector.load %arg2[%c2_14, %c0_15, %c0_16] : memref<3x8x16xbf16, #tpu.memory_space<vmem>>, vector<1x8x16xbf16>
    %16 = vector.shape_cast %15 : vector<1x8x16xbf16> to vector<8x16xbf16>
    %cst_17 = arith.constant dense<0.000000e+00> : vector<64x16xf32>
    %17 = tpu.matmul %14, %16, %cst_17 {dimension_numbers = #tpu.dot_dimension_numbers<[1], [0], [0], [1], [0, 0, 1, 1], [], []>} : vector<64x8xbf16>, vector<8x16xbf16>, vector<64x16xf32> -> vector<64x16xf32>
    %18 = arith.addf %12, %17 : vector<64x16xf32>
    %c0_18 = arith.constant 0 : index
    %c0_19 = arith.constant 0 : index
    %19 = vector.load %arg3[%c0_18, %c0_19] : memref<1x16xf32, #tpu.memory_space<vmem>>, vector<1x16xf32>
    %20 = vector.broadcast %19 : vector<1x16xf32> to vector<64x16xf32>
    %21 = arith.mulf %18, %20 : vector<64x16xf32>
    %c0_20 = arith.constant 0 : index
    %c0_21 = arith.constant 0 : index
    %22 = vector.load %arg4[%c0_20, %c0_21] : memref<1x16xf32, #tpu.memory_space<vmem>>, vector<1x16xf32>
    %23 = vector.broadcast %22 : vector<1x16xf32> to vector<64x16xf32>
    %24 = arith.addf %21, %23 : vector<64x16xf32>
    %cst_22 = arith.constant 0.000000e+00 : f32
    %25 = vector.broadcast %cst_22 : f32 to vector<64x16xf32>
    %26 = arith.cmpf ogt, %24, %25 : vector<64x16xf32>
    %27 = math.exp %24 : vector<64x16xf32>
    %cst_23 = arith.constant 1.000000e+00 : f32
    %28 = vector.broadcast %cst_23 : f32 to vector<64x16xf32>
    %29 = arith.subf %27, %28 : vector<64x16xf32>
    %cst_24 = arith.constant 1.67326319 : f32
    %30 = vector.broadcast %cst_24 : f32 to vector<64x16xf32>
    %31 = arith.mulf %30, %29 : vector<64x16xf32>
    %32 = arith.select %26, %24, %31 : vector<64x16xi1>, vector<64x16xf32>
    %cst_25 = arith.constant 1.05070102 : f32
    %33 = vector.broadcast %cst_25 : f32 to vector<64x16xf32>
    %34 = arith.mulf %33, %32 : vector<64x16xf32>
    %35 = arith.truncf %34 : vector<64x16xf32> to vector<64x16xbf16>
    %c0_26 = arith.constant 0 : index
    %c0_27 = arith.constant 0 : index
    %c0_28 = arith.constant 0 : index
    %36 = vector.load %arg5[%c0_26, %c0_27, %c0_28] : memref<1x64x16xbf16, #tpu.memory_space<vmem>>, vector<1x64x16xbf16>
    %37 = vector.shape_cast %36 : vector<1x64x16xbf16> to vector<64x16xbf16>
    %38 = vector.shape_cast %35 : vector<64x16xbf16> to vector<1x64x16xbf16>
    tpu.vector_store %arg5[%c0_26, %c0_27, %c0_28], %38 {strides = array<i32>} : memref<1x64x16xbf16, #tpu.memory_space<vmem>>, vector<1x64x16xbf16>,
    return
  }
  func.func @transform_0(%arg0: i32) -> (i32, i32, i32) {
    %c0_i32 = arith.constant 0 : i32
    %c0_i32_0 = arith.constant 0 : i32
    %c0_i32_1 = arith.constant 0 : i32
    return %arg0, %c0_i32, %c0_i32_0 : i32, i32, i32
  }
  func.func @transform_1(%arg0: i32) -> (i32, i32, i32) {
    %c0_i32 = arith.constant 0 : i32
    %c0_i32_0 = arith.constant 0 : i32
    %c0_i32_1 = arith.constant 0 : i32
    %c0_i32_2 = arith.constant 0 : i32
    return %c0_i32, %c0_i32_0, %c0_i32_1 : i32, i32, i32
  }
  func.func @transform_2(%arg0: i32) -> (i32, i32) {
    %c0_i32 = arith.constant 0 : i32
    %c0_i32_0 = arith.constant 0 : i32
    %c0_i32_1 = arith.constant 0 : i32
    return %c0_i32, %c0_i32_0 : i32, i32
  }
  func.func @transform_3(%arg0: i32) -> (i32, i32) {
    %c0_i32 = arith.constant 0 : i32
    %c0_i32_0 = arith.constant 0 : i32
    %c0_i32_1 = arith.constant 0 : i32
    return %c0_i32, %c0_i32_0 : i32, i32
  }
  func.func @transform_4(%arg0: i32) -> (i32, i32, i32) {
    %c0_i32 = arith.constant 0 : i32
    %c0_i32_0 = arith.constant 0 : i32
    %c0_i32_1 = arith.constant 0 : i32
    return %arg0, %c0_i32, %c0_i32_0 : i32, i32, i32
  }
}

module attributes {stable_mosaic.version = 11 : i64} {
  func.func @_conv_bn_selu_kernel(%arg0: i32, %arg1: memref<1x18x64xbf16, #tpu.memory_space<vmem>>, %arg2: memref<3x64x32xbf16, #tpu.memory_space<vmem>>, %arg3: memref<1x32xf32, #tpu.memory_space<vmem>>, %arg4: memref<1x32xf32, #tpu.memory_space<vmem>>, %arg5: memref<1x16x32xbf16, #tpu.memory_space<vmem>>) attributes {dimension_semantics = [#tpu.dimension_semantics<parallel>], iteration_bounds = array<i64: 2>, scalar_prefetch = 0 : i64, scratch_operands = 0 : i64, tpu.core_type = #tpu.core_type<tc>, window_params = [{transform_indices = @transform_0, window_bounds = array<i64: 1, 18, 64>}, {pipeline_mode = #tpu.pipeline_mode<synchronous>, transform_indices = @transform_1, window_bounds = array<i64: 3, 64, 32>}, {pipeline_mode = #tpu.pipeline_mode<synchronous>, transform_indices = @transform_2, window_bounds = array<i64: 1, 32>}, {pipeline_mode = #tpu.pipeline_mode<synchronous>, transform_indices = @transform_3, window_bounds = array<i64: 1, 32>}, {transform_indices = @transform_4, window_bounds = array<i64: 1, 16, 32>}]} {
    %cst = arith.constant 0.000000e+00 : f32
    %0 = vector.broadcast %cst : f32 to vector<16x32xf32>
    %c0 = arith.constant 0 : index
    %c0_0 = arith.constant 0 : index
    %c0_1 = arith.constant 0 : index
    %1 = vector.load %arg1[%c0, %c0_0, %c0_1] : memref<1x18x64xbf16, #tpu.memory_space<vmem>>, vector<1x16x64xbf16>
    %2 = vector.shape_cast %1 : vector<1x16x64xbf16> to vector<16x64xbf16>
    %c0_2 = arith.constant 0 : index
    %c0_3 = arith.constant 0 : index
    %c0_4 = arith.constant 0 : index
    %3 = vector.load %arg2[%c0_2, %c0_3, %c0_4] : memref<3x64x32xbf16, #tpu.memory_space<vmem>>, vector<1x64x32xbf16>
    %4 = vector.shape_cast %3 : vector<1x64x32xbf16> to vector<64x32xbf16>
    %cst_5 = arith.constant dense<0.000000e+00> : vector<16x32xf32>
    %5 = tpu.matmul %2, %4, %cst_5 {dimension_numbers = #tpu.dot_dimension_numbers<[1], [0], [0], [1], [0, 0, 1, 1], [], []>} : vector<16x64xbf16>, vector<64x32xbf16>, vector<16x32xf32> -> vector<16x32xf32>
    %6 = arith.addf %0, %5 : vector<16x32xf32>
    %c0_6 = arith.constant 0 : index
    %c1 = arith.constant 1 : index
    %c0_7 = arith.constant 0 : index
    %7 = vector.load %arg1[%c0_6, %c1, %c0_7] : memref<1x18x64xbf16, #tpu.memory_space<vmem>>, vector<1x16x64xbf16>
    %8 = vector.shape_cast %7 : vector<1x16x64xbf16> to vector<16x64xbf16>
    %c1_8 = arith.constant 1 : index
    %c0_9 = arith.constant 0 : index
    %c0_10 = arith.constant 0 : index
    %9 = vector.load %arg2[%c1_8, %c0_9, %c0_10] : memref<3x64x32xbf16, #tpu.memory_space<vmem>>, vector<1x64x32xbf16>
    %10 = vector.shape_cast %9 : vector<1x64x32xbf16> to vector<64x32xbf16>
    %cst_11 = arith.constant dense<0.000000e+00> : vector<16x32xf32>
    %11 = tpu.matmul %8, %10, %cst_11 {dimension_numbers = #tpu.dot_dimension_numbers<[1], [0], [0], [1], [0, 0, 1, 1], [], []>} : vector<16x64xbf16>, vector<64x32xbf16>, vector<16x32xf32> -> vector<16x32xf32>
    %12 = arith.addf %6, %11 : vector<16x32xf32>
    %c0_12 = arith.constant 0 : index
    %c2 = arith.constant 2 : index
    %c0_13 = arith.constant 0 : index
    %13 = vector.load %arg1[%c0_12, %c2, %c0_13] : memref<1x18x64xbf16, #tpu.memory_space<vmem>>, vector<1x16x64xbf16>
    %14 = vector.shape_cast %13 : vector<1x16x64xbf16> to vector<16x64xbf16>
    %c2_14 = arith.constant 2 : index
    %c0_15 = arith.constant 0 : index
    %c0_16 = arith.constant 0 : index
    %15 = vector.load %arg2[%c2_14, %c0_15, %c0_16] : memref<3x64x32xbf16, #tpu.memory_space<vmem>>, vector<1x64x32xbf16>
    %16 = vector.shape_cast %15 : vector<1x64x32xbf16> to vector<64x32xbf16>
    %cst_17 = arith.constant dense<0.000000e+00> : vector<16x32xf32>
    %17 = tpu.matmul %14, %16, %cst_17 {dimension_numbers = #tpu.dot_dimension_numbers<[1], [0], [0], [1], [0, 0, 1, 1], [], []>} : vector<16x64xbf16>, vector<64x32xbf16>, vector<16x32xf32> -> vector<16x32xf32>
    %18 = arith.addf %12, %17 : vector<16x32xf32>
    %c0_18 = arith.constant 0 : index
    %c0_19 = arith.constant 0 : index
    %19 = vector.load %arg3[%c0_18, %c0_19] : memref<1x32xf32, #tpu.memory_space<vmem>>, vector<1x32xf32>
    %20 = vector.broadcast %19 : vector<1x32xf32> to vector<16x32xf32>
    %21 = arith.mulf %18, %20 : vector<16x32xf32>
    %c0_20 = arith.constant 0 : index
    %c0_21 = arith.constant 0 : index
    %22 = vector.load %arg4[%c0_20, %c0_21] : memref<1x32xf32, #tpu.memory_space<vmem>>, vector<1x32xf32>
    %23 = vector.broadcast %22 : vector<1x32xf32> to vector<16x32xf32>
    %24 = arith.addf %21, %23 : vector<16x32xf32>
    %cst_22 = arith.constant 0.000000e+00 : f32
    %25 = vector.broadcast %cst_22 : f32 to vector<16x32xf32>
    %26 = arith.cmpf ogt, %24, %25 : vector<16x32xf32>
    %27 = math.exp %24 : vector<16x32xf32>
    %cst_23 = arith.constant 1.000000e+00 : f32
    %28 = vector.broadcast %cst_23 : f32 to vector<16x32xf32>
    %29 = arith.subf %27, %28 : vector<16x32xf32>
    %cst_24 = arith.constant 1.67326319 : f32
    %30 = vector.broadcast %cst_24 : f32 to vector<16x32xf32>
    %31 = arith.mulf %30, %29 : vector<16x32xf32>
    %32 = arith.select %26, %24, %31 : vector<16x32xi1>, vector<16x32xf32>
    %cst_25 = arith.constant 1.05070102 : f32
    %33 = vector.broadcast %cst_25 : f32 to vector<16x32xf32>
    %34 = arith.mulf %33, %32 : vector<16x32xf32>
    %35 = arith.truncf %34 : vector<16x32xf32> to vector<16x32xbf16>
    %c0_26 = arith.constant 0 : index
    %c0_27 = arith.constant 0 : index
    %c0_28 = arith.constant 0 : index
    %36 = vector.load %arg5[%c0_26, %c0_27, %c0_28] : memref<1x16x32xbf16, #tpu.memory_space<vmem>>, vector<1x16x32xbf16>
    %37 = vector.shape_cast %36 : vector<1x16x32xbf16> to vector<16x32xbf16>
    %38 = vector.shape_cast %35 : vector<16x32xbf16> to vector<1x16x32xbf16>
    tpu.vector_store %arg5[%c0_26, %c0_27, %c0_28], %38 {strides = array<i32>} : memref<1x16x32xbf16, #tpu.memory_space<vmem>>, vector<1x16x32xbf16>,
    return
  }
  func.func @transform_0(%arg0: i32) -> (i32, i32, i32) {
    %c0_i32 = arith.constant 0 : i32
    %c0_i32_0 = arith.constant 0 : i32
    %c0_i32_1 = arith.constant 0 : i32
    return %arg0, %c0_i32, %c0_i32_0 : i32, i32, i32
  }
  func.func @transform_1(%arg0: i32) -> (i32, i32, i32) {
    %c0_i32 = arith.constant 0 : i32
    %c0_i32_0 = arith.constant 0 : i32
    %c0_i32_1 = arith.constant 0 : i32
    %c0_i32_2 = arith.constant 0 : i32
    return %c0_i32, %c0_i32_0, %c0_i32_1 : i32, i32, i32
  }
  func.func @transform_2(%arg0: i32) -> (i32, i32) {
    %c0_i32 = arith.constant 0 : i32
    %c0_i32_0 = arith.constant 0 : i32
    %c0_i32_1 = arith.constant 0 : i32
    return %c0_i32, %c0_i32_0 : i32, i32
  }
  func.func @transform_3(%arg0: i32) -> (i32, i32) {
    %c0_i32 = arith.constant 0 : i32
    %c0_i32_0 = arith.constant 0 : i32
    %c0_i32_1 = arith.constant 0 : i32
    return %c0_i32, %c0_i32_0 : i32, i32
  }
  func.func @transform_4(%arg0: i32) -> (i32, i32, i32) {
    %c0_i32 = arith.constant 0 : i32
    %c0_i32_0 = arith.constant 0 : i32
    %c0_i32_1 = arith.constant 0 : i32
    return %arg0, %c0_i32, %c0_i32_0 : i32, i32, i32
  }
}

module attributes {stable_mosaic.version = 11 : i64} {
  func.func @_conv_bn_selu_kernel(%arg0: i32, %arg1: memref<1x6x128xbf16, #tpu.memory_space<vmem>>, %arg2: memref<3x128x64xbf16, #tpu.memory_space<vmem>>, %arg3: memref<1x64xf32, #tpu.memory_space<vmem>>, %arg4: memref<1x64xf32, #tpu.memory_space<vmem>>, %arg5: memref<1x4x64xbf16, #tpu.memory_space<vmem>>) attributes {dimension_semantics = [#tpu.dimension_semantics<parallel>], iteration_bounds = array<i64: 2>, scalar_prefetch = 0 : i64, scratch_operands = 0 : i64, tpu.core_type = #tpu.core_type<tc>, window_params = [{transform_indices = @transform_0, window_bounds = array<i64: 1, 6, 128>}, {pipeline_mode = #tpu.pipeline_mode<synchronous>, transform_indices = @transform_1, window_bounds = array<i64: 3, 128, 64>}, {pipeline_mode = #tpu.pipeline_mode<synchronous>, transform_indices = @transform_2, window_bounds = array<i64: 1, 64>}, {pipeline_mode = #tpu.pipeline_mode<synchronous>, transform_indices = @transform_3, window_bounds = array<i64: 1, 64>}, {transform_indices = @transform_4, window_bounds = array<i64: 1, 4, 64>}]} {
    %cst = arith.constant 0.000000e+00 : f32
    %0 = vector.broadcast %cst : f32 to vector<4x64xf32>
    %c0 = arith.constant 0 : index
    %c0_0 = arith.constant 0 : index
    %c0_1 = arith.constant 0 : index
    %1 = vector.load %arg1[%c0, %c0_0, %c0_1] : memref<1x6x128xbf16, #tpu.memory_space<vmem>>, vector<1x4x128xbf16>
    %2 = vector.shape_cast %1 : vector<1x4x128xbf16> to vector<4x128xbf16>
    %c0_2 = arith.constant 0 : index
    %c0_3 = arith.constant 0 : index
    %c0_4 = arith.constant 0 : index
    %3 = vector.load %arg2[%c0_2, %c0_3, %c0_4] : memref<3x128x64xbf16, #tpu.memory_space<vmem>>, vector<1x128x64xbf16>
    %4 = vector.shape_cast %3 : vector<1x128x64xbf16> to vector<128x64xbf16>
    %cst_5 = arith.constant dense<0.000000e+00> : vector<4x64xf32>
    %5 = tpu.matmul %2, %4, %cst_5 {dimension_numbers = #tpu.dot_dimension_numbers<[1], [0], [0], [1], [0, 0, 1, 1], [], []>} : vector<4x128xbf16>, vector<128x64xbf16>, vector<4x64xf32> -> vector<4x64xf32>
    %6 = arith.addf %0, %5 : vector<4x64xf32>
    %c0_6 = arith.constant 0 : index
    %c1 = arith.constant 1 : index
    %c0_7 = arith.constant 0 : index
    %7 = vector.load %arg1[%c0_6, %c1, %c0_7] : memref<1x6x128xbf16, #tpu.memory_space<vmem>>, vector<1x4x128xbf16>
    %8 = vector.shape_cast %7 : vector<1x4x128xbf16> to vector<4x128xbf16>
    %c1_8 = arith.constant 1 : index
    %c0_9 = arith.constant 0 : index
    %c0_10 = arith.constant 0 : index
    %9 = vector.load %arg2[%c1_8, %c0_9, %c0_10] : memref<3x128x64xbf16, #tpu.memory_space<vmem>>, vector<1x128x64xbf16>
    %10 = vector.shape_cast %9 : vector<1x128x64xbf16> to vector<128x64xbf16>
    %cst_11 = arith.constant dense<0.000000e+00> : vector<4x64xf32>
    %11 = tpu.matmul %8, %10, %cst_11 {dimension_numbers = #tpu.dot_dimension_numbers<[1], [0], [0], [1], [0, 0, 1, 1], [], []>} : vector<4x128xbf16>, vector<128x64xbf16>, vector<4x64xf32> -> vector<4x64xf32>
    %12 = arith.addf %6, %11 : vector<4x64xf32>
    %c0_12 = arith.constant 0 : index
    %c2 = arith.constant 2 : index
    %c0_13 = arith.constant 0 : index
    %13 = vector.load %arg1[%c0_12, %c2, %c0_13] : memref<1x6x128xbf16, #tpu.memory_space<vmem>>, vector<1x4x128xbf16>
    %14 = vector.shape_cast %13 : vector<1x4x128xbf16> to vector<4x128xbf16>
    %c2_14 = arith.constant 2 : index
    %c0_15 = arith.constant 0 : index
    %c0_16 = arith.constant 0 : index
    %15 = vector.load %arg2[%c2_14, %c0_15, %c0_16] : memref<3x128x64xbf16, #tpu.memory_space<vmem>>, vector<1x128x64xbf16>
    %16 = vector.shape_cast %15 : vector<1x128x64xbf16> to vector<128x64xbf16>
    %cst_17 = arith.constant dense<0.000000e+00> : vector<4x64xf32>
    %17 = tpu.matmul %14, %16, %cst_17 {dimension_numbers = #tpu.dot_dimension_numbers<[1], [0], [0], [1], [0, 0, 1, 1], [], []>} : vector<4x128xbf16>, vector<128x64xbf16>, vector<4x64xf32> -> vector<4x64xf32>
    %18 = arith.addf %12, %17 : vector<4x64xf32>
    %c0_18 = arith.constant 0 : index
    %c0_19 = arith.constant 0 : index
    %19 = vector.load %arg3[%c0_18, %c0_19] : memref<1x64xf32, #tpu.memory_space<vmem>>, vector<1x64xf32>
    %20 = vector.broadcast %19 : vector<1x64xf32> to vector<4x64xf32>
    %21 = arith.mulf %18, %20 : vector<4x64xf32>
    %c0_20 = arith.constant 0 : index
    %c0_21 = arith.constant 0 : index
    %22 = vector.load %arg4[%c0_20, %c0_21] : memref<1x64xf32, #tpu.memory_space<vmem>>, vector<1x64xf32>
    %23 = vector.broadcast %22 : vector<1x64xf32> to vector<4x64xf32>
    %24 = arith.addf %21, %23 : vector<4x64xf32>
    %cst_22 = arith.constant 0.000000e+00 : f32
    %25 = vector.broadcast %cst_22 : f32 to vector<4x64xf32>
    %26 = arith.cmpf ogt, %24, %25 : vector<4x64xf32>
    %27 = math.exp %24 : vector<4x64xf32>
    %cst_23 = arith.constant 1.000000e+00 : f32
    %28 = vector.broadcast %cst_23 : f32 to vector<4x64xf32>
    %29 = arith.subf %27, %28 : vector<4x64xf32>
    %cst_24 = arith.constant 1.67326319 : f32
    %30 = vector.broadcast %cst_24 : f32 to vector<4x64xf32>
    %31 = arith.mulf %30, %29 : vector<4x64xf32>
    %32 = arith.select %26, %24, %31 : vector<4x64xi1>, vector<4x64xf32>
    %cst_25 = arith.constant 1.05070102 : f32
    %33 = vector.broadcast %cst_25 : f32 to vector<4x64xf32>
    %34 = arith.mulf %33, %32 : vector<4x64xf32>
    %35 = arith.truncf %34 : vector<4x64xf32> to vector<4x64xbf16>
    %c0_26 = arith.constant 0 : index
    %c0_27 = arith.constant 0 : index
    %c0_28 = arith.constant 0 : index
    %36 = vector.load %arg5[%c0_26, %c0_27, %c0_28] : memref<1x4x64xbf16, #tpu.memory_space<vmem>>, vector<1x4x64xbf16>
    %37 = vector.shape_cast %36 : vector<1x4x64xbf16> to vector<4x64xbf16>
    %38 = vector.shape_cast %35 : vector<4x64xbf16> to vector<1x4x64xbf16>
    tpu.vector_store %arg5[%c0_26, %c0_27, %c0_28], %38 {strides = array<i32>} : memref<1x4x64xbf16, #tpu.memory_space<vmem>>, vector<1x4x64xbf16>,
    return
  }
  func.func @transform_0(%arg0: i32) -> (i32, i32, i32) {
    %c0_i32 = arith.constant 0 : i32
    %c0_i32_0 = arith.constant 0 : i32
    %c0_i32_1 = arith.constant 0 : i32
    return %arg0, %c0_i32, %c0_i32_0 : i32, i32, i32
  }
  func.func @transform_1(%arg0: i32) -> (i32, i32, i32) {
    %c0_i32 = arith.constant 0 : i32
    %c0_i32_0 = arith.constant 0 : i32
    %c0_i32_1 = arith.constant 0 : i32
    %c0_i32_2 = arith.constant 0 : i32
    return %c0_i32, %c0_i32_0, %c0_i32_1 : i32, i32, i32
  }
  func.func @transform_2(%arg0: i32) -> (i32, i32) {
    %c0_i32 = arith.constant 0 : i32
    %c0_i32_0 = arith.constant 0 : i32
    %c0_i32_1 = arith.constant 0 : i32
    return %c0_i32, %c0_i32_0 : i32, i32
  }
  func.func @transform_3(%arg0: i32) -> (i32, i32) {
    %c0_i32 = arith.constant 0 : i32
    %c0_i32_0 = arith.constant 0 : i32
    %c0_i32_1 = arith.constant 0 : i32
    return %c0_i32, %c0_i32_0 : i32, i32
  }
  func.func @transform_4(%arg0: i32) -> (i32, i32, i32) {
    %c0_i32 = arith.constant 0 : i32
    %c0_i32_0 = arith.constant 0 : i32
    %c0_i32_1 = arith.constant 0 : i32
    return %arg0, %c0_i32, %c0_i32_0 : i32, i32, i32
  }
}

module attributes {stable_mosaic.version = 11 : i64} {
  func.func @_head_kernel(%arg0: i32, %arg1: memref<2x3x256xbf16, #tpu.memory_space<vmem>>, %arg2: memref<1x3x256x256xbf16, #tpu.memory_space<vmem>>, %arg3: memref<1x1x256xf32, #tpu.memory_space<vmem>>, %arg4: memref<1x1x256xf32, #tpu.memory_space<vmem>>, %arg5: memref<1x256x256xbf16, #tpu.memory_space<vmem>>, %arg6: memref<1x1x256xf32, #tpu.memory_space<vmem>>, %arg7: memref<1x256x256xbf16, #tpu.memory_space<vmem>>, %arg8: memref<1x1x256xf32, #tpu.memory_space<vmem>>, %arg9: memref<1x2x256xf32, #tpu.memory_space<vmem>>) attributes {dimension_semantics = [#tpu.dimension_semantics<parallel>], iteration_bounds = array<i64: 5>, scalar_prefetch = 0 : i64, scratch_operands = 0 : i64, tpu.core_type = #tpu.core_type<tc>, window_params = [{pipeline_mode = #tpu.pipeline_mode<synchronous>, transform_indices = @transform_0, window_bounds = array<i64: 2, 3, 256>}, {transform_indices = @transform_1, window_bounds = array<i64: 1, 3, 256, 256>}, {transform_indices = @transform_2, window_bounds = array<i64: 1, 1, 256>}, {transform_indices = @transform_3, window_bounds = array<i64: 1, 1, 256>}, {transform_indices = @transform_4, window_bounds = array<i64: 1, 256, 256>}, {transform_indices = @transform_5, window_bounds = array<i64: 1, 1, 256>}, {transform_indices = @transform_6, window_bounds = array<i64: 1, 256, 256>}, {transform_indices = @transform_7, window_bounds = array<i64: 1, 1, 256>}, {transform_indices = @transform_8, window_bounds = array<i64: 1, 2, 256>}]} {
    %cst = arith.constant 0.000000e+00 : f32
    %0 = vector.broadcast %cst : f32 to vector<1x256xf32>
    %c0 = arith.constant 0 : index
    %c0_0 = arith.constant 0 : index
    %c0_1 = arith.constant 0 : index
    %1 = vector.load %arg1[%c0, %c0_0, %c0_1] : memref<2x3x256xbf16, #tpu.memory_space<vmem>>, vector<1x1x256xbf16>
    %2 = vector.shape_cast %1 : vector<1x1x256xbf16> to vector<1x256xbf16>
    %c0_2 = arith.constant 0 : index
    %c0_3 = arith.constant 0 : index
    %c0_4 = arith.constant 0 : index
    %c0_5 = arith.constant 0 : index
    %3 = vector.load %arg2[%c0_2, %c0_3, %c0_4, %c0_5] : memref<1x3x256x256xbf16, #tpu.memory_space<vmem>>, vector<1x1x256x256xbf16>
    %4 = vector.shape_cast %3 : vector<1x1x256x256xbf16> to vector<256x256xbf16>
    %cst_6 = arith.constant dense<0.000000e+00> : vector<1x256xf32>
    %5 = tpu.matmul %2, %4, %cst_6 {dimension_numbers = #tpu.dot_dimension_numbers<[1], [0], [0], [1], [0, 0, 1, 1], [], []>} : vector<1x256xbf16>, vector<256x256xbf16>, vector<1x256xf32> -> vector<1x256xf32>
    %6 = arith.addf %0, %5 : vector<1x256xf32>
    %c0_7 = arith.constant 0 : index
    %c1 = arith.constant 1 : index
    %c0_8 = arith.constant 0 : index
    %7 = vector.load %arg1[%c0_7, %c1, %c0_8] : memref<2x3x256xbf16, #tpu.memory_space<vmem>>, vector<1x1x256xbf16>
    %8 = vector.shape_cast %7 : vector<1x1x256xbf16> to vector<1x256xbf16>
    %c0_9 = arith.constant 0 : index
    %c1_10 = arith.constant 1 : index
    %c0_11 = arith.constant 0 : index
    %c0_12 = arith.constant 0 : index
    %9 = vector.load %arg2[%c0_9, %c1_10, %c0_11, %c0_12] : memref<1x3x256x256xbf16, #tpu.memory_space<vmem>>, vector<1x1x256x256xbf16>
    %10 = vector.shape_cast %9 : vector<1x1x256x256xbf16> to vector<256x256xbf16>
    %cst_13 = arith.constant dense<0.000000e+00> : vector<1x256xf32>
    %11 = tpu.matmul %8, %10, %cst_13 {dimension_numbers = #tpu.dot_dimension_numbers<[1], [0], [0], [1], [0, 0, 1, 1], [], []>} : vector<1x256xbf16>, vector<256x256xbf16>, vector<1x256xf32> -> vector<1x256xf32>
    %12 = arith.addf %6, %11 : vector<1x256xf32>
    %c0_14 = arith.constant 0 : index
    %c2 = arith.constant 2 : index
    %c0_15 = arith.constant 0 : index
    %13 = vector.load %arg1[%c0_14, %c2, %c0_15] : memref<2x3x256xbf16, #tpu.memory_space<vmem>>, vector<1x1x256xbf16>
    %14 = vector.shape_cast %13 : vector<1x1x256xbf16> to vector<1x256xbf16>
    %c0_16 = arith.constant 0 : index
    %c2_17 = arith.constant 2 : index
    %c0_18 = arith.constant 0 : index
    %c0_19 = arith.constant 0 : index
    %15 = vector.load %arg2[%c0_16, %c2_17, %c0_18, %c0_19] : memref<1x3x256x256xbf16, #tpu.memory_space<vmem>>, vector<1x1x256x256xbf16>
    %16 = vector.shape_cast %15 : vector<1x1x256x256xbf16> to vector<256x256xbf16>
    %cst_20 = arith.constant dense<0.000000e+00> : vector<1x256xf32>
    %17 = tpu.matmul %14, %16, %cst_20 {dimension_numbers = #tpu.dot_dimension_numbers<[1], [0], [0], [1], [0, 0, 1, 1], [], []>} : vector<1x256xbf16>, vector<256x256xbf16>, vector<1x256xf32> -> vector<1x256xf32>
    %18 = arith.addf %12, %17 : vector<1x256xf32>
    %c0_21 = arith.constant 0 : index
    %c0_22 = arith.constant 0 : index
    %c0_23 = arith.constant 0 : index
    %19 = vector.load %arg3[%c0_21, %c0_22, %c0_23] : memref<1x1x256xf32, #tpu.memory_space<vmem>>, vector<1x1x256xf32>
    %20 = vector.shape_cast %19 : vector<1x1x256xf32> to vector<1x256xf32>
    %21 = arith.mulf %18, %20 : vector<1x256xf32>
    %c0_24 = arith.constant 0 : index
    %c0_25 = arith.constant 0 : index
    %c0_26 = arith.constant 0 : index
    %22 = vector.load %arg4[%c0_24, %c0_25, %c0_26] : memref<1x1x256xf32, #tpu.memory_space<vmem>>, vector<1x1x256xf32>
    %23 = vector.shape_cast %22 : vector<1x1x256xf32> to vector<1x256xf32>
    %24 = arith.addf %21, %23 : vector<1x256xf32>
    %cst_27 = arith.constant 0.000000e+00 : f32
    %25 = vector.broadcast %cst_27 : f32 to vector<1x256xf32>
    %26 = arith.cmpf ogt, %24, %25 : vector<1x256xf32>
    %27 = math.exp %24 : vector<1x256xf32>
    %cst_28 = arith.constant 1.000000e+00 : f32
    %28 = vector.broadcast %cst_28 : f32 to vector<1x256xf32>
    %29 = arith.subf %27, %28 : vector<1x256xf32>
    %cst_29 = arith.constant 1.67326319 : f32
    %30 = vector.broadcast %cst_29 : f32 to vector<1x256xf32>
    %31 = arith.mulf %30, %29 : vector<1x256xf32>
    %32 = arith.select %26, %24, %31 : vector<1x256xi1>, vector<1x256xf32>
    %cst_30 = arith.constant 1.05070102 : f32
    %33 = vector.broadcast %cst_30 : f32 to vector<1x256xf32>
    %34 = arith.mulf %33, %32 : vector<1x256xf32>
    %cst_31 = arith.constant dense<0.000000e+00> : vector<256xf32>
    %35 = vector.multi_reduction <add>, %34, %cst_31 [0] : vector<1x256xf32> to vector<256xf32>
    %36 = vector.shape_cast %35 : vector<256xf32> to vector<1x256xf32>
    %cst_32 = arith.constant 1.000000e+00 : f32
    %37 = vector.broadcast %cst_32 : f32 to vector<1x256xf32>
    %38 = arith.divf %36, %37 : vector<1x256xf32>
    %cst_33 = arith.constant 0.000000e+00 : f32
    %39 = vector.broadcast %cst_33 : f32 to vector<1x256xf32>
    %c1_34 = arith.constant 1 : index
    %c0_35 = arith.constant 0 : index
    %c0_36 = arith.constant 0 : index
    %40 = vector.load %arg1[%c1_34, %c0_35, %c0_36] : memref<2x3x256xbf16, #tpu.memory_space<vmem>>, vector<1x1x256xbf16>
    %41 = vector.shape_cast %40 : vector<1x1x256xbf16> to vector<1x256xbf16>
    %c0_37 = arith.constant 0 : index
    %c0_38 = arith.constant 0 : index
    %c0_39 = arith.constant 0 : index
    %c0_40 = arith.constant 0 : index
    %42 = vector.load %arg2[%c0_37, %c0_38, %c0_39, %c0_40] : memref<1x3x256x256xbf16, #tpu.memory_space<vmem>>, vector<1x1x256x256xbf16>
    %43 = vector.shape_cast %42 : vector<1x1x256x256xbf16> to vector<256x256xbf16>
    %cst_41 = arith.constant dense<0.000000e+00> : vector<1x256xf32>
    %44 = tpu.matmul %41, %43, %cst_41 {dimension_numbers = #tpu.dot_dimension_numbers<[1], [0], [0], [1], [0, 0, 1, 1], [], []>} : vector<1x256xbf16>, vector<256x256xbf16>, vector<1x256xf32> -> vector<1x256xf32>
    %45 = arith.addf %39, %44 : vector<1x256xf32>
    %c1_42 = arith.constant 1 : index
    %c1_43 = arith.constant 1 : index
    %c0_44 = arith.constant 0 : index
    %46 = vector.load %arg1[%c1_42, %c1_43, %c0_44] : memref<2x3x256xbf16, #tpu.memory_space<vmem>>, vector<1x1x256xbf16>
    %47 = vector.shape_cast %46 : vector<1x1x256xbf16> to vector<1x256xbf16>
    %c0_45 = arith.constant 0 : index
    %c1_46 = arith.constant 1 : index
    %c0_47 = arith.constant 0 : index
    %c0_48 = arith.constant 0 : index
    %48 = vector.load %arg2[%c0_45, %c1_46, %c0_47, %c0_48] : memref<1x3x256x256xbf16, #tpu.memory_space<vmem>>, vector<1x1x256x256xbf16>
    %49 = vector.shape_cast %48 : vector<1x1x256x256xbf16> to vector<256x256xbf16>
    %cst_49 = arith.constant dense<0.000000e+00> : vector<1x256xf32>
    %50 = tpu.matmul %47, %49, %cst_49 {dimension_numbers = #tpu.dot_dimension_numbers<[1], [0], [0], [1], [0, 0, 1, 1], [], []>} : vector<1x256xbf16>, vector<256x256xbf16>, vector<1x256xf32> -> vector<1x256xf32>
    %51 = arith.addf %45, %50 : vector<1x256xf32>
    %c1_50 = arith.constant 1 : index
    %c2_51 = arith.constant 2 : index
    %c0_52 = arith.constant 0 : index
    %52 = vector.load %arg1[%c1_50, %c2_51, %c0_52] : memref<2x3x256xbf16, #tpu.memory_space<vmem>>, vector<1x1x256xbf16>
    %53 = vector.shape_cast %52 : vector<1x1x256xbf16> to vector<1x256xbf16>
    %c0_53 = arith.constant 0 : index
    %c2_54 = arith.constant 2 : index
    %c0_55 = arith.constant 0 : index
    %c0_56 = arith.constant 0 : index
    %54 = vector.load %arg2[%c0_53, %c2_54, %c0_55, %c0_56] : memref<1x3x256x256xbf16, #tpu.memory_space<vmem>>, vector<1x1x256x256xbf16>
    %55 = vector.shape_cast %54 : vector<1x1x256x256xbf16> to vector<256x256xbf16>
    %cst_57 = arith.constant dense<0.000000e+00> : vector<1x256xf32>
    %56 = tpu.matmul %53, %55, %cst_57 {dimension_numbers = #tpu.dot_dimension_numbers<[1], [0], [0], [1], [0, 0, 1, 1], [], []>} : vector<1x256xbf16>, vector<256x256xbf16>, vector<1x256xf32> -> vector<1x256xf32>
    %57 = arith.addf %51, %56 : vector<1x256xf32>
    %c0_58 = arith.constant 0 : index
    %c0_59 = arith.constant 0 : index
    %c0_60 = arith.constant 0 : index
    %58 = vector.load %arg3[%c0_58, %c0_59, %c0_60] : memref<1x1x256xf32, #tpu.memory_space<vmem>>, vector<1x1x256xf32>
    %59 = vector.shape_cast %58 : vector<1x1x256xf32> to vector<1x256xf32>
    %60 = arith.mulf %57, %59 : vector<1x256xf32>
    %c0_61 = arith.constant 0 : index
    %c0_62 = arith.constant 0 : index
    %c0_63 = arith.constant 0 : index
    %61 = vector.load %arg4[%c0_61, %c0_62, %c0_63] : memref<1x1x256xf32, #tpu.memory_space<vmem>>, vector<1x1x256xf32>
    %62 = vector.shape_cast %61 : vector<1x1x256xf32> to vector<1x256xf32>
    %63 = arith.addf %60, %62 : vector<1x256xf32>
    %cst_64 = arith.constant 0.000000e+00 : f32
    %64 = vector.broadcast %cst_64 : f32 to vector<1x256xf32>
    %65 = arith.cmpf ogt, %63, %64 : vector<1x256xf32>
    %66 = math.exp %63 : vector<1x256xf32>
    %cst_65 = arith.constant 1.000000e+00 : f32
    %67 = vector.broadcast %cst_65 : f32 to vector<1x256xf32>
    %68 = arith.subf %66, %67 : vector<1x256xf32>
    %cst_66 = arith.constant 1.67326319 : f32
    %69 = vector.broadcast %cst_66 : f32 to vector<1x256xf32>
    %70 = arith.mulf %69, %68 : vector<1x256xf32>
    %71 = arith.select %65, %63, %70 : vector<1x256xi1>, vector<1x256xf32>
    %cst_67 = arith.constant 1.05070102 : f32
    %72 = vector.broadcast %cst_67 : f32 to vector<1x256xf32>
    %73 = arith.mulf %72, %71 : vector<1x256xf32>
    %cst_68 = arith.constant dense<0.000000e+00> : vector<256xf32>
    %74 = vector.multi_reduction <add>, %73, %cst_68 [0] : vector<1x256xf32> to vector<256xf32>
    %75 = vector.shape_cast %74 : vector<256xf32> to vector<1x256xf32>
    %cst_69 = arith.constant 1.000000e+00 : f32
    %76 = vector.broadcast %cst_69 : f32 to vector<1x256xf32>
    %77 = arith.divf %75, %76 : vector<1x256xf32>
    %78 = tpu.concatenate %38, %77 in 0 : vector<1x256xf32>, vector<1x256xf32> -> vector<2x256xf32>
    %79 = arith.truncf %78 : vector<2x256xf32> to vector<2x256xbf16>
    %c0_70 = arith.constant 0 : index
    %c0_71 = arith.constant 0 : index
    %c0_72 = arith.constant 0 : index
    %80 = vector.load %arg5[%c0_70, %c0_71, %c0_72] : memref<1x256x256xbf16, #tpu.memory_space<vmem>>, vector<1x256x256xbf16>
    %81 = vector.shape_cast %80 : vector<1x256x256xbf16> to vector<256x256xbf16>
    %cst_73 = arith.constant dense<0.000000e+00> : vector<2x256xf32>
    %82 = tpu.matmul %79, %81, %cst_73 {dimension_numbers = #tpu.dot_dimension_numbers<[1], [0], [0], [1], [0, 0, 1, 1], [], []>} : vector<2x256xbf16>, vector<256x256xbf16>, vector<2x256xf32> -> vector<2x256xf32>
    %c0_74 = arith.constant 0 : index
    %c0_75 = arith.constant 0 : index
    %c0_76 = arith.constant 0 : index
    %83 = vector.load %arg6[%c0_74, %c0_75, %c0_76] : memref<1x1x256xf32, #tpu.memory_space<vmem>>, vector<1x1x256xf32>
    %84 = vector.shape_cast %83 : vector<1x1x256xf32> to vector<1x256xf32>
    %85 = vector.broadcast %84 : vector<1x256xf32> to vector<2x256xf32>
    %86 = arith.addf %82, %85 : vector<2x256xf32>
    %cst_77 = arith.constant 0.000000e+00 : f32
    %87 = vector.broadcast %cst_77 : f32 to vector<2x256xf32>
    %88 = arith.cmpf ogt, %86, %87 : vector<2x256xf32>
    %89 = math.exp %86 : vector<2x256xf32>
    %cst_78 = arith.constant 1.000000e+00 : f32
    %90 = vector.broadcast %cst_78 : f32 to vector<2x256xf32>
    %91 = arith.subf %89, %90 : vector<2x256xf32>
    %cst_79 = arith.constant 1.67326319 : f32
    %92 = vector.broadcast %cst_79 : f32 to vector<2x256xf32>
    %93 = arith.mulf %92, %91 : vector<2x256xf32>
    %94 = arith.select %88, %86, %93 : vector<2x256xi1>, vector<2x256xf32>
    %cst_80 = arith.constant 1.05070102 : f32
    %95 = vector.broadcast %cst_80 : f32 to vector<2x256xf32>
    %96 = arith.mulf %95, %94 : vector<2x256xf32>
    %97 = arith.truncf %96 : vector<2x256xf32> to vector<2x256xbf16>
    %c0_81 = arith.constant 0 : index
    %c0_82 = arith.constant 0 : index
    %c0_83 = arith.constant 0 : index
    %98 = vector.load %arg7[%c0_81, %c0_82, %c0_83] : memref<1x256x256xbf16, #tpu.memory_space<vmem>>, vector<1x256x256xbf16>
    %99 = vector.shape_cast %98 : vector<1x256x256xbf16> to vector<256x256xbf16>
    %cst_84 = arith.constant dense<0.000000e+00> : vector<2x256xf32>
    %100 = tpu.matmul %97, %99, %cst_84 {dimension_numbers = #tpu.dot_dimension_numbers<[1], [0], [0], [1], [0, 0, 1, 1], [], []>} : vector<2x256xbf16>, vector<256x256xbf16>, vector<2x256xf32> -> vector<2x256xf32>
    %c0_85 = arith.constant 0 : index
    %c0_86 = arith.constant 0 : index
    %c0_87 = arith.constant 0 : index
    %101 = vector.load %arg8[%c0_85, %c0_86, %c0_87] : memref<1x1x256xf32, #tpu.memory_space<vmem>>, vector<1x1x256xf32>
    %102 = vector.shape_cast %101 : vector<1x1x256xf32> to vector<1x256xf32>
    %103 = vector.broadcast %102 : vector<1x256xf32> to vector<2x256xf32>
    %104 = arith.addf %100, %103 : vector<2x256xf32>
    %cst_88 = arith.constant dense<0xFF800000> : vector<2xf32>
    %105 = vector.multi_reduction <maximumf>, %104, %cst_88 [1] : vector<2x256xf32> to vector<2xf32>
    %106 = vector.shape_cast %105 : vector<2xf32> to vector<2x1xf32>
    %107 = vector.broadcast %106 : vector<2x1xf32> to vector<2x256xf32>
    %108 = arith.subf %104, %107 : vector<2x256xf32>
    %109 = math.exp %108 : vector<2x256xf32>
    %cst_89 = arith.constant dense<0.000000e+00> : vector<2xf32>
    %110 = vector.multi_reduction <add>, %109, %cst_89 [1] : vector<2x256xf32> to vector<2xf32>
    %111 = vector.shape_cast %110 : vector<2xf32> to vector<2x1xf32>
    %112 = tpu.reciprocal %111 {approx = true} : vector<2x1xf32> -> vector<2x1xf32>
    %113 = vector.broadcast %112 : vector<2x1xf32> to vector<2x256xf32>
    %114 = arith.mulf %109, %113 : vector<2x256xf32>
    %c0_90 = arith.constant 0 : index
    %c0_91 = arith.constant 0 : index
    %c0_92 = arith.constant 0 : index
    %115 = vector.load %arg9[%c0_90, %c0_91, %c0_92] : memref<1x2x256xf32, #tpu.memory_space<vmem>>, vector<1x2x256xf32>
    %116 = vector.shape_cast %115 : vector<1x2x256xf32> to vector<2x256xf32>
    %117 = vector.shape_cast %114 : vector<2x256xf32> to vector<1x2x256xf32>
    tpu.vector_store %arg9[%c0_90, %c0_91, %c0_92], %117 {strides = array<i32>} : memref<1x2x256xf32, #tpu.memory_space<vmem>>, vector<1x2x256xf32>,
    return
  }
  func.func @transform_0(%arg0: i32) -> (i32, i32, i32) {
    %c0_i32 = arith.constant 0 : i32
    %c0_i32_0 = arith.constant 0 : i32
    %c0_i32_1 = arith.constant 0 : i32
    %c0_i32_2 = arith.constant 0 : i32
    return %c0_i32, %c0_i32_0, %c0_i32_1 : i32, i32, i32
  }
  func.func @transform_1(%arg0: i32) -> (i32, i32, i32, i32) {
    %c0_i32 = arith.constant 0 : i32
    %c0_i32_0 = arith.constant 0 : i32
    %c0_i32_1 = arith.constant 0 : i32
    %c0_i32_2 = arith.constant 0 : i32
    return %arg0, %c0_i32, %c0_i32_0, %c0_i32_1 : i32, i32, i32, i32
  }
  func.func @transform_2(%arg0: i32) -> (i32, i32, i32) {
    %c0_i32 = arith.constant 0 : i32
    %c0_i32_0 = arith.constant 0 : i32
    %c0_i32_1 = arith.constant 0 : i32
    return %arg0, %c0_i32, %c0_i32_0 : i32, i32, i32
  }
  func.func @transform_3(%arg0: i32) -> (i32, i32, i32) {
    %c0_i32 = arith.constant 0 : i32
    %c0_i32_0 = arith.constant 0 : i32
    %c0_i32_1 = arith.constant 0 : i32
    return %arg0, %c0_i32, %c0_i32_0 : i32, i32, i32
  }
  func.func @transform_4(%arg0: i32) -> (i32, i32, i32) {
    %c0_i32 = arith.constant 0 : i32
    %c0_i32_0 = arith.constant 0 : i32
    %c0_i32_1 = arith.constant 0 : i32
    return %arg0, %c0_i32, %c0_i32_0 : i32, i32, i32
  }
  func.func @transform_5(%arg0: i32) -> (i32, i32, i32) {
    %c0_i32 = arith.constant 0 : i32
    %c0_i32_0 = arith.constant 0 : i32
    %c0_i32_1 = arith.constant 0 : i32
    return %arg0, %c0_i32, %c0_i32_0 : i32, i32, i32
  }
  func.func @transform_6(%arg0: i32) -> (i32, i32, i32) {
    %c0_i32 = arith.constant 0 : i32
    %c0_i32_0 = arith.constant 0 : i32
    %c0_i32_1 = arith.constant 0 : i32
    return %arg0, %c0_i32, %c0_i32_0 : i32, i32, i32
  }
  func.func @transform_7(%arg0: i32) -> (i32, i32, i32) {
    %c0_i32 = arith.constant 0 : i32
    %c0_i32_0 = arith.constant 0 : i32
    %c0_i32_1 = arith.constant 0 : i32
    return %arg0, %c0_i32, %c0_i32_0 : i32, i32, i32
  }
  func.func @transform_8(%arg0: i32) -> (i32, i32, i32) {
    %c0_i32 = arith.constant 0 : i32
    %c0_i32_0 = arith.constant 0 : i32
    %c0_i32_1 = arith.constant 0 : i32
    return %arg0, %c0_i32, %c0_i32_0 : i32, i32, i32
  }
}

module attributes {stable_mosaic.version = 11 : i64} {
  func.func @_softxor_log_kernel(%arg0: i32, %arg1: memref<2x256xf32, #tpu.memory_space<vmem>>, %arg2: memref<1x2x256xf32, #tpu.memory_space<vmem>>, %arg3: memref<256x256xf32, #tpu.memory_space<vmem>>, %arg4: memref<1x2x256xf32, #tpu.memory_space<vmem>>) attributes {dimension_semantics = [#tpu.dimension_semantics<parallel>], iteration_bounds = array<i64: 4>, scalar_prefetch = 0 : i64, scratch_operands = 0 : i64, tpu.core_type = #tpu.core_type<tc>, window_params = [{pipeline_mode = #tpu.pipeline_mode<synchronous>, transform_indices = @transform_0, window_bounds = array<i64: 2, 256>}, {transform_indices = @transform_1, window_bounds = array<i64: 1, 2, 256>}, {pipeline_mode = #tpu.pipeline_mode<synchronous>, transform_indices = @transform_2, window_bounds = array<i64: 256, 256>}, {transform_indices = @transform_3, window_bounds = array<i64: 1, 2, 256>}]} {
    %c0 = arith.constant 0 : index
    %c0_0 = arith.constant 0 : index
    %0 = vector.load %arg3[%c0, %c0_0] : memref<256x256xf32, #tpu.memory_space<vmem>>, vector<256x256xf32>
    %c0_1 = arith.constant 0 : index
    %c0_2 = arith.constant 0 : index
    %1 = vector.load %arg1[%c0_1, %c0_2] : memref<2x256xf32, #tpu.memory_space<vmem>>, vector<2x256xf32>
    %cst = arith.constant dense<0.000000e+00> : vector<2x256xf32>
    %2 = tpu.matmul %1, %0, %cst {dimension_numbers = #tpu.dot_dimension_numbers<[1], [0], [0], [1], [0, 0, 1, 1], [], []>} : vector<2x256xf32>, vector<256x256xf32>, vector<2x256xf32> -> vector<2x256xf32>
    %c0_3 = arith.constant 0 : index
    %c0_4 = arith.constant 0 : index
    %c0_5 = arith.constant 0 : index
    %3 = vector.load %arg2[%c0_3, %c0_4, %c0_5] : memref<1x2x256xf32, #tpu.memory_space<vmem>>, vector<1x2x256xf32>
    %4 = vector.shape_cast %3 : vector<1x2x256xf32> to vector<2x256xf32>
    %cst_6 = arith.constant dense<0.000000e+00> : vector<2x256xf32>
    %5 = tpu.matmul %4, %0, %cst_6 {dimension_numbers = #tpu.dot_dimension_numbers<[1], [0], [0], [1], [0, 0, 1, 1], [], []>} : vector<2x256xf32>, vector<256x256xf32>, vector<2x256xf32> -> vector<2x256xf32>
    %6 = arith.mulf %2, %5 : vector<2x256xf32>
    %cst_7 = arith.constant dense<0.000000e+00> : vector<2x256xf32>
    %7 = tpu.matmul %6, %0, %cst_7 {dimension_numbers = #tpu.dot_dimension_numbers<[1], [0], [0], [1], [0, 0, 1, 1], [], []>} : vector<2x256xf32>, vector<256x256xf32>, vector<2x256xf32> -> vector<2x256xf32>
    %cst_8 = arith.constant 3.906250e-03 : f32
    %8 = vector.broadcast %cst_8 : f32 to vector<2x256xf32>
    %9 = arith.mulf %7, %8 : vector<2x256xf32>
    %cst_9 = arith.constant 9.99999996E-13 : f32
    %10 = vector.broadcast %cst_9 : f32 to vector<2x256xf32>
    %11 = arith.maximumf %9, %10 : vector<2x256xf32>
    %12 = math.log %11 : vector<2x256xf32>
    %c0_10 = arith.constant 0 : index
    %c0_11 = arith.constant 0 : index
    %c0_12 = arith.constant 0 : index
    %13 = vector.load %arg4[%c0_10, %c0_11, %c0_12] : memref<1x2x256xf32, #tpu.memory_space<vmem>>, vector<1x2x256xf32>
    %14 = vector.shape_cast %13 : vector<1x2x256xf32> to vector<2x256xf32>
    %15 = vector.shape_cast %12 : vector<2x256xf32> to vector<1x2x256xf32>
    tpu.vector_store %arg4[%c0_10, %c0_11, %c0_12], %15 {strides = array<i32>} : memref<1x2x256xf32, #tpu.memory_space<vmem>>, vector<1x2x256xf32>,
    return
  }
  func.func @transform_0(%arg0: i32) -> (i32, i32) {
    %c0_i32 = arith.constant 0 : i32
    %c0_i32_0 = arith.constant 0 : i32
    %c0_i32_1 = arith.constant 0 : i32
    return %c0_i32, %c0_i32_0 : i32, i32
  }
  func.func @transform_1(%arg0: i32) -> (i32, i32, i32) {
    %c0_i32 = arith.constant 0 : i32
    %c0_i32_0 = arith.constant 0 : i32
    %c0_i32_1 = arith.constant 0 : i32
    return %arg0, %c0_i32, %c0_i32_0 : i32, i32, i32
  }
  func.func @transform_2(%arg0: i32) -> (i32, i32) {
    %c0_i32 = arith.constant 0 : i32
    %c0_i32_0 = arith.constant 0 : i32
    %c0_i32_1 = arith.constant 0 : i32
    return %c0_i32, %c0_i32_0 : i32, i32
  }
  func.func @transform_3(%arg0: i32) -> (i32, i32, i32) {
    %c0_i32 = arith.constant 0 : i32
    %c0_i32_0 = arith.constant 0 : i32
    %c0_i32_1 = arith.constant 0 : i32
    return %arg0, %c0_i32, %c0_i32_0 : i32, i32, i32
  }
}

</mosaic_0001>

<bundles_post_ra>
// kernel: multitask_cnn_forward.5
= control target key start
LH: loop header
LB: loop body
LE: loop exit
PB: predicated region body
PF: predicated region fallthrough
CT: control target
= control target key end

     0   :  { %9 = vsyncpa [#allocation3], 0  ;;  %s1214_s0 = inlined_call_operand.vmem [shape: bf16[2,66,8], index: 0, kind: input, shape index: {}]   ;;  %s1215_s1 = inlined_call_operand.vmem [shape: bf16[3,8,16], index: 1, kind: input, shape index: {}]   ;;  %s1216_s2 = inlined_call_operand.hbm [shape: f32[1,16], index: 2, kind: input, shape index: {}]   ;;  %s1217_s3 = inlined_call_operand.hbm [shape: f32[1,16], index: 3, kind: input, shape index: {}]   ;;  %s1218_s4 = inlined_call_operand.vmem [shape: bf16[2,64,16], index: 4, kind: output, shape index: {}]  }
   0x1   :  { %10 = vsyncpa [#allocation5], 0  ;;  %s1042_s15 = smov 0  }
   0x2 LB: > { %s1048_s16 = sadd.s32 4294967295, %s1013_s15   ;;  %p765_p0 = scmp.ge.s32.totalorder %s1013_s15, 1  ;;  %s1013_s15 = sphi %s1042_s15, %s16_s15  }
   0x3   : > { %p136_p1 = scmp.lt.s32.totalorder %s1013_s15, 3  ;;  %p1219_p2 = scmp.eq.s32.totalorder %s1048_s16, 0 }
   0x4   : > { %s1015_s18 = smov [#allocation2]   ;;  %s1016_s20 = smov [#allocation4]  }
   0x5   : > { %p1053_p3 = pnand %p765_p0, %p136_p1  ;;  %s152_s19 = sshll.u32 %s1015_s18, 4  ;;  %s153_s19 = int_to_ptr.vmem [resolvable:$true] %s152_s19 }
   0x6   : > { %s163_s21 = sshll.u32 %s1016_s20, 4  ;;  %s943_s25 = scalar_lea.hbm %s1216_s2, 16  ;;  %s1065_s21 = int_to_ptr.vmem [resolvable:$true] %s163_s21 }
   0x7   : > { %s1221_s17 = scalar_select %p1053_p3, 1, 0 }
   0x8   : > { %p900_p4 = pneg %p1053_p3  ;;  %p944_p6 = scmp.ne.s32.totalorder %s1216_s2, %s943_s25 }
   0x9   : > { %p950_p10 = scmp.lt.u32.totalorder %s943_s25, %s1216_s2 }
   0xa   : > { %p1061_p5 = pnand %p1219_p2, %p900_p4 }
   0xc   : > { %p945_p7 = pneg %p1061_p5 }
   0xe   : > { %p946_p8 = pnand %p945_p7, %p944_p6 }
  0x10   : > { %p947_p9 = pneg %p946_p8 }
  0x12   : > { %p952_p11 = pnand %p950_p10, %p947_p9 }
  0x14   : > { %955 = shalt.err (!%p952_p11)
}
  0x15   : > { %s956_s30 = scalar_lea.vmem %s153_s19, 16  ;;  %s963_s5 = scalar_lea.vmem %s153_s19, 32 }
  0x16   : > { %p957_p12 = scmp.ne.s32.totalorder %s153_s19, %s956_s30  ;;  %p964_p1 = scmp.lt.s32.totalorder %s153_s19, %s153_s19 }
  0x17   : > { %p965_p4 = scmp.lt.s32.totalorder %s963_s5, %s956_s30 }
  0x18   : > { %p959_p13 = pnand %p957_p12, %p945_p7 }
  0x19   : > { %p966_p2 = por %p965_p4, %p964_p1 }
  0x1a   : > { %p960_p0 = pneg %p959_p13 }
  0x1c   : > { %p967_p3 = pnand %p966_p2, %p960_p0 }
  0x1e   : > { %970 = shalt.err (!%p967_p3)
}
  0x1f   : > { %903 = dma.hbm_to_vmem [thread:$0]  (!%p1061_p5), %s1216_s2, 16, %s153_s19, [#allocation3]  }
  0x20   : > { %s971_s10 = scalar_lea.hbm %s1217_s3, 16 }
  0x21   : > { %p972_p6 = scmp.ne.s32.totalorder %s1217_s3, %s971_s10  ;;  %p978_p3 = scmp.lt.u32.totalorder %s971_s10, %s1217_s3 }
  0x23   : > { %p974_p8 = pnand %p972_p6, %p945_p7 }
  0x25   : > { %p975_p2 = pneg %p974_p8 }
  0x27   : > { %p980_p9 = pnand %p978_p3, %p975_p2 }
  0x29   : > { %983 = shalt.err (!%p980_p9)
}
  0x2a   : > { %s984_s18 = scalar_lea.vmem %s1065_s21, 16  ;;  %s991_s19 = scalar_lea.vmem %s1065_s21, 32 }
  0x2b   : > { %p985_p10 = scmp.ne.s32.totalorder %s1065_s21, %s984_s18  ;;  %p992_p13 = scmp.lt.s32.totalorder %s1065_s21, %s1065_s21 }
  0x2c   : > { %p993_p0 = scmp.lt.s32.totalorder %s991_s19, %s984_s18 }
  0x2d   : > { %p987_p11 = pnand %p985_p10, %p945_p7 }
  0x2e   : > { %p994_p1 = por %p993_p0, %p992_p13 }
  0x2f   : > { %p988_p12 = pneg %p987_p11 }
  0x31   : > { %p995_p4 = pnand %p994_p1, %p988_p12 }
  0x33   : > { %998 = shalt.err (!%p995_p4)
}
  0x34   : > { %906 = dma.hbm_to_vmem [thread:$0]  (!%p1061_p5), %s1217_s3, 16, %s1065_s21, [#allocation5]  }
  0x35   : > { %p1223_p6 = scmp.ne.s32.totalorder %s1221_s17, 0 }
  0x36   : > { %p1224_p7 = scmp.eq.s32.totalorder (!%p1223_p6), %s1048_s16, 0 }
  0x37   : > { %184 = sbr.rel (%p1223_p6) target bundleno = 348 (0x15c), region = 36 }
  0x3e   : > { %1004 = dma.done.wait (%p1224_p7), [#allocation3], 16   ;;  %p1225_p8 = pmov %p1224_p7 }
  0x3f   : > { %p1226_p2 = pmov %p1224_p7 }
  0x40   : > { %1006 = vsyncadd (%p1225_p8), [#allocation3], 4294967280 }
  0x41   : > { %1008 = dma.done.wait (%p1226_p2), [#allocation5], 16   ;;  %p1227_p3 = pmov %p1226_p2 }
  0x42   : > { %p214_p9 = scmp.lt.s32.totalorder %s1048_s16, 1  ;;  %vm310_vm0 = vcmask 1043456   ;;  %vm297_vm1 = vcmask 64512   ;;  %vm461_vm2 = vcmask 1046528   ;;  %v233_v0 = vld [vmem:[%s1215_s1] sm:$0xf] }
  0x43   : > { %1010 = vsyncadd (%p1227_p3), [#allocation5], 4294967280  ;;  %888 = vmatprep.subr.msk.bf16.mxu0 %vm310_vm0, %v233_v0  ;;  %v388_v3 = vsel %vm310_vm0, %v233_v0, 0  ;;  %v775_v8 = vld [vmem:[%s1215_s1 + $0x4] sm:$0xf]  ;;  %vm677_vm5 = vcmask 125952  }
  0x44   : > { %s1229_s16 = smov (!%p214_p9, %s1048_s16), 1  ;;  %850 = vmatpush3.bf16.msra.mxu0 %v388_v3  ;;  %v789_v9 = vld [vmem:[%s1215_s1 + $0x8] sm:$0xf]  ;;  %887 = vmatprep.subr.msk.bf16.mxu1 %vm310_vm0, %v775_v8  ;;  %v312_v10 = vsel %vm310_vm0, %v775_v8, 0  ;;  %vm260_vm3 = vsmask.f32 7424 }
  0x45   : > { %s891_s17 = smul.u32 36, %s1229_s16  ;;  %840 = vmatpush3.bf16.msra.mxu1 %v312_v10  ;;  %890 = vmatprep.subr.msk.bf16.mxu0 %vm310_vm0, %v789_v9  ;;  %v484_v17 = vsel %vm310_vm0, %v789_v9, 0  ;;  %v795_v51 = vld [vmem:[#allocation2] ss:$0 sm:$0xff]  ;;  %v1178_v54 = vld [vmem:[#allocation4] ss:$0 sm:$0xff] }
  0x46   : > { %889 = vmatprep.subr.msk.bf16.mxu1 %vm310_vm0, %v233_v0  ;;  %s815_s5 = sshll.u32 %s1229_s16, 5 }
  0x47   : > { %s1133_s24 = scalar_lea.vmem %s1214_s0, %s891_s17  ;;  %s1193_s8 = scalar_lea.vmem %s1218_s4, %s815_s5 }
  0x48   : > { %v225_v1 = vld [vmem:[%s1133_s24] sm:$0xf]  ;;  %v226_v2 = vld [vmem:[%s1133_s24 + $0x4] sm:$0xf]  ;;  %v923_v6 = vld [vmem:[%s1133_s24 + $0x8] sm:$0xff]  }
  0x49   : > { %v776_v4 = vcombine.low %v225_v1, %v226_v2  ;;  %v455_v5 = vld [vmem:[%s1133_s24] sm:$0xe]  ;;  %v269_v13 = vshll.u32 %v923_v6, 16  ;;  %v273_v15 = vshrl.u32 %v923_v6, 16  ;;  %v924_v16 = vld [vmem:[%s1133_s24 + $0x10] sm:$0xff]   ;;  %v463_v20 = vrot.slane %v923_v6, 1 }
  0x4a   : > { %v790_v7 = vcombine.low %v455_v5, %v226_v2  ;;  %v925_v21 = vld [vmem:[%s1133_s24 + $0x18] sm:$0xff]   ;;  %v277_v22 = vshll.u32 %v924_v16, 16  ;;  %v281_v23 = vshrl.u32 %v924_v16, 16  ;;  %v926_v28 = vld [vmem:[%s1133_s24 + $0x20] ss:$0 sps:$4 sm:$0x11]  }
  0x4b   : > { %851 = vmatprep.mubr.msk.bf16.mxu0 %vm297_vm1, %v776_v4  ;;  %v262_v11 = vshrl.u32 %v776_v4, 16  ;;  %v264_v12 = vshll.u32 %v776_v4, 16  ;;  %v271_v19 = vrot.slane %v269_v13, 1  ;;  %v285_v27 = vshll.u32 %v925_v21, 16 }
  0x4c   : > { %v462_v14 = vrot.slane %v790_v7, 1  ;;  %852 = vmatmul.mubr.msk.bf16.vlgmr.msra.gmra.mrb[0].mxu0 %vm297_vm1, %v923_v6  ;;  %v279_v29 = vrot.slane %v277_v22, 1  ;;  %v289_v30 = vshrl.u32 %v925_v21, 16  ;;  %v293_v33 = vshll.u32 %v926_v28, 16 }
  0x4d   : > { %v266_v18 = vrot.slane %v264_v12, 1  ;;  %860 = vmatpush3.bf16.msra.mxu0 %v484_v17  ;;  %v275_v25 = vor.u32 %v273_v15, %v271_v19  ;;  %v287_v32 = vrot.slane %v285_v27, 1  ;;  %v465_v35 = vrot.slane %v924_v16, 1 }
  0x4e   : > { %v464_v26 = vsel %vm461_vm2, %v462_v14, %v463_v20  ;;  %v283_v36 = vor.u32 %v281_v23, %v279_v29  ;;  %v467_v37 = vrot.slane %v925_v21, 1  ;;  %v295_v40 = vrot.slane %v293_v33, 1 }
  0x4f   : > { %v267_v24 = vor.u32 %v266_v18, %v262_v11  ;;  %861 = vmatprep.mubr.msk.bf16.mxu0 %vm297_vm1, %v464_v26  ;;  %v280_v34 = vsel %vm260_vm3, %v275_v25, %v279_v29  ;;  %v291_v39 = vor.u32 %v289_v30, %v287_v32  ;;  %v466_v41 = vsel %vm461_vm2, %v463_v20, %v465_v35 }
  0x50   : > { %v288_v38 = vsel %vm260_vm3, %v283_v36, %v287_v32  ;;  %v468_v42 = vsel %vm461_vm2, %v465_v35, %v467_v37  ;;  %v469_v44 = vrot.slane %v926_v28, 1 }
  0x51   : > { %v272_v31 = vsel %vm260_vm3, %v267_v24, %v271_v19  ;;  %v296_v43 = vsel %vm260_vm3, %v291_v39, %v295_v40 }
  0x52   : > { %841 = vmatprep.mubr.msk.bf16.mxu1 %vm297_vm1, %v272_v31  ;;  %v470_v45 = vsel %vm461_vm2, %v467_v37, %v469_v44 }
  0x53   : > { %842 = vmatmul.mubr.msk.bf16.vlgmr.msra.gmra.mrb[0].mxu1 %vm297_vm1, %v280_v34 }
  0x54   : > { %870 = vmatpush3.bf16.msra.mxu1 %v388_v3  ;;  %845 = vmatprep.mubr.msk.bf16.mxu1 %vm297_vm1, %v288_v38 }
  0x58   : > { %862 = vmatmul.mubr.msk.bf16.vlgmr.msra.gmra.mrb[0].mxu0 %vm297_vm1, %v466_v41 }
  0x59   : > { %865 = vmatprep.mubr.msk.bf16.mxu0 %vm297_vm1, %v468_v42 }
  0x5b   : > { %846 = vmatmul.mubr.msk.bf16.gmra.mrb[4].mxu1 %vm297_vm1, %v296_v43 }
  0x5c   : > { %855 = vmatprep.mubr.msk.bf16.mxu1 %vm297_vm1, %v924_v16 }
  0x60   : > { %866 = vmatmul.mubr.msk.bf16.gmra.mrb[4].mxu0 %vm297_vm1, %v470_v45 }
  0x67   : > { %856 = vmatmul.mubr.msk.bf16.vlgmr.msra.gmra.mrb[4].mxu1 %vm297_vm1, %v925_v21 }
 0x126   : > { %v843_v46 = vpop.f32.mrb[0].mxu1 }
 0x127   : > { %v348_v47 = vpop.f32.mrb[1].mxu1 }
 0x128   : > { %v844_v48 = vpop.f32.mrb[2].mxu1 }
 0x129   : > { %v351_v49 = vpop.f32.mrb[3].mxu1 }
 0x12b   : > { %v863_v50 = vpop.f32.mrb[0].mxu0 }
 0x12c   : > { %v871_v52 = vadd.f32 %v863_v50, %v843_v46  ;;  %v520_v53 = vpop.f32.mrb[1].mxu0 }
 0x12d   : > { %v872_v55 = vadd.f32 %v520_v53, %v348_v47  ;;  %v864_v56 = vpop.f32.mrb[2].mxu0 }
 0x12e   : > { %v568_v57 = vmul.f32 %v871_v52, %v795_v51  ;;  %v873_v58 = vadd.f32 %v864_v56, %v844_v48  ;;  %v523_v59 = vpop.f32.mrb[3].mxu0 }
 0x12f   : > { %v566_v60 = vmul.f32 %v872_v55, %v795_v51  ;;  %v874_v61 = vadd.f32 %v523_v59, %v351_v49 }
 0x130   : > { %v583_v62 = vadd.f32 %v1178_v54, %v568_v57  ;;  %v569_v63 = vmul.f32 %v873_v58, %v795_v51 }
 0x131   : > { %v581_v0 = vadd.f32 %v1178_v54, %v566_v60  ;;  %v567_v1 = vmul.f32 %v874_v61, %v795_v51 }
 0x132   : > { %v601_v2 = vmul.f32 1.442695, %v583_v62  ;;  %v584_v3 = vadd.f32 %v1178_v54, %v569_v63  ;;  %vm591_vm4 = vcmp.gt.f32.partialorder %v583_v62, 0.0 }
 0x133   : > { %v597_v4 = vmul.f32 1.442695, %v581_v0  ;;  %v582_v5 = vadd.f32 %v1178_v54, %v567_v1  ;;  %v867_v6 = vpop.f32.mrb[4].mxu0  ;;  %vm589_vm6 = vcmp.gt.f32.partialorder %v581_v0, 0.0 }
 0x134   : > { %927 = vpow2.f32 %v601_v2  ;;  %v603_v7 = vmul.f32 1.442695, %v584_v3  ;;  %v536_v8 = vpop.f32.mrb[5].mxu0  ;;  %vm592_vm7 = vcmp.gt.f32.partialorder %v584_v3, 0.0 }
 0x135   : > { %929 = vpow2.f32 %v597_v4  ;;  %v599_v9 = vmul.f32 1.442695, %v582_v5  ;;  %v868_v10 = vpop.f32.mrb[6].mxu0  ;;  %vm590_vm8 = vcmp.gt.f32.partialorder %v582_v5, 0.0 }
 0x136   : > { %931 = vpow2.f32 %v603_v7  ;;  %v539_v11 = vpop.f32.mrb[7].mxu0 }
 0x137   : > { %933 = vpow2.f32 %v599_v9 }
 0x13a   : > { %v857_v12 = vpop.f32.mrb[4].mxu1 }
 0x13b   : > { %v875_v13 = vadd.f32 %v867_v6, %v857_v12  ;;  %v440_v14 = vpop.f32.mrb[5].mxu1 }
 0x13c   : > { %v876_v15 = vadd.f32 %v536_v8, %v440_v14  ;;  %v858_v16 = vpop.f32.mrb[6].mxu1 }
 0x13d   : > { %v572_v17 = vmul.f32 %v875_v13, %v795_v51  ;;  %v877_v18 = vadd.f32 %v868_v10, %v858_v16  ;;  %v443_v19 = vpop.f32.mrb[7].mxu1 }
 0x13e   : > { %v570_v20 = vmul.f32 %v876_v15, %v795_v51  ;;  %v878_v21 = vadd.f32 %v539_v11, %v443_v19  ;;  %v928_v22 = vpop.eup %927 }
 0x13f   : > { %v587_v23 = vadd.f32 %v1178_v54, %v572_v17  ;;  %v573_v24 = vmul.f32 %v877_v18, %v795_v51  ;;  %v930_v25 = vpop.eup %929  ;;  %v799_v26 = vadd.f32 -1.0, %v928_v22 }
 0x140   : > { %v585_v27 = vadd.f32 %v1178_v54, %v570_v20  ;;  %v932_v28 = vpop.eup %931  ;;  %v797_v29 = vadd.f32 -1.0, %v930_v25  ;;  %v571_v32 = vmul.f32 %v878_v21, %v795_v51 }
 0x141   : > { %v609_v30 = vmul.f32 1.442695, %v587_v23  ;;  %v588_v31 = vadd.f32 %v1178_v54, %v573_v24  ;;  %v934_v33 = vpop.eup %933  ;;  %v623_v34 = vmul.f32 1.6732632, %v799_v26  ;;  %v800_v35 = vadd.f32 -1.0, %v932_v28 }
 0x142   : > { %v605_v36 = vmul.f32 1.442695, %v585_v27  ;;  %v621_v37 = vmul.f32 1.6732632, %v797_v29  ;;  %v798_v38 = vadd.f32 -1.0, %v934_v33  ;;  %v586_v45 = vadd.f32 %v1178_v54, %v571_v32 }
 0x143   : > { %935 = vpow2.f32 %v609_v30  ;;  %v631_v39 = vsel %vm591_vm4, %v583_v62, %v623_v34  ;;  %v624_v40 = vmul.f32 1.6732632, %v800_v35  ;;  %v611_v41 = vmul.f32 1.442695, %v588_v31 }
 0x144   : > { %937 = vpow2.f32 %v605_v36  ;;  %v639_v42 = vmul.f32 1.050701, %v631_v39  ;;  %v629_v43 = vsel %vm589_vm6, %v581_v0, %v621_v37  ;;  %v622_v44 = vmul.f32 1.6732632, %v798_v38 }
 0x145   : > { %v637_v46 = vmul.f32 1.050701, %v629_v43  ;;  %v632_v47 = vsel %vm592_vm7, %v584_v3, %v624_v40  ;;  %939 = vpow2.f32 %v611_v41  ;;  %v607_v53 = vmul.f32 1.442695, %v586_v45 }
 0x146   : > { %v818_v48 = vpack.c.bf16 %v639_v42, %v639_v42  ;;  %v640_v49 = vmul.f32 1.050701, %v632_v47  ;;  %v630_v50 = vsel %vm590_vm8, %v582_v5, %v622_v44  ;;  %vm595_vm9 = vcmp.gt.f32.partialorder %v587_v23, 0.0 }
 0x147   : > { %v816_v51 = vpack.c.bf16 %v637_v46, %v637_v46  ;;  %v638_v52 = vmul.f32 1.050701, %v630_v50  ;;  %941 = vpow2.f32 %v607_v53  ;;  %vm593_vm10 = vcmp.gt.f32.partialorder %v585_v27, 0.0 }
 0x148   : > { %680 = vst.msk [vmem:[%s1193_s8 + $0x8] sm:$0xf] %vm677_vm5, %v818_v48  ;;  %v819_v54 = vpack.c.bf16 %v640_v49, %v640_v49  ;;  %vm596_vm11 = vcmp.gt.f32.partialorder %v588_v31, 0.0  ;;  %vm594_vm12 = vcmp.gt.f32.partialorder %v586_v45, 0.0 }
 0x149   : > { %678 = vst.msk [vmem:[%s1193_s8] sm:$0xf] %vm677_vm5, %v816_v51  ;;  %v817_v55 = vpack.c.bf16 %v638_v52, %v638_v52 }
 0x14a   : > { %681 = vst.msk [vmem:[%s1193_s8 + $0xc] sm:$0xf] %vm677_vm5, %v819_v54 }
 0x14b   : > { %679 = vst.msk [vmem:[%s1193_s8 + $0x4] sm:$0xf] %vm677_vm5, %v817_v55 }
 0x14d   : > { %v936_v56 = vpop.eup %935 }
 0x14e   : > { %v938_v57 = vpop.eup %937  ;;  %v803_v58 = vadd.f32 -1.0, %v936_v56 }
 0x14f   : > { %v801_v59 = vadd.f32 -1.0, %v938_v57  ;;  %v940_v60 = vpop.eup %939 }
 0x150   : > { %v627_v61 = vmul.f32 1.6732632, %v803_v58  ;;  %v804_v63 = vadd.f32 -1.0, %v940_v60 }
 0x151   : > { %v625_v62 = vmul.f32 1.6732632, %v801_v59  ;;  %v942_v4 = vpop.eup %941 }
 0x152   : > { %v635_v0 = vsel %vm595_vm9, %v587_v23, %v627_v61  ;;  %v628_v3 = vmul.f32 1.6732632, %v804_v63  ;;  %v802_v8 = vadd.f32 -1.0, %v942_v4 }
 0x153   : > { %v643_v1 = vmul.f32 1.050701, %v635_v0  ;;  %v633_v2 = vsel %vm593_vm10, %v585_v27, %v625_v62 }
 0x154   : > { %v641_v5 = vmul.f32 1.050701, %v633_v2  ;;  %v636_v7 = vsel %vm596_vm11, %v588_v31, %v628_v3  ;;  %v626_v11 = vmul.f32 1.6732632, %v802_v8 }
 0x155   : > { %v822_v6 = vpack.c.bf16 %v643_v1, %v643_v1  ;;  %v644_v10 = vmul.f32 1.050701, %v636_v7 }
 0x156   : > { %v820_v9 = vpack.c.bf16 %v641_v5, %v641_v5  ;;  %v634_v13 = vsel %vm594_vm12, %v586_v45, %v626_v11 }
 0x157   : > { %684 = vst.msk [vmem:[%s1193_s8 + $0x18] sm:$0xf] %vm677_vm5, %v822_v6  ;;  %v823_v12 = vpack.c.bf16 %v644_v10, %v644_v10  ;;  %v642_v14 = vmul.f32 1.050701, %v634_v13 }
 0x158   : > { %682 = vst.msk [vmem:[%s1193_s8 + $0x10] sm:$0xf] %vm677_vm5, %v820_v9 }
 0x159   : > { %685 = vst.msk [vmem:[%s1193_s8 + $0x1c] sm:$0xf] %vm677_vm5, %v823_v12  ;;  %v821_v15 = vpack.c.bf16 %v642_v14, %v642_v14 }
 0x15b   : > { %683 = vst.msk [vmem:[%s1193_s8 + $0x14] sm:$0xf] %vm677_vm5, %v821_v15 }
 0x15c PF: > { %s16_s15 = sadd.s32 1, %s1013_s15  }
 0x15d   : > { %p13_p5 = scmp.ge.s32.totalorder %s16_s15, 4  }
 0x15f   :  { %15 = sbr.rel (!%p13_p5) target bundleno = 2 (0x2), region = 77 }
 0x166   :  { %707 = vsyncpa [#allocation3], 1 }
 0x167   :  { %709 = vsyncpa [#allocation3 + $0x1], 1 }
 0x168   :  { %710 = vsyncpa [#allocation5], 1 }

// kernel: multitask_cnn_forward.6
= control target key start
LH: loop header
LB: loop body
LE: loop exit
PB: predicated region body
PF: predicated region fallthrough
CT: control target
= control target key end

     0   :  { %9 = vsyncpa [#allocation3], 0  ;;  %s1021_s0 = inlined_call_operand.vmem [shape: bf16[2,18,64], index: 0, kind: input, shape index: {}]   ;;  %s1022_s1 = inlined_call_operand.vmem [shape: bf16[3,64,32], index: 1, kind: input, shape index: {}]   ;;  %s1023_s2 = inlined_call_operand.hbm [shape: f32[1,32], index: 2, kind: input, shape index: {}]   ;;  %s1024_s3 = inlined_call_operand.hbm [shape: f32[1,32], index: 3, kind: input, shape index: {}]   ;;  %s1025_s4 = inlined_call_operand.vmem [shape: bf16[2,16,32], index: 4, kind: output, shape index: {}]  }
   0x1   :  { %10 = vsyncpa [#allocation5], 0  ;;  %s875_s15 = smov 0  }
   0x2 LB: > { %s881_s16 = sadd.s32 4294967295, %s844_s15   ;;  %p611_p0 = scmp.ge.s32.totalorder %s844_s15, 1  ;;  %s844_s15 = sphi %s875_s15, %s16_s15  }
   0x3   : > { %p136_p1 = scmp.lt.s32.totalorder %s844_s15, 3  ;;  %p1026_p2 = scmp.eq.s32.totalorder %s881_s16, 0 }
   0x4   : > { %s846_s18 = smov [#allocation2]   ;;  %s847_s20 = smov [#allocation4]  }
   0x5   : > { %p886_p3 = pnand %p611_p0, %p136_p1  ;;  %s152_s19 = sshll.u32 %s846_s18, 4  ;;  %s153_s19 = int_to_ptr.vmem [resolvable:$true] %s152_s19 }
   0x6   : > { %s163_s21 = sshll.u32 %s847_s20, 4  ;;  %s774_s25 = scalar_lea.hbm %s1023_s2, 16  ;;  %s898_s21 = int_to_ptr.vmem [resolvable:$true] %s163_s21 }
   0x7   : > { %s1028_s17 = scalar_select %p886_p3, 1, 0 }
   0x8   : > { %p732_p4 = pneg %p886_p3  ;;  %p775_p6 = scmp.ne.s32.totalorder %s1023_s2, %s774_s25 }
   0x9   : > { %p781_p10 = scmp.lt.u32.totalorder %s774_s25, %s1023_s2 }
   0xa   : > { %p894_p5 = pnand %p1026_p2, %p732_p4 }
   0xc   : > { %p776_p7 = pneg %p894_p5 }
   0xe   : > { %p777_p8 = pnand %p776_p7, %p775_p6 }
  0x10   : > { %p778_p9 = pneg %p777_p8 }
  0x12   : > { %p783_p11 = pnand %p781_p10, %p778_p9 }
  0x14   : > { %786 = shalt.err (!%p783_p11)
}
  0x15   : > { %s787_s30 = scalar_lea.vmem %s153_s19, 16  ;;  %s794_s5 = scalar_lea.vmem %s153_s19, 32 }
  0x16   : > { %p788_p12 = scmp.ne.s32.totalorder %s153_s19, %s787_s30  ;;  %p795_p1 = scmp.lt.s32.totalorder %s153_s19, %s153_s19 }
  0x17   : > { %p796_p4 = scmp.lt.s32.totalorder %s794_s5, %s787_s30 }
  0x18   : > { %p790_p13 = pnand %p788_p12, %p776_p7 }
  0x19   : > { %p797_p2 = por %p796_p4, %p795_p1 }
  0x1a   : > { %p791_p0 = pneg %p790_p13 }
  0x1c   : > { %p798_p3 = pnand %p797_p2, %p791_p0 }
  0x1e   : > { %801 = shalt.err (!%p798_p3)
}
  0x1f   : > { %735 = dma.hbm_to_vmem [thread:$0]  (!%p894_p5), %s1023_s2, 16, %s153_s19, [#allocation3]  }
  0x20   : > { %s802_s10 = scalar_lea.hbm %s1024_s3, 16 }
  0x21   : > { %p803_p6 = scmp.ne.s32.totalorder %s1024_s3, %s802_s10  ;;  %p809_p3 = scmp.lt.u32.totalorder %s802_s10, %s1024_s3 }
  0x23   : > { %p805_p8 = pnand %p803_p6, %p776_p7 }
  0x25   : > { %p806_p2 = pneg %p805_p8 }
  0x27   : > { %p811_p9 = pnand %p809_p3, %p806_p2 }
  0x29   : > { %814 = shalt.err (!%p811_p9)
}
  0x2a   : > { %s815_s18 = scalar_lea.vmem %s898_s21, 16  ;;  %s822_s19 = scalar_lea.vmem %s898_s21, 32 }
  0x2b   : > { %p816_p10 = scmp.ne.s32.totalorder %s898_s21, %s815_s18  ;;  %p823_p13 = scmp.lt.s32.totalorder %s898_s21, %s898_s21 }
  0x2c   : > { %p824_p0 = scmp.lt.s32.totalorder %s822_s19, %s815_s18 }
  0x2d   : > { %p818_p11 = pnand %p816_p10, %p776_p7 }
  0x2e   : > { %p825_p1 = por %p824_p0, %p823_p13 }
  0x2f   : > { %p819_p12 = pneg %p818_p11 }
  0x31   : > { %p826_p4 = pnand %p825_p1, %p819_p12 }
  0x33   : > { %829 = shalt.err (!%p826_p4)
}
  0x34   : > { %738 = dma.hbm_to_vmem [thread:$0]  (!%p894_p5), %s1024_s3, 16, %s898_s21, [#allocation5]  }
  0x35   : > { %p1030_p6 = scmp.ne.s32.totalorder %s1028_s17, 0 }
  0x36   : > { %p1031_p7 = scmp.eq.s32.totalorder (!%p1030_p6), %s881_s16, 0 }
  0x37   : > { %184 = sbr.rel (%p1030_p6) target bundleno = 343 (0x157), region = 36 }
  0x3e   : > { %835 = dma.done.wait (%p1031_p7), [#allocation3], 16   ;;  %p1032_p8 = pmov %p1031_p7 }
  0x3f   : > { %p1033_p2 = pmov %p1031_p7 }
  0x40   : > { %837 = vsyncadd (%p1032_p8), [#allocation3], 4294967280 }
  0x41   : > { %839 = dma.done.wait (%p1033_p2), [#allocation5], 16   ;;  %p1034_p3 = pmov %p1033_p2 }
  0x42   : > { %p214_p9 = scmp.lt.s32.totalorder %s881_s16, 1  ;;  %v848_v0 = vmov 0.0   ;;  %vm849_vm0 = vmmov 0   ;;  %v755_v1 = vld [vmem:[%s1022_s1] sm:$0xff]   ;;  %v756_v2 = vld [vmem:[%s1022_s1 + $0x8] sm:$0xff]   ;;  %v757_v6 = vld [vmem:[%s1022_s1 + $0x10] sm:$0xff]  }
  0x43   : > { %841 = vsyncadd (%p1034_p3), [#allocation5], 4294967280  ;;  %693 = vmatprep.subr.bf16.mxu0 %v848_v0  ;;  %681 = vmatprep.subr.bf16.mxu1 %v848_v0  ;;  %v759_v3 = vld [vmem:[%s1022_s1 + $0x20] sm:$0xff]   ;;  %v763_v7 = vld [vmem:[%s1022_s1 + $0x28] sm:$0xff]   ;;  %vm290_vm1 = vcmask 523264   ;;  %vm415_vm3 = vcmask 1046528  }
  0x44   : > { %701 = vmatprep.mubr.msk.bf16.mxu0 %vm849_vm0, %v848_v0  ;;  %s1036_s16 = smov (!%p214_p9, %s881_s16), 1  ;;  %689 = vmatprep.mubr.msk.bf16.mxu1 %vm849_vm0, %v848_v0  ;;  %v758_v8 = vld [vmem:[%s1022_s1 + $0x18] sm:$0xff]   ;;  %v765_v10 = vld [vmem:[%s1022_s1 + $0x30] sm:$0xff]   ;;  %v762_v15 = vld [vmem:[%s1022_s1 + $0x40] sm:$0xff]   ;;  %vm253_vm2 = vsmask.f32 7424 }
  0x45   : > { %s723_s17 = smul.u32 12, %s1036_s16  ;;  %694 = vmatpush3.bf16.msra.mxu0 %v755_v1  ;;  %682 = vmatpush3.bf16.msra.mxu1 %v759_v3  ;;  %v767_v16 = vld [vmem:[%s1022_s1 + $0x38] sm:$0xff]   ;;  %v764_v20 = vld [vmem:[%s1022_s1 + $0x48] sm:$0xff]   ;;  %v766_v24 = vld [vmem:[%s1022_s1 + $0x50] sm:$0xff]   ;;  %s663_s25 = sshll.u32 %s1036_s16, 3  ;;  %vm529_vm6 = vcmask 257024  }
  0x46   : > { %695 = vmatprep.subr.bf16.mxu0 %v848_v0  ;;  %683 = vmatprep.subr.bf16.mxu1 %v848_v0  ;;  %v769_v26 = vld [vmem:[%s1022_s1 + $0x58] sm:$0xff]   ;;  %v655_v34 = vld [vmem:[#allocation2] ss:$0 sm:$0xff]  ;;  %v656_v37 = vld [vmem:[#allocation4] ss:$0 sm:$0xff] }
  0x47   : > { %s974_s28 = scalar_lea.vmem %s1021_s0, %s723_s17 }
  0x48   : > { %v225_v4 = vld [vmem:[%s974_s28] sm:$0xf]  ;;  %v226_v5 = vld [vmem:[%s974_s28 + $0x4] sm:$0xf] }
  0x49   : > { %696 = vmatpush3.bf16.msra.mxu0 %v756_v2  ;;  %v629_v9 = vcombine.low %v225_v4, %v226_v5  ;;  %684 = vmatpush3.bf16.msra.mxu1 %v763_v7  ;;  %v768_v13 = vld [vmem:[%s974_s28 + $0x8] ss:$0 sps:$4 sm:$0x11]   ;;  %v402_v22 = vld [vmem:[%s974_s28] sm:$0xe]  ;;  %s223_s28 = scalar_lea.vmem %s1025_s4, %s663_s25 }
  0x4a   : > { %697 = vmatprep.subr.bf16.mxu0 %v848_v0  ;;  %685 = vmatprep.subr.bf16.mxu1 %v848_v0  ;;  %v262_v18 = vshll.u32 %v768_v13, 16  ;;  %v649_v23 = vcombine.low %v402_v22, %v226_v5  ;;  %v417_v27 = vrot.slane %v768_v13, 1 }
  0x4b   : > { %v255_v11 = vshrl.u32 %v629_v9, 16  ;;  %v257_v12 = vshll.u32 %v629_v9, 16 }
  0x4c   : > { %v264_v19 = vrot.slane %v262_v18, 1  ;;  %v416_v25 = vrot.slane %v649_v23, 1 }
  0x4d   : > { %698 = vmatpush3.bf16.msra.mxu0 %v757_v6  ;;  %v259_v14 = vrot.slane %v257_v12, 1  ;;  %686 = vmatpush3.bf16.msra.mxu1 %v765_v10 }
  0x4e   : > { %699 = vmatprep.subr.bf16.mxu0 %v848_v0  ;;  %687 = vmatprep.subr.bf16.mxu1 %v848_v0  ;;  %v418_v28 = vsel %vm415_vm3, %v416_v25, %v417_v27 }
  0x4f   : > { %v260_v17 = vor.u32 %v259_v14, %v255_v11 }
  0x51   : > { %700 = vmatpush3.bf16.msra.mxu0 %v758_v8  ;;  %688 = vmatpush3.bf16.msra.mxu1 %v767_v16  ;;  %v265_v21 = vsel %vm253_vm2, %v260_v17, %v264_v19 }
  0x52   : > { %705 = vmatprep.subr.bf16.mxu0 %v848_v0 }
  0x54   : > { %702 = vmatmul.mubr.msk.bf16.vlgmr.msra.gmra.mrb[0].mxu0 %vm290_vm1, %v629_v9  ;;  %690 = vmatmul.mubr.msk.bf16.vlgmr.msra.gmra.mrb[0].mxu1 %vm290_vm1, %v265_v21 }
  0x55   : > { %706 = vmatpush3.bf16.msra.mxu0 %v762_v15  ;;  %713 = vmatprep.mubr.msk.bf16.mxu0 %vm849_vm0, %v848_v0 }
  0x56   : > { %707 = vmatprep.subr.bf16.mxu0 %v848_v0 }
  0x59   : > { %708 = vmatpush3.bf16.msra.mxu0 %v764_v20 }
  0x5a   : > { %709 = vmatprep.subr.bf16.mxu0 %v848_v0 }
  0x5d   : > { %710 = vmatpush3.bf16.msra.mxu0 %v766_v24 }
  0x5e   : > { %711 = vmatprep.subr.bf16.mxu0 %v848_v0 }
  0x61   : > { %712 = vmatpush3.bf16.msra.mxu0 %v769_v26 }
  0x64   : > { %714 = vmatmul.mubr.msk.bf16.vlgmr.msra.gmra.mrb[0].mxu0 %vm290_vm1, %v418_v28 }
 0x127   : > { %v328_v29 = vpop.f32.mrb[0].mxu1 }
 0x128   : > { %v691_v30 = vpop.f32.mrb[1].mxu1 }
 0x129   : > { %v331_v31 = vpop.f32.mrb[2].mxu1 }
 0x12a   : > { %v692_v32 = vpop.f32.mrb[3].mxu1 }
 0x137   : > { %v480_v33 = vpop.f32.mrb[0].mxu0 }
 0x138   : > { %v717_v35 = vadd.f32 %v480_v33, %v328_v29  ;;  %v715_v36 = vpop.f32.mrb[1].mxu0 }
 0x139   : > { %v483_v38 = vpop.f32.mrb[2].mxu0 }
 0x13a   : > { %v496_v39 = vmul.f32 %v717_v35, %v655_v34  ;;  %v718_v40 = vadd.f32 %v483_v38, %v331_v31  ;;  %v716_v41 = vpop.f32.mrb[3].mxu0 }
 0x13c   : > { %v505_v42 = vadd.f32 %v656_v37, %v496_v39  ;;  %v497_v43 = vmul.f32 %v718_v40, %v655_v34 }
 0x13e   : > { %v509_v44 = vmul.f32 1.442695, %v505_v42  ;;  %v506_v45 = vadd.f32 %v656_v37, %v497_v43  ;;  %vm507_vm4 = vcmp.gt.f32.partialorder %v505_v42, 0.0 }
 0x140   : > { %770 = vpow2.f32 %v509_v44  ;;  %v511_v46 = vmul.f32 1.442695, %v506_v45  ;;  %vm508_vm5 = vcmp.gt.f32.partialorder %v506_v45, 0.0 }
 0x142   : > { %772 = vpow2.f32 %v511_v46 }
 0x14a   : > { %v771_v47 = vpop.eup %770 }
 0x14b   : > { %v657_v48 = vadd.f32 -1.0, %v771_v47 }
 0x14c   : > { %v773_v49 = vpop.eup %772 }
 0x14d   : > { %v515_v50 = vmul.f32 1.6732632, %v657_v48  ;;  %v658_v51 = vadd.f32 -1.0, %v773_v49 }
 0x14f   : > { %v517_v52 = vsel %vm507_vm4, %v505_v42, %v515_v50  ;;  %v516_v53 = vmul.f32 1.6732632, %v658_v51 }
 0x150   : > { %v519_v54 = vmul.f32 1.050701, %v517_v52 }
 0x151   : > { %v518_v55 = vsel %vm508_vm5, %v506_v45, %v516_v53 }
 0x152   : > { %v664_v56 = vpack.c.bf16 %v519_v54, %v519_v54  ;;  %v520_v57 = vmul.f32 1.050701, %v518_v55 }
 0x154   : > { %530 = vst.msk [vmem:[%s223_s28] sm:$0xf] %vm529_vm6, %v664_v56  ;;  %v665_v58 = vpack.c.bf16 %v520_v57, %v520_v57 }
 0x156   : > { %531 = vst.msk [vmem:[%s223_s28 + $0x4] sm:$0xf] %vm529_vm6, %v665_v58 }
 0x157 PF: > { %s16_s15 = sadd.s32 1, %s844_s15  }
 0x158   : > { %p13_p5 = scmp.ge.s32.totalorder %s16_s15, 4  }
 0x15a   :  { %15 = sbr.rel (!%p13_p5) target bundleno = 2 (0x2), region = 77 }
 0x161   :  { %553 = vsyncpa [#allocation3], 1 }
 0x162   :  { %555 = vsyncpa [#allocation3 + $0x1], 1 }
 0x163   :  { %556 = vsyncpa [#allocation5], 1 }

// kernel: multitask_cnn_forward.7
= control target key start
LH: loop header
LB: loop body
LE: loop exit
PB: predicated region body
PF: predicated region fallthrough
CT: control target
= control target key end

     0   :  { %9 = vsyncpa [#allocation3], 0  ;;  %s1186_s0 = inlined_call_operand.vmem [shape: bf16[2,6,128], index: 0, kind: input, shape index: {}]   ;;  %s1187_s1 = inlined_call_operand.vmem [shape: bf16[3,128,64], index: 1, kind: input, shape index: {}]   ;;  %s1188_s2 = inlined_call_operand.hbm [shape: f32[1,64], index: 2, kind: input, shape index: {}]   ;;  %s1189_s3 = inlined_call_operand.hbm [shape: f32[1,64], index: 3, kind: input, shape index: {}]   ;;  %s1190_s4 = inlined_call_operand.vmem [shape: bf16[2,4,64], index: 4, kind: output, shape index: {}]  }
   0x1   :  { %10 = vsyncpa [#allocation5], 0  ;;  %s981_s15 = smov 0  }
   0x2 LB: > { %s987_s16 = sadd.s32 4294967295, %s950_s15   ;;  %p657_p0 = scmp.ge.s32.totalorder %s950_s15, 1  ;;  %s950_s15 = sphi %s981_s15, %s16_s15  }
   0x3   : > { %p136_p1 = scmp.lt.s32.totalorder %s950_s15, 3  ;;  %p1191_p2 = scmp.eq.s32.totalorder %s987_s16, 0 }
   0x4   : > { %s952_s18 = smov [#allocation2]   ;;  %s953_s20 = smov [#allocation4]  }
   0x5   : > { %p992_p3 = pnand %p657_p0, %p136_p1  ;;  %s152_s19 = sshll.u32 %s952_s18, 4  ;;  %s153_s19 = int_to_ptr.vmem [resolvable:$true] %s152_s19 }
   0x6   : > { %s163_s21 = sshll.u32 %s953_s20, 4  ;;  %s880_s25 = scalar_lea.hbm %s1188_s2, 16  ;;  %s1004_s21 = int_to_ptr.vmem [resolvable:$true] %s163_s21 }
   0x7   : > { %s1193_s17 = scalar_select %p992_p3, 1, 0 }
   0x8   : > { %p829_p4 = pneg %p992_p3  ;;  %p881_p6 = scmp.ne.s32.totalorder %s1188_s2, %s880_s25 }
   0x9   : > { %p887_p10 = scmp.lt.u32.totalorder %s880_s25, %s1188_s2 }
   0xa   : > { %p1000_p5 = pnand %p1191_p2, %p829_p4 }
   0xc   : > { %p882_p7 = pneg %p1000_p5 }
   0xe   : > { %p883_p8 = pnand %p882_p7, %p881_p6 }
  0x10   : > { %p884_p9 = pneg %p883_p8 }
  0x12   : > { %p889_p11 = pnand %p887_p10, %p884_p9 }
  0x14   : > { %892 = shalt.err (!%p889_p11)
}
  0x15   : > { %s893_s30 = scalar_lea.vmem %s153_s19, 16  ;;  %s900_s5 = scalar_lea.vmem %s153_s19, 32 }
  0x16   : > { %p894_p12 = scmp.ne.s32.totalorder %s153_s19, %s893_s30  ;;  %p901_p1 = scmp.lt.s32.totalorder %s153_s19, %s153_s19 }
  0x17   : > { %p902_p4 = scmp.lt.s32.totalorder %s900_s5, %s893_s30 }
  0x18   : > { %p896_p13 = pnand %p894_p12, %p882_p7 }
  0x19   : > { %p903_p2 = por %p902_p4, %p901_p1 }
  0x1a   : > { %p897_p0 = pneg %p896_p13 }
  0x1c   : > { %p904_p3 = pnand %p903_p2, %p897_p0 }
  0x1e   : > { %907 = shalt.err (!%p904_p3)
}
  0x1f   : > { %832 = dma.hbm_to_vmem [thread:$0]  (!%p1000_p5), %s1188_s2, 16, %s153_s19, [#allocation3]  }
  0x20   : > { %s908_s10 = scalar_lea.hbm %s1189_s3, 16 }
  0x21   : > { %p909_p6 = scmp.ne.s32.totalorder %s1189_s3, %s908_s10  ;;  %p915_p3 = scmp.lt.u32.totalorder %s908_s10, %s1189_s3 }
  0x23   : > { %p911_p8 = pnand %p909_p6, %p882_p7 }
  0x25   : > { %p912_p2 = pneg %p911_p8 }
  0x27   : > { %p917_p9 = pnand %p915_p3, %p912_p2 }
  0x29   : > { %920 = shalt.err (!%p917_p9)
}
  0x2a   : > { %s921_s18 = scalar_lea.vmem %s1004_s21, 16  ;;  %s928_s19 = scalar_lea.vmem %s1004_s21, 32 }
  0x2b   : > { %p922_p10 = scmp.ne.s32.totalorder %s1004_s21, %s921_s18  ;;  %p929_p13 = scmp.lt.s32.totalorder %s1004_s21, %s1004_s21 }
  0x2c   : > { %p930_p0 = scmp.lt.s32.totalorder %s928_s19, %s921_s18 }
  0x2d   : > { %p924_p11 = pnand %p922_p10, %p882_p7 }
  0x2e   : > { %p931_p1 = por %p930_p0, %p929_p13 }
  0x2f   : > { %p925_p12 = pneg %p924_p11 }
  0x31   : > { %p932_p4 = pnand %p931_p1, %p925_p12 }
  0x33   : > { %935 = shalt.err (!%p932_p4)
}
  0x34   : > { %835 = dma.hbm_to_vmem [thread:$0]  (!%p1000_p5), %s1189_s3, 16, %s1004_s21, [#allocation5]  }
  0x35   : > { %p1195_p6 = scmp.ne.s32.totalorder %s1193_s17, 0 }
  0x36   : > { %p1196_p7 = scmp.eq.s32.totalorder (!%p1195_p6), %s987_s16, 0 }
  0x37   : > { %183 = sbr.rel (%p1195_p6) target bundleno = 373 (0x175), region = 36 }
  0x3e   : > { %941 = dma.done.wait (%p1196_p7), [#allocation3], 16   ;;  %p1197_p8 = pmov %p1196_p7 }
  0x3f   : > { %p1198_p2 = pmov %p1196_p7 }
  0x40   : > { %943 = vsyncadd (%p1197_p8), [#allocation3], 4294967280 }
  0x41   : > { %945 = dma.done.wait (%p1198_p2), [#allocation5], 16   ;;  %p1199_p3 = pmov %p1198_p2 }
  0x42   : > { %v954_v0 = vmov 0.0   ;;  %vm955_vm0 = vmmov 0   ;;  %p211_p5 = scmp.lt.s32.totalorder %s987_s16, 1  ;;  %v852_v1 = vld [vmem:[%s1187_s1] sm:$0xff]   ;;  %v853_v2 = vld [vmem:[%s1187_s1 + $0x8] sm:$0xff]   ;;  %v854_v3 = vld [vmem:[%s1187_s1 + $0x10] sm:$0xff]  }
  0x43   : > { %947 = vsyncadd (%p1199_p3), [#allocation5], 4294967280  ;;  %776 = vmatprep.subr.bf16.mxu0 %v954_v0  ;;  %756 = vmatprep.subr.bf16.mxu1 %v954_v0  ;;  %v860_v4 = vld [vmem:[%s1187_s1 + $0x40] sm:$0xff]   ;;  %v855_v5 = vld [vmem:[%s1187_s1 + $0x18] sm:$0xff]   ;;  %vm578_vm2 = vcmask 517120  }
  0x44   : > { %792 = vmatprep.mubr.msk.bf16.mxu0 %vm955_vm0, %v954_v0  ;;  %772 = vmatprep.mubr.msk.bf16.mxu1 %vm955_vm0, %v954_v0  ;;  %s1201_s16 = smov (!%p211_p5, %s987_s16), 1  ;;  %v864_v6 = vld [vmem:[%s1187_s1 + $0x48] sm:$0xff]   ;;  %v856_v7 = vld [vmem:[%s1187_s1 + $0x20] sm:$0xff]   ;;  %v866_v8 = vld [vmem:[%s1187_s1 + $0x50] sm:$0xff]  }
  0x45   : > { %777 = vmatpush3.bf16.msra.mxu0 %v852_v1  ;;  %s664_s25 = sshll.u32 %s1201_s16, 2  ;;  %757 = vmatpush3.bf16.msra.mxu1 %v860_v4  ;;  %v857_v9 = vld [vmem:[%s1187_s1 + $0x28] sm:$0xff]   ;;  %v868_v10 = vld [vmem:[%s1187_s1 + $0x58] sm:$0xff]   ;;  %v858_v11 = vld [vmem:[%s1187_s1 + $0x30] sm:$0xff]  }
  0x46   : > { %778 = vmatprep.subr.bf16.mxu0 %v954_v0  ;;  %s1092_s6 = scalar_lea.vmem %s1186_s0, %s664_s25  ;;  %758 = vmatprep.subr.bf16.mxu1 %v954_v0  ;;  %v870_v12 = vld [vmem:[%s1187_s1 + $0x60] sm:$0xff]   ;;  %v859_v14 = vld [vmem:[%s1187_s1 + $0x38] sm:$0xff]   ;;  %v872_v15 = vld [vmem:[%s1187_s1 + $0x68] sm:$0xff]  }
  0x47   : > { %v861_v13 = vld [vmem:[%s1092_s6] ss:$0 sps:$4 sm:$0x77]   ;;  %v874_v19 = vld [vmem:[%s1187_s1 + $0x70] sm:$0xff]   ;;  %v865_v22 = vld [vmem:[%s1187_s1 + $0x88] sm:$0xff]  }
  0x48   : > { %v261_v16 = vshll.u32 %v861_v13, 16  ;;  %v220_v17 = vld [vmem:[%s1092_s6] sm:$0x3]  ;;  %v259_v20 = vshrl.u32 %v861_v13, 16  ;;  %v876_v23 = vld [vmem:[%s1187_s1 + $0x78] sm:$0xff]   ;;  %v867_v25 = vld [vmem:[%s1187_s1 + $0x90] sm:$0xff]  }
  0x49   : > { %779 = vmatpush3.bf16.msra.mxu0 %v853_v2  ;;  %759 = vmatpush3.bf16.msra.mxu1 %v864_v6  ;;  %v863_v18 = vld [vmem:[%s1187_s1 + $0x80] sm:$0xff]   ;;  %v869_v26 = vld [vmem:[%s1187_s1 + $0x98] sm:$0xff]   ;;  %v873_v28 = vld [vmem:[%s1187_s1 + $0xa8] sm:$0xff]  }
  0x4a   : > { %780 = vmatprep.subr.bf16.mxu0 %v954_v0  ;;  %760 = vmatprep.subr.bf16.mxu1 %v954_v0  ;;  %v263_v21 = vrot.slane %v261_v16, 1  ;;  %v871_v27 = vld [vmem:[%s1187_s1 + $0xa0] sm:$0xff]   ;;  %v875_v29 = vld [vmem:[%s1187_s1 + $0xb0] sm:$0xff]   ;;  %v877_v31 = vld [vmem:[%s1187_s1 + $0xb8] sm:$0xff]  }
  0x4b   : > { %v862_v30 = vld [vmem:[%s1092_s6] ss:$0 sps:$4 sm:$0x66]   ;;  %v725_v41 = vld [vmem:[#allocation4] ss:$0 sm:$0xff]  ;;  %s665_s6 = sshll.u32 %s1201_s16, 1 }
  0x4c   : > { %v264_v24 = vor.u32 %v263_v21, %v259_v20  ;;  %v463_v32 = vrot.slane %v862_v30, 1  ;;  %v724_v38 = vld [vmem:[#allocation2] ss:$0 sm:$0xff]  ;;  %s218_s28 = scalar_lea.vmem %s1190_s4, %s665_s6 }
  0x4d   : > { %781 = vmatpush3.bf16.msra.mxu0 %v854_v3  ;;  %761 = vmatpush3.bf16.msra.mxu1 %v866_v8 }
  0x4e   : > { %782 = vmatprep.subr.bf16.mxu0 %v954_v0  ;;  %762 = vmatprep.subr.bf16.mxu1 %v954_v0 }
  0x51   : > { %783 = vmatpush3.bf16.msra.mxu0 %v855_v5  ;;  %763 = vmatpush3.bf16.msra.mxu1 %v868_v10 }
  0x52   : > { %784 = vmatprep.subr.bf16.mxu0 %v954_v0  ;;  %764 = vmatprep.subr.bf16.mxu1 %v954_v0 }
  0x55   : > { %785 = vmatpush3.bf16.msra.mxu0 %v856_v7  ;;  %765 = vmatpush3.bf16.msra.mxu1 %v870_v12 }
  0x56   : > { %786 = vmatprep.subr.bf16.mxu0 %v954_v0  ;;  %766 = vmatprep.subr.bf16.mxu1 %v954_v0 }
  0x59   : > { %787 = vmatpush3.bf16.msra.mxu0 %v857_v9  ;;  %767 = vmatpush3.bf16.msra.mxu1 %v872_v15 }
  0x5a   : > { %788 = vmatprep.subr.bf16.mxu0 %v954_v0  ;;  %768 = vmatprep.subr.bf16.mxu1 %v954_v0 }
  0x5d   : > { %789 = vmatpush3.bf16.msra.mxu0 %v858_v11  ;;  %769 = vmatpush3.bf16.msra.mxu1 %v874_v19 }
  0x5e   : > { %790 = vmatprep.subr.bf16.mxu0 %v954_v0  ;;  %770 = vmatprep.subr.bf16.mxu1 %v954_v0 }
  0x61   : > { %791 = vmatpush3.bf16.msra.mxu0 %v859_v14  ;;  %771 = vmatpush3.bf16.msra.mxu1 %v876_v23 }
  0x62   : > { %796 = vmatprep.subr.bf16.mxu0 %v954_v0 }
  0x64   : > { %793 = vmatmul.mubr.bf16.vlgmr.msra.gmra.mrb[0].mxu0 %v220_v17  ;;  %773 = vmatmul.mubr.bf16.vlgmr.msra.gmra.mrb[0].mxu1 %v264_v24 }
  0x65   : > { %797 = vmatpush3.bf16.msra.mxu0 %v863_v18  ;;  %812 = vmatprep.mubr.msk.bf16.mxu0 %vm955_vm0, %v954_v0 }
  0x66   : > { %798 = vmatprep.subr.bf16.mxu0 %v954_v0 }
  0x69   : > { %799 = vmatpush3.bf16.msra.mxu0 %v865_v22 }
  0x6a   : > { %800 = vmatprep.subr.bf16.mxu0 %v954_v0 }
  0x6d   : > { %801 = vmatpush3.bf16.msra.mxu0 %v867_v25 }
  0x6e   : > { %802 = vmatprep.subr.bf16.mxu0 %v954_v0 }
  0x71   : > { %803 = vmatpush3.bf16.msra.mxu0 %v869_v26 }
  0x72   : > { %804 = vmatprep.subr.bf16.mxu0 %v954_v0 }
  0x75   : > { %805 = vmatpush3.bf16.msra.mxu0 %v871_v27 }
  0x76   : > { %806 = vmatprep.subr.bf16.mxu0 %v954_v0 }
  0x79   : > { %807 = vmatpush3.bf16.msra.mxu0 %v873_v28 }
  0x7a   : > { %808 = vmatprep.subr.bf16.mxu0 %v954_v0 }
  0x7d   : > { %809 = vmatpush3.bf16.msra.mxu0 %v875_v29 }
  0x7e   : > { %810 = vmatprep.subr.bf16.mxu0 %v954_v0 }
  0x81   : > { %811 = vmatpush3.bf16.msra.mxu0 %v877_v31 }
  0x84   : > { %813 = vmatmul.mubr.bf16.vlgmr.msra.gmra.mrb[0].mxu0 %v463_v32 }
 0x137   : > { %v348_v33 = vpop.f32.mrb[0].mxu1 }
 0x138   : > { %v774_v34 = vpop.f32.mrb[1].mxu1 }
 0x139   : > { %v351_v35 = vpop.f32.mrb[2].mxu1 }
 0x13a   : > { %v775_v36 = vpop.f32.mrb[3].mxu1 }
 0x157   : > { %v547_v37 = vpop.f32.mrb[0].mxu0 }
 0x158   : > { %v816_v39 = vadd.f32 %v547_v37, %v348_v33  ;;  %v814_v40 = vpop.f32.mrb[1].mxu0 }
 0x159   : > { %v550_v42 = vpop.f32.mrb[2].mxu0 }
 0x15a   : > { %v561_v43 = vmul.f32 %v816_v39, %v724_v38  ;;  %v815_v44 = vpop.f32.mrb[3].mxu0 }
 0x15c   : > { %v569_v45 = vadd.f32 %v725_v41, %v561_v43 }
 0x15e   : > { %v571_v46 = vmul.f32 1.442695, %v569_v45  ;;  %vm570_vm1 = vcmp.gt.f32.partialorder %v569_v45, 0.0 }
 0x160   : > { %878 = vpow2.f32 %v571_v46 }
 0x16a   : > { %v879_v47 = vpop.eup %878 }
 0x16b   : > { %v726_v48 = vadd.f32 -1.0, %v879_v47 }
 0x16d   : > { %v574_v49 = vmul.f32 1.6732632, %v726_v48 }
 0x16f   : > { %v575_v50 = vsel %vm570_vm1, %v569_v45, %v574_v49 }
 0x170   : > { %v576_v51 = vmul.f32 1.050701, %v575_v50 }
 0x172   : > { %v577_v52 = vpack.c.bf16 %v576_v51, %v576_v51 }
 0x174   : > { %579 = vst.msk [vmem:[%s218_s28] sm:$0x3] %vm578_vm2, %v577_v52 }
 0x175 PF: > { %s16_s15 = sadd.s32 1, %s950_s15  }
 0x176   : > { %p13_p9 = scmp.ge.s32.totalorder %s16_s15, 4  }
 0x178   :  { %15 = sbr.rel (!%p13_p9) target bundleno = 2 (0x2), region = 77 }
 0x17f   :  { %599 = vsyncpa [#allocation3], 1 }
 0x180   :  { %601 = vsyncpa [#allocation3 + $0x1], 1 }
 0x181   :  { %602 = vsyncpa [#allocation5], 1 }

// kernel: multitask_cnn_forward.9
= control target key start
LH: loop header
LB: loop body
LE: loop exit
PB: predicated region body
PF: predicated region fallthrough
CT: control target
= control target key end

     0   :  { %s797_s12 = smov 0   ;;  %s1155_s0 = inlined_call_operand.vmem [shape: f32[2,256], index: 0, kind: input, shape index: {}]   ;;  %s1156_s1 = inlined_call_operand.vmem [shape: f32[4,2,256], index: 1, kind: input, shape index: {}]   ;;  %s1157_s2 = inlined_call_operand.vmem [shape: f32[256,256], index: 2, kind: input, shape index: {}]   ;;  %s1158_s3 = inlined_call_operand.vmem [shape: f32[4,2,256], index: 3, kind: output, shape index: {}]  }
   0x1 LB: > { %s549_s13 = sadd.s32 4294967295, %s775_s12   ;;  %p553_p0 = scmp.ge.s32.totalorder %s775_s12, 1  ;;  %s775_s12 = sphi %s797_s12, %s13_s12  }
   0x2   : > { %p137_p1 = scmp.lt.s32.totalorder %s775_s12, 5 }
   0x4   : > { %p138_p2 = pnand %p553_p0, %p137_p1 }
   0x5   : > { %v172_v0 = vld [vmem:[%s1157_s2 + $0x8] sm:$0xff] (!%p138_p2)  ;;  %v174_v1 = vld [vmem:[%s1157_s2 + $0x18] sm:$0xff] (!%p138_p2)  ;;  %v171_v2 = vld [vmem:[%s1157_s2] sm:$0xff] (!%p138_p2)  ;;  %p161_p3 = scmp.lt.s32.totalorder (!%p138_p2), %s549_s13, 3 }
   0x6   : > { %141 = sbr.rel (%p138_p2) target bundleno = 521 (0x209), region = 32  ;;  %v814_v3 = vpack.c.bf16 (!%p138_p2), %v174_v1, %v172_v0  ;;  %v173_v4 = vld [vmem:[%s1157_s2 + $0x10] sm:$0xff] (!%p138_p2)  ;;  %v176_v5 = vld [vmem:[%s1157_s2 + $0x28] sm:$0xff] (!%p138_p2)  ;;  %v178_v6 = vld [vmem:[%s1157_s2 + $0x38] sm:$0xff] (!%p138_p2) }
   0x7   : > { %v825_v7 = vpack.c.bf16 (!%p138_p2), %v173_v4, %v171_v2  ;;  %v827_v8 = vpack.c.bf16 (!%p138_p2), %v178_v6, %v176_v5  ;;  %v175_v9 = vld [vmem:[%s1157_s2 + $0x20] sm:$0xff] (!%p138_p2)  ;;  %v177_v10 = vld [vmem:[%s1157_s2 + $0x30] sm:$0xff] (!%p138_p2)  ;;  %v180_v11 = vld [vmem:[%s1157_s2 + $0x48] sm:$0xff] (!%p138_p2) }
   0x8   : > { %566 = vmatprep.subr.bf16.mxu0 (!%p138_p2), %v814_v3  ;;  %630 = vmatprep.subr.bf16.mxu1 (!%p138_p2), %v814_v3  ;;  %v182_v12 = vld [vmem:[%s1157_s2 + $0x58] sm:$0xff] (!%p138_p2)  ;;  %v845_v13 = vpack.c.bf16 (!%p138_p2), %v177_v10, %v175_v9  ;;  %v179_v15 = vld [vmem:[%s1157_s2 + $0x40] sm:$0xff] (!%p138_p2)  ;;  %v181_v16 = vld [vmem:[%s1157_s2 + $0x50] sm:$0xff] (!%p138_p2) }
   0x9   : > { %568 = vmatpush1.bf16.msra.mxu0 (!%p138_p2), %v825_v7  ;;  %632 = vmatpush1.bf16.msra.mxu1 (!%p138_p2), %v825_v7  ;;  %v849_v14 = vpack.c.bf16 (!%p138_p2), %v182_v12, %v180_v11  ;;  %v184_v17 = vld [vmem:[%s1157_s2 + $0x68] sm:$0xff] (!%p138_p2)  ;;  %v186_v18 = vld [vmem:[%s1157_s2 + $0x78] sm:$0xff] (!%p138_p2)  ;;  %v865_v19 = vpack.c.bf16 (!%p138_p2), %v181_v16, %v179_v15  ;;  %v183_v21 = vld [vmem:[%s1157_s2 + $0x60] sm:$0xff] (!%p138_p2) }
   0xa   : > { %570 = vmatprep.subr.bf16.mxu0 (!%p138_p2), %v827_v8  ;;  %634 = vmatprep.subr.bf16.mxu1 (!%p138_p2), %v827_v8  ;;  %v871_v20 = vpack.c.bf16 (!%p138_p2), %v186_v18, %v184_v17  ;;  %v185_v22 = vld [vmem:[%s1157_s2 + $0x70] sm:$0xff] (!%p138_p2)  ;;  %v188_v23 = vld [vmem:[%s1157_s2 + $0x88] sm:$0xff] (!%p138_p2)  ;;  %v190_v24 = vld [vmem:[%s1157_s2 + $0x98] sm:$0xff] (!%p138_p2) }
   0xb   : > { %v887_v25 = vpack.c.bf16 (!%p138_p2), %v185_v22, %v183_v21  ;;  %v895_v26 = vpack.c.bf16 (!%p138_p2), %v190_v24, %v188_v23  ;;  %v187_v27 = vld [vmem:[%s1157_s2 + $0x80] sm:$0xff] (!%p138_p2)  ;;  %v189_v28 = vld [vmem:[%s1157_s2 + $0x90] sm:$0xff] (!%p138_p2)  ;;  %v192_v29 = vld [vmem:[%s1157_s2 + $0xa8] sm:$0xff] (!%p138_p2) }
   0xc   : > { %v194_v30 = vld [vmem:[%s1157_s2 + $0xb8] sm:$0xff] (!%p138_p2)  ;;  %v911_v31 = vpack.c.bf16 (!%p138_p2), %v189_v28, %v187_v27  ;;  %v191_v33 = vld [vmem:[%s1157_s2 + $0xa0] sm:$0xff] (!%p138_p2)  ;;  %v193_v34 = vld [vmem:[%s1157_s2 + $0xb0] sm:$0xff] (!%p138_p2) }
   0xd   : > { %572 = vmatpush1.bf16.msra.mxu0 %v845_v13  ;;  %636 = vmatpush1.bf16.msra.mxu1 %v845_v13  ;;  %s1160_s13 = smov (!%p161_p3, %s549_s13), 3  ;;  %v916_v32 = vpack.c.bf16 %v194_v30, %v192_v29  ;;  %v196_v35 = vld [vmem:[%s1157_s2 + $0xc8] sm:$0xff]  ;;  %v198_v36 = vld [vmem:[%s1157_s2 + $0xd8] sm:$0xff]  ;;  %v937_v37 = vpack.c.bf16 %v193_v34, %v191_v33  ;;  %v195_v39 = vld [vmem:[%s1157_s2 + $0xc0] sm:$0xff] }
   0xe   : > { %574 = vmatprep.subr.bf16.mxu0 %v849_v14  ;;  %638 = vmatprep.subr.bf16.mxu1 %v849_v14  ;;  %s563_s6 = sshll.u32 %s1160_s13, 2  ;;  %v941_v38 = vpack.c.bf16 %v198_v36, %v196_v35  ;;  %v197_v40 = vld [vmem:[%s1157_s2 + $0xd0] sm:$0xff]  ;;  %v952_v41 = vld.sshfl [vmem:[%s1155_s0] sm:$0x33 pattern:$0x76325410] }
   0xf   : > { %s165_s19 = scalar_lea.vmem %s1156_s1, %s563_s6  ;;  %v200_v42 = vld [vmem:[%s1157_s2 + $0xe8] sm:$0xff]  ;;  %v202_v43 = vld [vmem:[%s1157_s2 + $0xf8] sm:$0xff]  ;;  %v244_v44 = vcombine.high %v952_v41, %v952_v41  ;;  %v968_v47 = vpack.c.bf16 %v197_v40, %v195_v39  ;;  %v199_v49 = vld [vmem:[%s1157_s2 + $0xe0] sm:$0xff]  ;;  %s170_s28 = scalar_lea.vmem %s1158_s3, %s563_s6 }
  0x10   : > { %v962_v45 = vld.sshfl [vmem:[%s165_s19] sm:$0x33 pattern:$0x76325410]  ;;  %v972_v48 = vpack.c.bf16 %v202_v43, %v200_v42  ;;  %v201_v50 = vld [vmem:[%s1157_s2 + $0xf0] sm:$0xff]  ;;  %v204_v51 = vld [vmem:[%s1157_s2 + $0x108] sm:$0xff] }
  0x11   : > { %576 = vmatpush1.bf16.msra.mxu0 %v865_v19  ;;  %640 = vmatpush1.bf16.msra.mxu1 %v865_v19  ;;  %v327_v46 = vcombine.high %v962_v45, %v962_v45  ;;  %v206_v52 = vld [vmem:[%s1157_s2 + $0x118] sm:$0xff]  ;;  %v988_v53 = vpack.c.bf16 %v201_v50, %v199_v49  ;;  %v203_v55 = vld [vmem:[%s1157_s2 + $0x100] sm:$0xff]  ;;  %v205_v56 = vld [vmem:[%s1157_s2 + $0x110] sm:$0xff] }
  0x12   : > { %578 = vmatprep.subr.bf16.mxu0 %v871_v20  ;;  %642 = vmatprep.subr.bf16.mxu1 %v871_v20  ;;  %v992_v54 = vpack.c.bf16 %v206_v52, %v204_v51  ;;  %v208_v57 = vld [vmem:[%s1157_s2 + $0x128] sm:$0xff]  ;;  %v210_v58 = vld [vmem:[%s1157_s2 + $0x138] sm:$0xff]  ;;  %v1008_v59 = vpack.c.bf16 %v205_v56, %v203_v55  ;;  %v207_v61 = vld [vmem:[%s1157_s2 + $0x120] sm:$0xff] }
  0x13   : > { %311 = vmatprep.mubr.f32.mxu0 %v244_v44  ;;  %394 = vmatprep.mubr.f32.mxu1 %v327_v46  ;;  %v1012_v60 = vpack.c.bf16 %v210_v58, %v208_v57  ;;  %v209_v62 = vld [vmem:[%s1157_s2 + $0x130] sm:$0xff]  ;;  %v212_v63 = vld [vmem:[%s1157_s2 + $0x148] sm:$0xff]  ;;  %v214_v0 = vld [vmem:[%s1157_s2 + $0x158] sm:$0xff] }
  0x14   : > { %v1028_v1 = vpack.c.bf16 %v209_v62, %v207_v61  ;;  %v1032_v2 = vpack.c.bf16 %v214_v0, %v212_v63  ;;  %v211_v4 = vld [vmem:[%s1157_s2 + $0x140] sm:$0xff]  ;;  %v213_v5 = vld [vmem:[%s1157_s2 + $0x150] sm:$0xff]  ;;  %v216_v6 = vld [vmem:[%s1157_s2 + $0x168] sm:$0xff] }
  0x15   : > { %580 = vmatpush1.bf16.msra.mxu0 %v887_v25  ;;  %644 = vmatpush1.bf16.msra.mxu1 %v887_v25  ;;  %v218_v9 = vld [vmem:[%s1157_s2 + $0x178] sm:$0xff]  ;;  %v1048_v10 = vpack.c.bf16 %v213_v5, %v211_v4  ;;  %v215_v12 = vld [vmem:[%s1157_s2 + $0x160] sm:$0xff]  ;;  %v217_v15 = vld [vmem:[%s1157_s2 + $0x170] sm:$0xff] }
  0x16   : > { %582 = vmatprep.subr.bf16.mxu0 %v895_v26  ;;  %646 = vmatprep.subr.bf16.mxu1 %v895_v26  ;;  %v1052_v11 = vpack.c.bf16 %v218_v9, %v216_v6  ;;  %v220_v16 = vld [vmem:[%s1157_s2 + $0x188] sm:$0xff]  ;;  %v222_v17 = vld [vmem:[%s1157_s2 + $0x198] sm:$0xff]  ;;  %v1068_v18 = vpack.c.bf16 %v217_v15, %v215_v12  ;;  %v219_v22 = vld [vmem:[%s1157_s2 + $0x180] sm:$0xff] }
  0x17   : > { %v1072_v21 = vpack.c.bf16 %v222_v17, %v220_v16  ;;  %v221_v23 = vld [vmem:[%s1157_s2 + $0x190] sm:$0xff]  ;;  %v224_v24 = vld [vmem:[%s1157_s2 + $0x1a8] sm:$0xff]  ;;  %v226_v27 = vld [vmem:[%s1157_s2 + $0x1b8] sm:$0xff] }
  0x18   : > { %v615_v28 = vpack.c.bf16 %v221_v23, %v219_v22  ;;  %v617_v29 = vpack.c.bf16 %v226_v27, %v224_v24  ;;  %v223_v30 = vld [vmem:[%s1157_s2 + $0x1a0] sm:$0xff]  ;;  %v225_v33 = vld [vmem:[%s1157_s2 + $0x1b0] sm:$0xff]  ;;  %v228_v34 = vld [vmem:[%s1157_s2 + $0x1c8] sm:$0xff] }
  0x19   : > { %584 = vmatpush1.bf16.msra.mxu0 %v911_v31  ;;  %648 = vmatpush1.bf16.msra.mxu1 %v911_v31  ;;  %v230_v35 = vld [vmem:[%s1157_s2 + $0x1d8] sm:$0xff]  ;;  %v619_v36 = vpack.c.bf16 %v225_v33, %v223_v30  ;;  %v227_v40 = vld [vmem:[%s1157_s2 + $0x1c0] sm:$0xff]  ;;  %v229_v42 = vld [vmem:[%s1157_s2 + $0x1d0] sm:$0xff] }
  0x1a   : > { %586 = vmatprep.subr.bf16.mxu0 %v916_v32  ;;  %650 = vmatprep.subr.bf16.mxu1 %v916_v32  ;;  %v621_v39 = vpack.c.bf16 %v230_v35, %v228_v34  ;;  %v232_v43 = vld [vmem:[%s1157_s2 + $0x1e8] sm:$0xff]  ;;  %v234_v44 = vld [vmem:[%s1157_s2 + $0x1f8] sm:$0xff]  ;;  %v623_v46 = vpack.c.bf16 %v229_v42, %v227_v40  ;;  %v231_v50 = vld [vmem:[%s1157_s2 + $0x1e0] sm:$0xff] }
  0x1b   : > { %v625_v49 = vpack.c.bf16 %v234_v44, %v232_v43  ;;  %v233_v51 = vld [vmem:[%s1157_s2 + $0x1f0] sm:$0xff] }
  0x1c   : > { %v627_v52 = vpack.c.bf16 %v233_v51, %v231_v50 }
  0x1d   : > { %588 = vmatpush1.bf16.msra.mxu0 %v937_v37  ;;  %652 = vmatpush1.bf16.msra.mxu1 %v937_v37 }
  0x1e   : > { %590 = vmatprep.subr.bf16.mxu0 %v941_v38  ;;  %654 = vmatprep.subr.bf16.mxu1 %v941_v38 }
  0x21   : > { %592 = vmatpush1.bf16.msra.mxu0 %v968_v47  ;;  %656 = vmatpush1.bf16.msra.mxu1 %v968_v47 }
  0x22   : > { %594 = vmatprep.subr.bf16.mxu0 %v972_v48  ;;  %658 = vmatprep.subr.bf16.mxu1 %v972_v48 }
  0x25   : > { %596 = vmatpush1.bf16.msra.mxu0 %v988_v53  ;;  %660 = vmatpush1.bf16.msra.mxu1 %v988_v53 }
  0x26   : > { %598 = vmatprep.subr.bf16.mxu0 %v992_v54  ;;  %662 = vmatprep.subr.bf16.mxu1 %v992_v54 }
  0x29   : > { %600 = vmatpush1.bf16.msra.mxu0 %v1008_v59  ;;  %664 = vmatpush1.bf16.msra.mxu1 %v1008_v59 }
  0x2a   : > { %602 = vmatprep.subr.bf16.mxu0 %v1012_v60  ;;  %666 = vmatprep.subr.bf16.mxu1 %v1012_v60 }
  0x2d   : > { %604 = vmatpush1.bf16.msra.mxu0 %v1028_v1  ;;  %668 = vmatpush1.bf16.msra.mxu1 %v1028_v1 }
  0x2e   : > { %606 = vmatprep.subr.bf16.mxu0 %v1032_v2  ;;  %670 = vmatprep.subr.bf16.mxu1 %v1032_v2 }
  0x31   : > { %608 = vmatpush1.bf16.msra.mxu0 %v1048_v10  ;;  %672 = vmatpush1.bf16.msra.mxu1 %v1048_v10 }
  0x32   : > { %610 = vmatprep.subr.bf16.mxu0 %v1052_v11  ;;  %674 = vmatprep.subr.bf16.mxu1 %v1052_v11 }
  0x35   : > { %612 = vmatpush1.bf16.msra.mxu0 %v1068_v18  ;;  %676 = vmatpush1.bf16.msra.mxu1 %v1068_v18 }
  0x36   : > { %614 = vmatprep.subr.bf16.mxu0 %v1072_v21  ;;  %678 = vmatprep.subr.bf16.mxu1 %v1072_v21 }
  0x39   : > { %616 = vmatpush1.bf16.msra.mxu0 %v615_v28  ;;  %680 = vmatpush1.bf16.msra.mxu1 %v615_v28 }
  0x3a   : > { %618 = vmatprep.subr.bf16.mxu0 %v617_v29  ;;  %682 = vmatprep.subr.bf16.mxu1 %v617_v29 }
  0x3d   : > { %620 = vmatpush1.bf16.msra.mxu0 %v619_v36  ;;  %684 = vmatpush1.bf16.msra.mxu1 %v619_v36 }
  0x3e   : > { %622 = vmatprep.subr.bf16.mxu0 %v621_v39  ;;  %686 = vmatprep.subr.bf16.mxu1 %v621_v39 }
  0x41   : > { %624 = vmatpush1.bf16.msra.mxu0 %v623_v46  ;;  %688 = vmatpush1.bf16.msra.mxu1 %v623_v46 }
  0x42   : > { %626 = vmatprep.subr.bf16.mxu0 %v625_v49  ;;  %690 = vmatprep.subr.bf16.mxu1 %v625_v49 }
  0x45   : > { %628 = vmatpush1.bf16.msra.mxu0 %v627_v52  ;;  %692 = vmatpush1.bf16.msra.mxu1 %v627_v52 }
  0x46   : > { %694 = vmatprep.subr.bf16.mxu0 %v814_v3 }
  0x48   : > { %312 = vmatmul.mubr.f32.vlgmr.msra.gmra.mrb[0].mxu0 %v952_v41  ;;  %395 = vmatmul.mubr.f32.vlgmr.msra.gmra.mrb[0].mxu1 %v962_v45 }
  0x49   : > { %696 = vmatpush1.bf16.msra.mxu0 %v825_v7 }
  0x4a   : > { %698 = vmatprep.subr.bf16.mxu0 %v827_v8 }
  0x4d   : > { %700 = vmatpush1.bf16.msra.mxu0 %v845_v13 }
  0x4e   : > { %702 = vmatprep.subr.bf16.mxu0 %v849_v14 }
  0x51   : > { %704 = vmatpush1.bf16.msra.mxu0 %v865_v19 }
  0x52   : > { %706 = vmatprep.subr.bf16.mxu0 %v871_v20 }
  0x55   : > { %708 = vmatpush1.bf16.msra.mxu0 %v887_v25 }
  0x56   : > { %710 = vmatprep.subr.bf16.mxu0 %v895_v26 }
  0x59   : > { %712 = vmatpush1.bf16.msra.mxu0 %v911_v31 }
  0x5a   : > { %714 = vmatprep.subr.bf16.mxu0 %v916_v32 }
  0x5d   : > { %716 = vmatpush1.bf16.msra.mxu0 %v937_v37 }
  0x5e   : > { %718 = vmatprep.subr.bf16.mxu0 %v941_v38 }
  0x61   : > { %720 = vmatpush1.bf16.msra.mxu0 %v968_v47 }
  0x62   : > { %722 = vmatprep.subr.bf16.mxu0 %v972_v48 }
  0x65   : > { %724 = vmatpush1.bf16.msra.mxu0 %v988_v53 }
  0x66   : > { %726 = vmatprep.subr.bf16.mxu0 %v992_v54 }
  0x69   : > { %728 = vmatpush1.bf16.msra.mxu0 %v1008_v59 }
  0x6a   : > { %730 = vmatprep.subr.bf16.mxu0 %v1012_v60 }
  0x6d   : > { %732 = vmatpush1.bf16.msra.mxu0 %v1028_v1 }
  0x6e   : > { %734 = vmatprep.subr.bf16.mxu0 %v1032_v2 }
  0x71   : > { %736 = vmatpush1.bf16.msra.mxu0 %v1048_v10 }
  0x72   : > { %738 = vmatprep.subr.bf16.mxu0 %v1052_v11 }
  0x75   : > { %740 = vmatpush1.bf16.msra.mxu0 %v1068_v18 }
  0x76   : > { %742 = vmatprep.subr.bf16.mxu0 %v1072_v21 }
  0x79   : > { %744 = vmatpush1.bf16.msra.mxu0 %v615_v28 }
  0x7a   : > { %746 = vmatprep.subr.bf16.mxu0 %v617_v29 }
  0x7d   : > { %748 = vmatpush1.bf16.msra.mxu0 %v619_v36 }
  0x7e   : > { %750 = vmatprep.subr.bf16.mxu0 %v621_v39 }
  0x81   : > { %752 = vmatpush1.bf16.msra.mxu0 %v623_v46 }
  0x82   : > { %754 = vmatprep.subr.bf16.mxu0 %v625_v49 }
  0x85   : > { %756 = vmatpush1.bf16.msra.mxu0 %v627_v52 }
 0x11b   : > { %v313_v3 = vpop.f32.mrb[0].mxu0  ;;  %v396_v7 = vpop.f32.mrb[0].mxu1 }
 0x11c   : > { %v401_v8 = vmul.f32 %v396_v7, %v313_v3  ;;  %v315_v13 = vpop.f32.mrb[1].mxu0  ;;  %v398_v14 = vpop.f32.mrb[1].mxu1 }
 0x11d   : > { %v402_v19 = vmul.f32 %v398_v14, %v315_v13 }
 0x11f   : > { %467 = vmatprep.mubr.f32.mxu0 %v402_v19 }
 0x120   : > { %468 = vmatmul.mubr.f32.vlgmr.msra.gmra.mrb[2].mxu0 %v401_v8 }
 0x1f3   : > { %v469_v20 = vpop.f32.mrb[2].mxu0 }
 0x1f4   : > { %v474_v25 = vmul.f32 0.00390625, %v469_v20  ;;  %v471_v26 = vpop.f32.mrb[3].mxu0 }
 0x1f5   : > { %v475_v31 = vmul.f32 0.00390625, %v471_v26 }
 0x1f6   : > { %v476_v32 = vmax.f32 %v474_v25, 1e-12 }
 0x1f7   : > { %v477_v37 = vmax.f32 %v475_v31, 1e-12 }
 0x1f8   : > { %765 = vlog2.f32 %v476_v32 }
 0x1f9   : > { %767 = vlog2.f32 %v477_v37 }
 0x202   : > { %v766_v38 = vpop.eup %765 }
 0x203   : > { %v768_v41 = vpop.eup %767  ;;  %v479_v45 = vmul.f32 0.6931472, %v766_v38 }
 0x204   : > { %v481_v47 = vmul.f32 0.6931472, %v768_v41 }
 0x206   : > { %v484_v48 = vcombine.low %v479_v45, %v481_v47 }
 0x208   : > { %560 = vst.sshfl [vmem:[%s170_s28] sm:$0x33 pattern:$0x76325410] %v484_v48 }
 0x209 PF: > { %s13_s12 = sadd.s32 1, %s775_s12  }
 0x20a   : > { %p10_p4 = scmp.ge.s32.totalorder %s13_s12, 6  }
 0x20c   :  { %12 = sbr.rel (!%p10_p4) target bundleno = 1 (0x1), region = 62 }

// kernel: multitask_cnn_forward.8
= control target key start
LH: loop header
LB: loop body
LE: loop exit
PB: predicated region body
PF: predicated region fallthrough
CT: control target
= control target key end

     0   :  { %s2645_s27 = smov 0   ;;  %s2920_s0 = inlined_call_operand.vmem [shape: bf16[2,3,256], index: 0, kind: input, shape index: {}]   ;;  %s2921_s1 = inlined_call_operand.vmem [shape: bf16[5,3,256,256], index: 1, kind: input, shape index: {}]   ;;  %s2922_s2 = inlined_call_operand.vmem [shape: f32[5,1,256], index: 2, kind: input, shape index: {}]   ;;  %s2923_s3 = inlined_call_operand.vmem [shape: f32[5,1,256], index: 3, kind: input, shape index: {}]   ;;  %s2924_s4 = inlined_call_operand.vmem [shape: bf16[5,256,256], index: 4, kind: input, shape index: {}]   ;;  %s2925_s5 = inlined_call_operand.vmem [shape: f32[5,1,256], index: 5, kind: input, shape index: {}]   ;;  %s2926_s6 = inlined_call_operand.vmem [shape: bf16[5,256,256], index: 6, kind: input, shape index: {}]   ;;  %s2927_s7 = inlined_call_operand.vmem [shape: f32[5,1,256], index: 7, kind: input, shape index: {}]   ;;  %s2928_s8 = inlined_call_operand.vmem [shape: f32[5,2,256], index: 8, kind: output, shape index: {}]  }
   0x1 LB: > { %s2051_s28 = sadd.s32 4294967295, %s2598_s27   ;;  %p2055_p0 = scmp.ge.s32.totalorder %s2598_s27, 1  ;;  %s2598_s27 = sphi %s2645_s27, %s18_s27  }
   0x2   : > { %p318_p1 = scmp.lt.s32.totalorder %s2598_s27, 6 }
   0x4   : > { %p319_p2 = pnand %p2055_p0, %p318_p1 }
   0x5   : > { %p378_p3 = scmp.lt.s32.totalorder (!%p319_p2), %s2051_s28, 4  ;;  %v2656_v0 = vld.sshfl [vmem:[%s2920_s0] sm:$0x11 pattern:$0x76325410] (!%p319_p2)  ;;  %vm1381_vm4 = vcmask (!%p319_p2), 1040384  }
   0x6   : > { %322 = sbr.rel (%p319_p2) target bundleno = 1230 (0x4ce), region = 52  ;;  %v2660_v1 = vcombine.high (!%p319_p2), %v2656_v0, %v2656_v0  ;;  %v2665_v2 = vld.sshfl [vmem:[%s2920_s0 + $0x4] sm:$0x11 pattern:$0x76325410] (!%p319_p2)  ;;  %v490_v39 = vshrl.u32 (!%p319_p2), %v2656_v0, 16 }
   0x7   : > { %v2671_v3 = vcombine.high (!%p319_p2), %v2665_v2, %v2665_v2  ;;  %v1207_v40 = vshrl.u32 (!%p319_p2), %v2665_v2, 16  ;;  %vm1892_vm7 = vcmask (!%p319_p2), 1041408  }
   0x8   : > { %v493_v4 = vshrl.u32 (!%p319_p2), %v2660_v1, 16 }
   0x9   : > { %v1210_v5 = vshrl.u32 (!%p319_p2), %v2671_v3, 16 }
   0xa   : > { %689 = vmatprep.mubr.bf16.mxu0 (!%p319_p2), %v493_v4 }
   0xb   : > { %1246 = vmatprep.mubr.bf16.mxu1 (!%p319_p2), %v1210_v5 }
   0xd   : > { %s2930_s28 = smov (!%p378_p3, %s2051_s28), 4 }
   0xe   : > { %s2325_s11 = smul.u32 768, %s2930_s28  ;;  %s2306_s15 = sshll.u32 %s2930_s28, 8 }
   0xf   : > { %s2725_s18 = scalar_lea.vmem %s2924_s4, %s2306_s15  ;;  %s2844_s25 = scalar_lea.vmem %s2926_s6, %s2306_s15 }
  0x10   : > { %s2679_s14 = scalar_lea.vmem %s2921_s1, %s2325_s11  ;;  %s2867_s26 = sshll.u32 %s2930_s28, 1 }
  0x11   : > { %v2334_v6 = vld [vmem:[%s2679_s14 + $0x104] ss:$8 sps:$4 sm:$0xff]   ;;  %v2336_v7 = vld [vmem:[%s2679_s14 + $0x100] ss:$8 sps:$4 sm:$0xff]   ;;  %v2337_v8 = vld [vmem:[%s2679_s14 + $0x114] ss:$8 sps:$4 sm:$0xff]   ;;  %s386_s9 = scalar_lea.vmem %s2922_s2, %s2867_s26  ;;  %s390_s12 = scalar_lea.vmem %s2923_s3, %s2867_s26 }
  0x12   : > { %657 = vmatprep.subr.bf16.mxu0 %v2334_v6  ;;  %1214 = vmatprep.subr.bf16.mxu1 %v2334_v6  ;;  %v2339_v9 = vld [vmem:[%s2679_s14 + $0x110] ss:$8 sps:$4 sm:$0xff]   ;;  %v2340_v10 = vld [vmem:[%s2679_s14 + $0x124] ss:$8 sps:$4 sm:$0xff]   ;;  %v2342_v11 = vld [vmem:[%s2679_s14 + $0x120] ss:$8 sps:$4 sm:$0xff]   ;;  %s399_s15 = scalar_lea.vmem %s2925_s5, %s2867_s26 }
  0x13   : > { %658 = vmatpush1.bf16.msra.mxu0 %v2336_v7  ;;  %1215 = vmatpush1.bf16.msra.mxu1 %v2336_v7  ;;  %v2343_v12 = vld [vmem:[%s2679_s14 + $0x134] ss:$8 sps:$4 sm:$0xff]   ;;  %v2345_v13 = vld [vmem:[%s2679_s14 + $0x130] ss:$8 sps:$4 sm:$0xff]   ;;  %v2346_v14 = vld [vmem:[%s2679_s14 + $0x144] ss:$8 sps:$4 sm:$0xff]  }
  0x14   : > { %659 = vmatprep.subr.bf16.mxu0 %v2337_v8  ;;  %1216 = vmatprep.subr.bf16.mxu1 %v2337_v8  ;;  %v2348_v15 = vld [vmem:[%s2679_s14 + $0x140] ss:$8 sps:$4 sm:$0xff]   ;;  %v2349_v16 = vld [vmem:[%s2679_s14 + $0x154] ss:$8 sps:$4 sm:$0xff]   ;;  %v2351_v17 = vld [vmem:[%s2679_s14 + $0x150] ss:$8 sps:$4 sm:$0xff]  }
  0x15   : > { %v2352_v18 = vld [vmem:[%s2679_s14 + $0x164] ss:$8 sps:$4 sm:$0xff]   ;;  %v2354_v19 = vld [vmem:[%s2679_s14 + $0x160] ss:$8 sps:$4 sm:$0xff]   ;;  %v2355_v20 = vld [vmem:[%s2679_s14 + $0x174] ss:$8 sps:$4 sm:$0xff]  }
  0x16   : > { %v2357_v21 = vld [vmem:[%s2679_s14 + $0x170] ss:$8 sps:$4 sm:$0xff]   ;;  %v2358_v22 = vld [vmem:[%s2679_s14 + $0x184] ss:$8 sps:$4 sm:$0xff]   ;;  %v2360_v23 = vld [vmem:[%s2679_s14 + $0x180] ss:$8 sps:$4 sm:$0xff]  }
  0x17   : > { %660 = vmatpush1.bf16.msra.mxu0 %v2339_v9  ;;  %1217 = vmatpush1.bf16.msra.mxu1 %v2339_v9  ;;  %v2361_v24 = vld [vmem:[%s2679_s14 + $0x194] ss:$8 sps:$4 sm:$0xff]   ;;  %v2363_v25 = vld [vmem:[%s2679_s14 + $0x190] ss:$8 sps:$4 sm:$0xff]   ;;  %v2364_v26 = vld [vmem:[%s2679_s14 + $0x1a4] ss:$8 sps:$4 sm:$0xff]  }
  0x18   : > { %661 = vmatprep.subr.bf16.mxu0 %v2340_v10  ;;  %1218 = vmatprep.subr.bf16.mxu1 %v2340_v10  ;;  %v2366_v27 = vld [vmem:[%s2679_s14 + $0x1a0] ss:$8 sps:$4 sm:$0xff]   ;;  %v2367_v28 = vld [vmem:[%s2679_s14 + $0x1b4] ss:$8 sps:$4 sm:$0xff]   ;;  %v2369_v29 = vld [vmem:[%s2679_s14 + $0x1b0] ss:$8 sps:$4 sm:$0xff]  }
  0x19   : > { %v2370_v30 = vld [vmem:[%s2679_s14 + $0x1c4] ss:$8 sps:$4 sm:$0xff]   ;;  %v2372_v31 = vld [vmem:[%s2679_s14 + $0x1c0] ss:$8 sps:$4 sm:$0xff]   ;;  %v2373_v32 = vld [vmem:[%s2679_s14 + $0x1d4] ss:$8 sps:$4 sm:$0xff]  }
  0x1a   : > { %v2375_v33 = vld [vmem:[%s2679_s14 + $0x1d0] ss:$8 sps:$4 sm:$0xff]   ;;  %v2376_v34 = vld [vmem:[%s2679_s14 + $0x1e4] ss:$8 sps:$4 sm:$0xff]   ;;  %v2378_v35 = vld [vmem:[%s2679_s14 + $0x1e0] ss:$8 sps:$4 sm:$0xff]  }
  0x1b   : > { %662 = vmatpush1.bf16.msra.mxu0 %v2342_v11  ;;  %1219 = vmatpush1.bf16.msra.mxu1 %v2342_v11  ;;  %v2379_v36 = vld [vmem:[%s2679_s14 + $0x1f4] ss:$8 sps:$4 sm:$0xff]   ;;  %v2381_v37 = vld [vmem:[%s2679_s14 + $0x1f0] ss:$8 sps:$4 sm:$0xff]   ;;  %v2384_v38 = vld [vmem:[%s2679_s14 + $0x4] ss:$8 sps:$4 sm:$0xff]  }
  0x1c   : > { %663 = vmatprep.subr.bf16.mxu0 %v2343_v12  ;;  %1220 = vmatprep.subr.bf16.mxu1 %v2343_v12  ;;  %v2382_v41 = vld [vmem:[%s2679_s14] ss:$8 sps:$4 sm:$0xff]   ;;  %v2387_v42 = vld [vmem:[%s2679_s14 + $0x14] ss:$8 sps:$4 sm:$0xff]   ;;  %v2385_v43 = vld [vmem:[%s2679_s14 + $0x10] ss:$8 sps:$4 sm:$0xff]  }
  0x1d   : > { %v2390_v44 = vld [vmem:[%s2679_s14 + $0x24] ss:$8 sps:$4 sm:$0xff]   ;;  %v2388_v45 = vld [vmem:[%s2679_s14 + $0x20] ss:$8 sps:$4 sm:$0xff]   ;;  %v2393_v46 = vld [vmem:[%s2679_s14 + $0x34] ss:$8 sps:$4 sm:$0xff]  }
  0x1e   : > { %v2391_v47 = vld [vmem:[%s2679_s14 + $0x30] ss:$8 sps:$4 sm:$0xff]   ;;  %v2396_v48 = vld [vmem:[%s2679_s14 + $0x44] ss:$8 sps:$4 sm:$0xff]   ;;  %v2394_v49 = vld [vmem:[%s2679_s14 + $0x40] ss:$8 sps:$4 sm:$0xff]  }
  0x1f   : > { %664 = vmatpush1.bf16.msra.mxu0 %v2345_v13  ;;  %1221 = vmatpush1.bf16.msra.mxu1 %v2345_v13  ;;  %v2399_v50 = vld [vmem:[%s2679_s14 + $0x54] ss:$8 sps:$4 sm:$0xff]   ;;  %v2397_v51 = vld [vmem:[%s2679_s14 + $0x50] ss:$8 sps:$4 sm:$0xff]   ;;  %v2402_v52 = vld [vmem:[%s2679_s14 + $0x64] ss:$8 sps:$4 sm:$0xff]  }
  0x20   : > { %665 = vmatprep.subr.bf16.mxu0 %v2346_v14  ;;  %1222 = vmatprep.subr.bf16.mxu1 %v2346_v14  ;;  %v2400_v53 = vld [vmem:[%s2679_s14 + $0x60] ss:$8 sps:$4 sm:$0xff]   ;;  %v2405_v54 = vld [vmem:[%s2679_s14 + $0x74] ss:$8 sps:$4 sm:$0xff]   ;;  %v2403_v55 = vld [vmem:[%s2679_s14 + $0x70] ss:$8 sps:$4 sm:$0xff]  }
  0x21   : > { %v2408_v56 = vld [vmem:[%s2679_s14 + $0x84] ss:$8 sps:$4 sm:$0xff]   ;;  %v2406_v57 = vld [vmem:[%s2679_s14 + $0x80] ss:$8 sps:$4 sm:$0xff]   ;;  %v2411_v58 = vld [vmem:[%s2679_s14 + $0x94] ss:$8 sps:$4 sm:$0xff]  }
  0x22   : > { %v2409_v59 = vld [vmem:[%s2679_s14 + $0x90] ss:$8 sps:$4 sm:$0xff]   ;;  %v2414_v60 = vld [vmem:[%s2679_s14 + $0xa4] ss:$8 sps:$4 sm:$0xff]   ;;  %v2412_v61 = vld [vmem:[%s2679_s14 + $0xa0] ss:$8 sps:$4 sm:$0xff]  }
  0x23   : > { %666 = vmatpush1.bf16.msra.mxu0 %v2348_v15  ;;  %1223 = vmatpush1.bf16.msra.mxu1 %v2348_v15  ;;  %v2417_v62 = vld [vmem:[%s2679_s14 + $0xb4] ss:$8 sps:$4 sm:$0xff]   ;;  %v2415_v63 = vld [vmem:[%s2679_s14 + $0xb0] ss:$8 sps:$4 sm:$0xff]   ;;  %v2426_v6 = vld [vmem:[%s2679_s14 + $0xe4] ss:$8 sps:$4 sm:$0xff]  }
  0x24   : > { %667 = vmatprep.subr.bf16.mxu0 %v2349_v16  ;;  %1224 = vmatprep.subr.bf16.mxu1 %v2349_v16  ;;  %v2423_v4 = vld [vmem:[%s2679_s14 + $0xd4] ss:$8 sps:$4 sm:$0xff]   ;;  %v2421_v5 = vld [vmem:[%s2679_s14 + $0xd0] ss:$8 sps:$4 sm:$0xff]   ;;  %v2424_v7 = vld [vmem:[%s2679_s14 + $0xe0] ss:$8 sps:$4 sm:$0xff]  }
  0x25   : > { %v2429_v8 = vld [vmem:[%s2679_s14 + $0xf4] ss:$8 sps:$4 sm:$0xff]   ;;  %v2759_v9 = vld.sshfl [vmem:[%s2920_s0] sm:$0x22 pattern:$0x76325410] }
  0x26   : > { %v2764_v10 = vld.sshfl [vmem:[%s2920_s0 + $0x4] sm:$0x22 pattern:$0x76325410]  ;;  %v2427_v11 = vld [vmem:[%s2679_s14 + $0xf0] ss:$8 sps:$4 sm:$0xff]   ;;  %v943_v13 = vcombine.high %v2759_v9, %v2759_v9 }
  0x27   : > { %668 = vmatpush1.bf16.msra.mxu0 %v2351_v17  ;;  %1225 = vmatpush1.bf16.msra.mxu1 %v2351_v17  ;;  %v2432_v12 = vld [vmem:[%s2679_s14 + $0x204] ss:$8 sps:$4 sm:$0xff]   ;;  %v1307_v14 = vcombine.high %v2764_v10, %v2764_v10  ;;  %v2430_v15 = vld [vmem:[%s2679_s14 + $0x200] ss:$8 sps:$4 sm:$0xff]   ;;  %v2435_v16 = vld [vmem:[%s2679_s14 + $0x214] ss:$8 sps:$4 sm:$0xff]  }
  0x28   : > { %669 = vmatprep.subr.bf16.mxu0 %v2352_v18  ;;  %1226 = vmatprep.subr.bf16.mxu1 %v2352_v18  ;;  %v945_v17 = vrot.slane %v943_v13, 1  ;;  %v2517_v13 = vld [vmem:[%s2725_s18 + $0xd0] ss:$8 sps:$4 sm:$0xff]   ;;  %s2308_s19 = sshll.u32 %s2930_s28, 2 }
  0x29   : > { %v1309_v18 = vrot.slane %v1307_v14, 1  ;;  %v2522_v14 = vld [vmem:[%s2725_s18 + $0xe4] ss:$8 sps:$4 sm:$0xff]   ;;  %s413_s22 = scalar_lea.vmem %s2928_s8, %s2308_s19 }
  0x2b   : > { %670 = vmatpush1.bf16.msra.mxu0 %v2354_v19  ;;  %1227 = vmatpush1.bf16.msra.mxu1 %v2354_v19  ;;  %v2433_v19 = vld [vmem:[%s2679_s14 + $0x210] ss:$8 sps:$4 sm:$0xff]  }
  0x2c   : > { %671 = vmatprep.subr.bf16.mxu0 %v2355_v20  ;;  %1228 = vmatprep.subr.bf16.mxu1 %v2355_v20  ;;  %v2438_v20 = vld [vmem:[%s2679_s14 + $0x224] ss:$8 sps:$4 sm:$0xff]  }
  0x2f   : > { %672 = vmatpush1.bf16.msra.mxu0 %v2357_v21  ;;  %1229 = vmatpush1.bf16.msra.mxu1 %v2357_v21  ;;  %v2436_v21 = vld [vmem:[%s2679_s14 + $0x220] ss:$8 sps:$4 sm:$0xff]  }
  0x30   : > { %673 = vmatprep.subr.bf16.mxu0 %v2358_v22  ;;  %1230 = vmatprep.subr.bf16.mxu1 %v2358_v22  ;;  %v2444_v22 = vld [vmem:[%s2679_s14 + $0x244] ss:$8 sps:$4 sm:$0xff]  }
  0x33   : > { %674 = vmatpush1.bf16.msra.mxu0 %v2360_v23  ;;  %1231 = vmatpush1.bf16.msra.mxu1 %v2360_v23  ;;  %v2442_v23 = vld [vmem:[%s2679_s14 + $0x240] ss:$8 sps:$4 sm:$0xff]  }
  0x34   : > { %675 = vmatprep.subr.bf16.mxu0 %v2361_v24  ;;  %1232 = vmatprep.subr.bf16.mxu1 %v2361_v24  ;;  %v2447_v24 = vld [vmem:[%s2679_s14 + $0x254] ss:$8 sps:$4 sm:$0xff]  }
  0x37   : > { %676 = vmatpush1.bf16.msra.mxu0 %v2363_v25  ;;  %1233 = vmatpush1.bf16.msra.mxu1 %v2363_v25  ;;  %v2445_v25 = vld [vmem:[%s2679_s14 + $0x250] ss:$8 sps:$4 sm:$0xff]  }
  0x38   : > { %677 = vmatprep.subr.bf16.mxu0 %v2364_v26  ;;  %1234 = vmatprep.subr.bf16.mxu1 %v2364_v26  ;;  %v2450_v26 = vld [vmem:[%s2679_s14 + $0x264] ss:$8 sps:$4 sm:$0xff]  }
  0x3b   : > { %678 = vmatpush1.bf16.msra.mxu0 %v2366_v27  ;;  %1235 = vmatpush1.bf16.msra.mxu1 %v2366_v27  ;;  %v2448_v27 = vld [vmem:[%s2679_s14 + $0x260] ss:$8 sps:$4 sm:$0xff]  }
  0x3c   : > { %679 = vmatprep.subr.bf16.mxu0 %v2367_v28  ;;  %1236 = vmatprep.subr.bf16.mxu1 %v2367_v28  ;;  %v2453_v28 = vld [vmem:[%s2679_s14 + $0x274] ss:$8 sps:$4 sm:$0xff]  }
  0x3f   : > { %680 = vmatpush1.bf16.msra.mxu0 %v2369_v29  ;;  %1237 = vmatpush1.bf16.msra.mxu1 %v2369_v29  ;;  %v2451_v29 = vld [vmem:[%s2679_s14 + $0x270] ss:$8 sps:$4 sm:$0xff]  }
  0x40   : > { %681 = vmatprep.subr.bf16.mxu0 %v2370_v30  ;;  %1238 = vmatprep.subr.bf16.mxu1 %v2370_v30  ;;  %v2456_v30 = vld [vmem:[%s2679_s14 + $0x284] ss:$8 sps:$4 sm:$0xff]  }
  0x43   : > { %682 = vmatpush1.bf16.msra.mxu0 %v2372_v31  ;;  %1239 = vmatpush1.bf16.msra.mxu1 %v2372_v31  ;;  %v2454_v31 = vld [vmem:[%s2679_s14 + $0x280] ss:$8 sps:$4 sm:$0xff]  }
  0x44   : > { %683 = vmatprep.subr.bf16.mxu0 %v2373_v32  ;;  %1240 = vmatprep.subr.bf16.mxu1 %v2373_v32  ;;  %v2459_v32 = vld [vmem:[%s2679_s14 + $0x294] ss:$8 sps:$4 sm:$0xff]  }
  0x47   : > { %684 = vmatpush1.bf16.msra.mxu0 %v2375_v33  ;;  %1241 = vmatpush1.bf16.msra.mxu1 %v2375_v33  ;;  %v2457_v33 = vld [vmem:[%s2679_s14 + $0x290] ss:$8 sps:$4 sm:$0xff]  }
  0x48   : > { %685 = vmatprep.subr.bf16.mxu0 %v2376_v34  ;;  %1242 = vmatprep.subr.bf16.mxu1 %v2376_v34  ;;  %v2462_v34 = vld [vmem:[%s2679_s14 + $0x2a4] ss:$8 sps:$4 sm:$0xff]  }
  0x4b   : > { %686 = vmatpush1.bf16.msra.mxu0 %v2378_v35  ;;  %1243 = vmatpush1.bf16.msra.mxu1 %v2378_v35  ;;  %v2460_v35 = vld [vmem:[%s2679_s14 + $0x2a0] ss:$8 sps:$4 sm:$0xff]  }
  0x4c   : > { %687 = vmatprep.subr.bf16.mxu0 %v2379_v36  ;;  %1244 = vmatprep.subr.bf16.mxu1 %v2379_v36  ;;  %v2465_v36 = vld [vmem:[%s2679_s14 + $0x2b4] ss:$8 sps:$4 sm:$0xff]  }
  0x4f   : > { %688 = vmatpush1.bf16.msra.mxu0 %v2381_v37  ;;  %1245 = vmatpush1.bf16.msra.mxu1 %v2381_v37  ;;  %v2463_v37 = vld [vmem:[%s2679_s14 + $0x2b0] ss:$8 sps:$4 sm:$0xff]  }
  0x50   : > { %860 = vmatprep.subr.bf16.mxu0 %v2384_v38  ;;  %1257 = vmatprep.subr.bf16.mxu1 %v2384_v38  ;;  %v2468_v38 = vld [vmem:[%s2679_s14 + $0x2c4] ss:$8 sps:$4 sm:$0xff]  }
  0x52   : > { %690 = vmatmul.mubr.bf16.vlgmr.msra.gmra.mrb[0].mxu0 %v490_v39  ;;  %1247 = vmatmul.mubr.bf16.vlgmr.msra.gmra.mrb[0].mxu1 %v1207_v40  ;;  %v2466_v39 = vld [vmem:[%s2679_s14 + $0x2c0] ss:$8 sps:$4 sm:$0xff]   ;;  %v2471_v40 = vld [vmem:[%s2679_s14 + $0x2d4] ss:$8 sps:$4 sm:$0xff]  }
  0x53   : > { %861 = vmatpush1.bf16.msra.mxu0 %v2382_v41  ;;  %1258 = vmatpush1.bf16.msra.mxu1 %v2382_v41  ;;  %v2469_v41 = vld [vmem:[%s2679_s14 + $0x2d0] ss:$8 sps:$4 sm:$0xff]  }
  0x54   : > { %862 = vmatprep.subr.bf16.mxu0 %v2387_v42  ;;  %1259 = vmatprep.subr.bf16.mxu1 %v2387_v42  ;;  %v2474_v42 = vld [vmem:[%s2679_s14 + $0x2e4] ss:$8 sps:$4 sm:$0xff]  }
  0x55   : > { %892 = vmatprep.mubr.bf16.mxu0 %v2660_v1  ;;  %1289 = vmatprep.mubr.bf16.mxu1 %v2671_v3  ;;  %v2420_v1 = vld [vmem:[%s2679_s14 + $0xc4] ss:$8 sps:$4 sm:$0xff]   ;;  %v2418_v3 = vld [vmem:[%s2679_s14 + $0xc0] ss:$8 sps:$4 sm:$0xff]  }
  0x57   : > { %863 = vmatpush1.bf16.msra.mxu0 %v2385_v43  ;;  %1260 = vmatpush1.bf16.msra.mxu1 %v2385_v43  ;;  %v2472_v43 = vld [vmem:[%s2679_s14 + $0x2e0] ss:$8 sps:$4 sm:$0xff]  }
  0x58   : > { %864 = vmatprep.subr.bf16.mxu0 %v2390_v44  ;;  %1261 = vmatprep.subr.bf16.mxu1 %v2390_v44  ;;  %v2477_v44 = vld [vmem:[%s2679_s14 + $0x2f4] ss:$8 sps:$4 sm:$0xff]  }
  0x5b   : > { %865 = vmatpush1.bf16.msra.mxu0 %v2388_v45  ;;  %1262 = vmatpush1.bf16.msra.mxu1 %v2388_v45  ;;  %v2475_v45 = vld [vmem:[%s2679_s14 + $0x2f0] ss:$8 sps:$4 sm:$0xff]  }
  0x5c   : > { %866 = vmatprep.subr.bf16.mxu0 %v2393_v46  ;;  %1263 = vmatprep.subr.bf16.mxu1 %v2393_v46  ;;  %v2480_v46 = vld [vmem:[%s2725_s18 + $0x4] ss:$8 sps:$4 sm:$0xff]  }
  0x5f   : > { %867 = vmatpush1.bf16.msra.mxu0 %v2391_v47  ;;  %1264 = vmatpush1.bf16.msra.mxu1 %v2391_v47  ;;  %v944_v47 = vrot.slane %v2759_v9, 1  ;;  %v2511_v9 = vld [vmem:[%s2725_s18 + $0xb0] ss:$8 sps:$4 sm:$0xff]  }
  0x60   : > { %868 = vmatprep.subr.bf16.mxu0 %v2396_v48  ;;  %1265 = vmatprep.subr.bf16.mxu1 %v2396_v48  ;;  %v1308_v48 = vrot.slane %v2764_v10, 1  ;;  %v2516_v10 = vld [vmem:[%s2725_s18 + $0xc4] ss:$8 sps:$4 sm:$0xff]  }
  0x63   : > { %869 = vmatpush1.bf16.msra.mxu0 %v2394_v49  ;;  %1266 = vmatpush1.bf16.msra.mxu1 %v2394_v49  ;;  %v2478_v49 = vld [vmem:[%s2725_s18] ss:$8 sps:$4 sm:$0xff]  }
  0x64   : > { %870 = vmatprep.subr.bf16.mxu0 %v2399_v50  ;;  %1267 = vmatprep.subr.bf16.mxu1 %v2399_v50  ;;  %v2483_v50 = vld [vmem:[%s2725_s18 + $0x14] ss:$8 sps:$4 sm:$0xff]  }
  0x67   : > { %871 = vmatpush1.bf16.msra.mxu0 %v2397_v51  ;;  %1268 = vmatpush1.bf16.msra.mxu1 %v2397_v51  ;;  %v2481_v51 = vld [vmem:[%s2725_s18 + $0x10] ss:$8 sps:$4 sm:$0xff]  }
  0x68   : > { %872 = vmatprep.subr.bf16.mxu0 %v2402_v52  ;;  %1269 = vmatprep.subr.bf16.mxu1 %v2402_v52  ;;  %v2486_v52 = vld [vmem:[%s2725_s18 + $0x24] ss:$8 sps:$4 sm:$0xff]  }
  0x6b   : > { %873 = vmatpush1.bf16.msra.mxu0 %v2400_v53  ;;  %1270 = vmatpush1.bf16.msra.mxu1 %v2400_v53  ;;  %v2484_v53 = vld [vmem:[%s2725_s18 + $0x20] ss:$8 sps:$4 sm:$0xff]  }
  0x6c   : > { %874 = vmatprep.subr.bf16.mxu0 %v2405_v54  ;;  %1271 = vmatprep.subr.bf16.mxu1 %v2405_v54  ;;  %v2489_v54 = vld [vmem:[%s2725_s18 + $0x34] ss:$8 sps:$4 sm:$0xff]  }
  0x6f   : > { %875 = vmatpush1.bf16.msra.mxu0 %v2403_v55  ;;  %1272 = vmatpush1.bf16.msra.mxu1 %v2403_v55  ;;  %v2487_v55 = vld [vmem:[%s2725_s18 + $0x30] ss:$8 sps:$4 sm:$0xff]  }
  0x70   : > { %876 = vmatprep.subr.bf16.mxu0 %v2408_v56  ;;  %1273 = vmatprep.subr.bf16.mxu1 %v2408_v56  ;;  %v2492_v56 = vld [vmem:[%s2725_s18 + $0x44] ss:$8 sps:$4 sm:$0xff]  }
  0x73   : > { %877 = vmatpush1.bf16.msra.mxu0 %v2406_v57  ;;  %1274 = vmatpush1.bf16.msra.mxu1 %v2406_v57  ;;  %v2490_v57 = vld [vmem:[%s2725_s18 + $0x40] ss:$8 sps:$4 sm:$0xff]  }
  0x74   : > { %878 = vmatprep.subr.bf16.mxu0 %v2411_v58  ;;  %1275 = vmatprep.subr.bf16.mxu1 %v2411_v58  ;;  %v2495_v58 = vld [vmem:[%s2725_s18 + $0x54] ss:$8 sps:$4 sm:$0xff]  }
  0x77   : > { %879 = vmatpush1.bf16.msra.mxu0 %v2409_v59  ;;  %1276 = vmatpush1.bf16.msra.mxu1 %v2409_v59  ;;  %v2493_v59 = vld [vmem:[%s2725_s18 + $0x50] ss:$8 sps:$4 sm:$0xff]  }
  0x78   : > { %880 = vmatprep.subr.bf16.mxu0 %v2414_v60  ;;  %1277 = vmatprep.subr.bf16.mxu1 %v2414_v60  ;;  %v2498_v60 = vld [vmem:[%s2725_s18 + $0x64] ss:$8 sps:$4 sm:$0xff]  }
  0x7b   : > { %881 = vmatpush1.bf16.msra.mxu0 %v2412_v61  ;;  %1278 = vmatpush1.bf16.msra.mxu1 %v2412_v61  ;;  %v2496_v61 = vld [vmem:[%s2725_s18 + $0x60] ss:$8 sps:$4 sm:$0xff]  }
  0x7c   : > { %882 = vmatprep.subr.bf16.mxu0 %v2417_v62  ;;  %1279 = vmatprep.subr.bf16.mxu1 %v2417_v62  ;;  %v2501_v62 = vld [vmem:[%s2725_s18 + $0x74] ss:$8 sps:$4 sm:$0xff]  }
  0x7f   : > { %883 = vmatpush1.bf16.msra.mxu0 %v2415_v63  ;;  %1280 = vmatpush1.bf16.msra.mxu1 %v2415_v63  ;;  %v2499_v63 = vld [vmem:[%s2725_s18 + $0x70] ss:$8 sps:$4 sm:$0xff]  }
  0x80   : > { %884 = vmatprep.subr.bf16.mxu0 %v2420_v1  ;;  %1281 = vmatprep.subr.bf16.mxu1 %v2420_v1  ;;  %v2504_v1 = vld [vmem:[%s2725_s18 + $0x84] ss:$8 sps:$4 sm:$0xff]  }
  0x83   : > { %885 = vmatpush1.bf16.msra.mxu0 %v2418_v3  ;;  %1282 = vmatpush1.bf16.msra.mxu1 %v2418_v3  ;;  %v2502_v3 = vld [vmem:[%s2725_s18 + $0x80] ss:$8 sps:$4 sm:$0xff]  }
  0x84   : > { %886 = vmatprep.subr.bf16.mxu0 %v2423_v4  ;;  %1283 = vmatprep.subr.bf16.mxu1 %v2423_v4  ;;  %v2507_v4 = vld [vmem:[%s2725_s18 + $0x94] ss:$8 sps:$4 sm:$0xff]  }
  0x87   : > { %887 = vmatpush1.bf16.msra.mxu0 %v2421_v5  ;;  %1284 = vmatpush1.bf16.msra.mxu1 %v2421_v5  ;;  %v2505_v5 = vld [vmem:[%s2725_s18 + $0x90] ss:$8 sps:$4 sm:$0xff]  }
  0x88   : > { %888 = vmatprep.subr.bf16.mxu0 %v2426_v6  ;;  %1285 = vmatprep.subr.bf16.mxu1 %v2426_v6  ;;  %v2510_v6 = vld [vmem:[%s2725_s18 + $0xa4] ss:$8 sps:$4 sm:$0xff]  }
  0x8b   : > { %889 = vmatpush1.bf16.msra.mxu0 %v2424_v7  ;;  %1286 = vmatpush1.bf16.msra.mxu1 %v2424_v7  ;;  %v2508_v7 = vld [vmem:[%s2725_s18 + $0xa0] ss:$8 sps:$4 sm:$0xff]  }
  0x8c   : > { %890 = vmatprep.subr.bf16.mxu0 %v2429_v8  ;;  %1287 = vmatprep.subr.bf16.mxu1 %v2429_v8  ;;  %v2513_v8 = vld [vmem:[%s2725_s18 + $0xb4] ss:$8 sps:$4 sm:$0xff]  }
  0x8f   : > { %891 = vmatpush1.bf16.msra.mxu0 %v2427_v11  ;;  %1288 = vmatpush1.bf16.msra.mxu1 %v2427_v11  ;;  %v2514_v11 = vld [vmem:[%s2725_s18 + $0xc0] ss:$8 sps:$4 sm:$0xff]  }
  0x90   : > { %1108 = vmatprep.subr.bf16.mxu0 %v2432_v12  ;;  %1312 = vmatprep.subr.bf16.mxu1 %v2432_v12  ;;  %v2519_v12 = vld [vmem:[%s2725_s18 + $0xd4] ss:$8 sps:$4 sm:$0xff]  }
  0x92   : > { %893 = vmatmul.mubr.bf16.vlgmr.msra.gmra.mrb[0].mxu0 %v2656_v0  ;;  %1290 = vmatmul.mubr.bf16.vlgmr.msra.gmra.mrb[0].mxu1 %v2665_v2  ;;  %v2441_v0 = vld [vmem:[%s2679_s14 + $0x234] ss:$8 sps:$4 sm:$0xff]   ;;  %v2439_v2 = vld [vmem:[%s2679_s14 + $0x230] ss:$8 sps:$4 sm:$0xff]  }
  0x93   : > { %1109 = vmatpush1.bf16.msra.mxu0 %v2430_v15  ;;  %1313 = vmatpush1.bf16.msra.mxu1 %v2430_v15  ;;  %v2520_v15 = vld [vmem:[%s2725_s18 + $0xe0] ss:$8 sps:$4 sm:$0xff]  }
  0x94   : > { %1110 = vmatprep.subr.bf16.mxu0 %v2435_v16  ;;  %1314 = vmatprep.subr.bf16.mxu1 %v2435_v16  ;;  %v2523_v16 = vld [vmem:[%s2725_s18 + $0xf0] ss:$8 sps:$4 sm:$0xff]  }
  0x95   : > { %1140 = vmatprep.mubr.bf16.mxu0 %v945_v17  ;;  %1344 = vmatprep.mubr.bf16.mxu1 %v1309_v18  ;;  %v2525_v17 = vld [vmem:[%s2725_s18 + $0xf4] ss:$8 sps:$4 sm:$0xff]   ;;  %v2526_v18 = vld [vmem:[%s2844_s25] ss:$8 sps:$4 sm:$0xff]   ;;  %s408_s18 = scalar_lea.vmem %s2927_s7, %s2867_s26 }
  0x97   : > { %1111 = vmatpush1.bf16.msra.mxu0 %v2433_v19  ;;  %1315 = vmatpush1.bf16.msra.mxu1 %v2433_v19  ;;  %v2528_v19 = vld [vmem:[%s2844_s25 + $0x4] ss:$8 sps:$4 sm:$0xff]  }
  0x98   : > { %1112 = vmatprep.subr.bf16.mxu0 %v2438_v20  ;;  %1316 = vmatprep.subr.bf16.mxu1 %v2438_v20  ;;  %v2531_v20 = vld [vmem:[%s2844_s25 + $0x14] ss:$8 sps:$4 sm:$0xff]  }
  0x9b   : > { %1113 = vmatpush1.bf16.msra.mxu0 %v2436_v21  ;;  %1317 = vmatpush1.bf16.msra.mxu1 %v2436_v21  ;;  %v2529_v21 = vld [vmem:[%s2844_s25 + $0x10] ss:$8 sps:$4 sm:$0xff]  }
  0x9c   : > { %1114 = vmatprep.subr.bf16.mxu0 %v2441_v0  ;;  %1318 = vmatprep.subr.bf16.mxu1 %v2441_v0  ;;  %v2534_v0 = vld [vmem:[%s2844_s25 + $0x24] ss:$8 sps:$4 sm:$0xff]  }
  0x9f   : > { %1115 = vmatpush1.bf16.msra.mxu0 %v2439_v2  ;;  %1319 = vmatpush1.bf16.msra.mxu1 %v2439_v2  ;;  %v2532_v2 = vld [vmem:[%s2844_s25 + $0x20] ss:$8 sps:$4 sm:$0xff]  }
  0xa0   : > { %1116 = vmatprep.subr.bf16.mxu0 %v2444_v22  ;;  %1320 = vmatprep.subr.bf16.mxu1 %v2444_v22  ;;  %v2537_v22 = vld [vmem:[%s2844_s25 + $0x34] ss:$8 sps:$4 sm:$0xff]  }
  0xa3   : > { %1117 = vmatpush1.bf16.msra.mxu0 %v2442_v23  ;;  %1321 = vmatpush1.bf16.msra.mxu1 %v2442_v23  ;;  %v2535_v23 = vld [vmem:[%s2844_s25 + $0x30] ss:$8 sps:$4 sm:$0xff]  }
  0xa4   : > { %1118 = vmatprep.subr.bf16.mxu0 %v2447_v24  ;;  %1322 = vmatprep.subr.bf16.mxu1 %v2447_v24  ;;  %v2540_v24 = vld [vmem:[%s2844_s25 + $0x44] ss:$8 sps:$4 sm:$0xff]  }
  0xa7   : > { %1119 = vmatpush1.bf16.msra.mxu0 %v2445_v25  ;;  %1323 = vmatpush1.bf16.msra.mxu1 %v2445_v25  ;;  %v2538_v25 = vld [vmem:[%s2844_s25 + $0x40] ss:$8 sps:$4 sm:$0xff]  }
  0xa8   : > { %1120 = vmatprep.subr.bf16.mxu0 %v2450_v26  ;;  %1324 = vmatprep.subr.bf16.mxu1 %v2450_v26  ;;  %v2543_v26 = vld [vmem:[%s2844_s25 + $0x54] ss:$8 sps:$4 sm:$0xff]  }
  0xab   : > { %1121 = vmatpush1.bf16.msra.mxu0 %v2448_v27  ;;  %1325 = vmatpush1.bf16.msra.mxu1 %v2448_v27  ;;  %v2541_v27 = vld [vmem:[%s2844_s25 + $0x50] ss:$8 sps:$4 sm:$0xff]  }
  0xac   : > { %1122 = vmatprep.subr.bf16.mxu0 %v2453_v28  ;;  %1326 = vmatprep.subr.bf16.mxu1 %v2453_v28  ;;  %v2546_v28 = vld [vmem:[%s2844_s25 + $0x64] ss:$8 sps:$4 sm:$0xff]  }
  0xaf   : > { %1123 = vmatpush1.bf16.msra.mxu0 %v2451_v29  ;;  %1327 = vmatpush1.bf16.msra.mxu1 %v2451_v29  ;;  %v2544_v29 = vld [vmem:[%s2844_s25 + $0x60] ss:$8 sps:$4 sm:$0xff]  }
  0xb0   : > { %1124 = vmatprep.subr.bf16.mxu0 %v2456_v30  ;;  %1328 = vmatprep.subr.bf16.mxu1 %v2456_v30  ;;  %v2549_v30 = vld [vmem:[%s2844_s25 + $0x74] ss:$8 sps:$4 sm:$0xff]  }
  0xb3   : > { %1125 = vmatpush1.bf16.msra.mxu0 %v2454_v31  ;;  %1329 = vmatpush1.bf16.msra.mxu1 %v2454_v31  ;;  %v2547_v31 = vld [vmem:[%s2844_s25 + $0x70] ss:$8 sps:$4 sm:$0xff]  }
  0xb4   : > { %1126 = vmatprep.subr.bf16.mxu0 %v2459_v32  ;;  %1330 = vmatprep.subr.bf16.mxu1 %v2459_v32  ;;  %v2552_v32 = vld [vmem:[%s2844_s25 + $0x84] ss:$8 sps:$4 sm:$0xff]  }
  0xb7   : > { %1127 = vmatpush1.bf16.msra.mxu0 %v2457_v33  ;;  %1331 = vmatpush1.bf16.msra.mxu1 %v2457_v33  ;;  %v2550_v33 = vld [vmem:[%s2844_s25 + $0x80] ss:$8 sps:$4 sm:$0xff]  }
  0xb8   : > { %1128 = vmatprep.subr.bf16.mxu0 %v2462_v34  ;;  %1332 = vmatprep.subr.bf16.mxu1 %v2462_v34  ;;  %v2555_v34 = vld [vmem:[%s2844_s25 + $0x94] ss:$8 sps:$4 sm:$0xff]  }
  0xbb   : > { %1129 = vmatpush1.bf16.msra.mxu0 %v2460_v35  ;;  %1333 = vmatpush1.bf16.msra.mxu1 %v2460_v35  ;;  %v2553_v35 = vld [vmem:[%s2844_s25 + $0x90] ss:$8 sps:$4 sm:$0xff]  }
  0xbc   : > { %1130 = vmatprep.subr.bf16.mxu0 %v2465_v36  ;;  %1334 = vmatprep.subr.bf16.mxu1 %v2465_v36  ;;  %v1153_v36 = vlaneseq }
  0xbf   : > { %1131 = vmatpush1.bf16.msra.mxu0 %v2463_v37  ;;  %1335 = vmatpush1.bf16.msra.mxu1 %v2463_v37  ;;  %v1154_v37 = vshrl.u32 %v1153_v36, 7  ;;  %v2570_v36 = vld [vmem:[%s2844_s25 + $0xe4] ss:$8 sps:$4 sm:$0xff]  }
  0xc0   : > { %1132 = vmatprep.subr.bf16.mxu0 %v2468_v38  ;;  %1336 = vmatprep.subr.bf16.mxu1 %v2468_v38 }
  0xc1   : > { %v2877_v38 = vsub.s32 0, %v1154_v37 }
  0xc3   : > { %1133 = vmatpush1.bf16.msra.mxu0 %v2466_v39  ;;  %1337 = vmatpush1.bf16.msra.mxu1 %v2466_v39  ;;  %v1151_v39 = vld [vmem:[%s386_s9] sm:$0x3] }
  0xc4   : > { %1134 = vmatprep.subr.bf16.mxu0 %v2471_v40  ;;  %1338 = vmatprep.subr.bf16.mxu1 %v2471_v40  ;;  %v2879_v40 = vsub.s32 1, %v1154_v37  ;;  %v2568_v37 = vld [vmem:[%s2844_s25 + $0xe0] ss:$8 sps:$4 sm:$0xff]  }
  0xc7   : > { %1135 = vmatpush1.bf16.msra.mxu0 %v2469_v41  ;;  %1339 = vmatpush1.bf16.msra.mxu1 %v2469_v41  ;;  %v1165_v41 = vld [vmem:[%s390_s12] sm:$0x3] }
  0xc8   : > { %1136 = vmatprep.subr.bf16.mxu0 %v2474_v42  ;;  %1340 = vmatprep.subr.bf16.mxu1 %v2474_v42  ;;  %v1156_v42 = vrot.slane %v1151_v39, %v2877_v38 }
  0xcb   : > { %1137 = vmatpush1.bf16.msra.mxu0 %v2472_v43  ;;  %1341 = vmatpush1.bf16.msra.mxu1 %v2472_v43  ;;  %v1160_v43 = vrot.slane %v1151_v39, %v2879_v40  ;;  %v2573_v39 = vld [vmem:[%s2844_s25 + $0xf4] ss:$8 sps:$4 sm:$0xff]  }
  0xcc   : > { %1138 = vmatprep.subr.bf16.mxu0 %v2477_v44  ;;  %1342 = vmatprep.subr.bf16.mxu1 %v2477_v44  ;;  %v1170_v44 = vrot.slane %v1165_v41, %v2877_v38 }
  0xcf   : > { %1139 = vmatpush1.bf16.msra.mxu0 %v2475_v45  ;;  %1343 = vmatpush1.bf16.msra.mxu1 %v2475_v45 }
  0xd0   : > { %1590 = vmatprep.subr.bf16.mxu0 %v2480_v46  ;;  %1851 = vmatprep.subr.bf16.mxu1 %v2528_v19 }
  0xd2   : > { %1141 = vmatmul.mubr.bf16.vlgmr.msra.gmra.mrb[0].mxu0 %v944_v47  ;;  %1345 = vmatmul.mubr.bf16.vlgmr.msra.gmra.mrb[0].mxu1 %v1308_v48  ;;  %v1174_v47 = vrot.slane %v1165_v41, %v2879_v40  ;;  %v2571_v41 = vld [vmem:[%s2844_s25 + $0xf0] ss:$8 sps:$4 sm:$0xff]  }
  0xd3   : > { %1591 = vmatpush1.bf16.msra.mxu0 %v2478_v49  ;;  %1852 = vmatpush1.bf16.msra.mxu1 %v2526_v18 }
  0xd4   : > { %1592 = vmatprep.subr.bf16.mxu0 %v2483_v50  ;;  %1853 = vmatprep.subr.bf16.mxu1 %v2531_v20 }
  0xd7   : > { %1593 = vmatpush1.bf16.msra.mxu0 %v2481_v51  ;;  %1854 = vmatpush1.bf16.msra.mxu1 %v2529_v21 }
  0xd8   : > { %1594 = vmatprep.subr.bf16.mxu0 %v2486_v52  ;;  %1855 = vmatprep.subr.bf16.mxu1 %v2534_v0 }
  0xdb   : > { %1595 = vmatpush1.bf16.msra.mxu0 %v2484_v53  ;;  %1856 = vmatpush1.bf16.msra.mxu1 %v2532_v2 }
  0xdc   : > { %1596 = vmatprep.subr.bf16.mxu0 %v2489_v54  ;;  %1857 = vmatprep.subr.bf16.mxu1 %v2537_v22 }
  0xdf   : > { %1597 = vmatpush1.bf16.msra.mxu0 %v2487_v55  ;;  %1858 = vmatpush1.bf16.msra.mxu1 %v2535_v23 }
  0xe0   : > { %1598 = vmatprep.subr.bf16.mxu0 %v2492_v56  ;;  %1859 = vmatprep.subr.bf16.mxu1 %v2540_v24 }
  0xe3   : > { %1599 = vmatpush1.bf16.msra.mxu0 %v2490_v57  ;;  %1860 = vmatpush1.bf16.msra.mxu1 %v2538_v25 }
  0xe4   : > { %1600 = vmatprep.subr.bf16.mxu0 %v2495_v58  ;;  %1861 = vmatprep.subr.bf16.mxu1 %v2543_v26 }
  0xe7   : > { %1601 = vmatpush1.bf16.msra.mxu0 %v2493_v59  ;;  %1862 = vmatpush1.bf16.msra.mxu1 %v2541_v27 }
  0xe8   : > { %1602 = vmatprep.subr.bf16.mxu0 %v2498_v60  ;;  %1863 = vmatprep.subr.bf16.mxu1 %v2546_v28  ;;  %v2558_v28 = vld [vmem:[%s2844_s25 + $0xa4] ss:$8 sps:$4 sm:$0xff]  }
  0xeb   : > { %1603 = vmatpush1.bf16.msra.mxu0 %v2496_v61  ;;  %1864 = vmatpush1.bf16.msra.mxu1 %v2544_v29  ;;  %v2556_v29 = vld [vmem:[%s2844_s25 + $0xa0] ss:$8 sps:$4 sm:$0xff]  }
  0xec   : > { %1604 = vmatprep.subr.bf16.mxu0 %v2501_v62  ;;  %1865 = vmatprep.subr.bf16.mxu1 %v2549_v30  ;;  %v2561_v30 = vld [vmem:[%s2844_s25 + $0xb4] ss:$8 sps:$4 sm:$0xff]  }
  0xef   : > { %1605 = vmatpush1.bf16.msra.mxu0 %v2499_v63  ;;  %1866 = vmatpush1.bf16.msra.mxu1 %v2547_v31  ;;  %v2559_v31 = vld [vmem:[%s2844_s25 + $0xb0] ss:$8 sps:$4 sm:$0xff]  }
  0xf0   : > { %1606 = vmatprep.subr.bf16.mxu0 %v2504_v1  ;;  %1867 = vmatprep.subr.bf16.mxu1 %v2552_v32  ;;  %v2564_v32 = vld [vmem:[%s2844_s25 + $0xc4] ss:$8 sps:$4 sm:$0xff]  }
  0xf3   : > { %1607 = vmatpush1.bf16.msra.mxu0 %v2502_v3  ;;  %1868 = vmatpush1.bf16.msra.mxu1 %v2550_v33  ;;  %v2562_v33 = vld [vmem:[%s2844_s25 + $0xc0] ss:$8 sps:$4 sm:$0xff]  }
  0xf4   : > { %1608 = vmatprep.subr.bf16.mxu0 %v2507_v4  ;;  %1869 = vmatprep.subr.bf16.mxu1 %v2555_v34  ;;  %v2567_v34 = vld [vmem:[%s2844_s25 + $0xd4] ss:$8 sps:$4 sm:$0xff]  }
  0xf7   : > { %1609 = vmatpush1.bf16.msra.mxu0 %v2505_v5  ;;  %1870 = vmatpush1.bf16.msra.mxu1 %v2553_v35  ;;  %v2565_v35 = vld [vmem:[%s2844_s25 + $0xd0] ss:$8 sps:$4 sm:$0xff]  }
  0xf8   : > { %1610 = vmatprep.subr.bf16.mxu0 %v2510_v6  ;;  %1871 = vmatprep.subr.bf16.mxu1 %v2558_v28 }
  0xfb   : > { %1611 = vmatpush1.bf16.msra.mxu0 %v2508_v7  ;;  %1872 = vmatpush1.bf16.msra.mxu1 %v2556_v29 }
  0xfc   : > { %1612 = vmatprep.subr.bf16.mxu0 %v2513_v8  ;;  %1873 = vmatprep.subr.bf16.mxu1 %v2561_v30 }
  0xff   : > { %1613 = vmatpush1.bf16.msra.mxu0 %v2511_v9  ;;  %1874 = vmatpush1.bf16.msra.mxu1 %v2559_v31 }
 0x100   : > { %1614 = vmatprep.subr.bf16.mxu0 %v2516_v10  ;;  %1875 = vmatprep.subr.bf16.mxu1 %v2564_v32 }
 0x103   : > { %1615 = vmatpush1.bf16.msra.mxu0 %v2514_v11  ;;  %1876 = vmatpush1.bf16.msra.mxu1 %v2562_v33 }
 0x104   : > { %1616 = vmatprep.subr.bf16.mxu0 %v2519_v12  ;;  %1877 = vmatprep.subr.bf16.mxu1 %v2567_v34 }
 0x107   : > { %1617 = vmatpush1.bf16.msra.mxu0 %v2517_v13  ;;  %1878 = vmatpush1.bf16.msra.mxu1 %v2565_v35 }
 0x108   : > { %1618 = vmatprep.subr.bf16.mxu0 %v2522_v14  ;;  %1879 = vmatprep.subr.bf16.mxu1 %v2570_v36 }
 0x10b   : > { %1619 = vmatpush1.bf16.msra.mxu0 %v2520_v15  ;;  %1880 = vmatpush1.bf16.msra.mxu1 %v2568_v37 }
 0x10c   : > { %1620 = vmatprep.subr.bf16.mxu0 %v2525_v17  ;;  %1881 = vmatprep.subr.bf16.mxu1 %v2573_v39 }
 0x10f   : > { %1621 = vmatpush1.bf16.msra.mxu0 %v2523_v16  ;;  %1882 = vmatpush1.bf16.msra.mxu1 %v2571_v41 }
 0x1a5   : > { %v1142_v45 = vpop.f32.mrb[0].mxu0  ;;  %v1346_v46 = vpop.f32.mrb[0].mxu1 }
 0x1a6   : > { %v1163_v48 = vmul.f32 %v1156_v42, %v1142_v45  ;;  %v1355_v49 = vmul.f32 %v1346_v46, %v1156_v42  ;;  %v1144_v50 = vpop.f32.mrb[1].mxu0  ;;  %v1348_v51 = vpop.f32.mrb[1].mxu1  ;;  %v1418_v42 = vld [vmem:[%s399_s15] sm:$0x3] }
 0x1a7   : > { %v1164_v52 = vmul.f32 %v1160_v43, %v1144_v50  ;;  %v1356_v53 = vmul.f32 %v1348_v51, %v1160_v43  ;;  %v1146_v54 = vpop.f32.mrb[2].mxu0  ;;  %v1350_v55 = vpop.f32.mrb[2].mxu1  ;;  %v1423_v43 = vrot.slane %v1418_v42, %v2877_v38 }
 0x1a8   : > { %v1177_v56 = vadd.f32 %v1170_v44, %v1163_v48  ;;  %v1357_v57 = vadd.f32 %v1355_v49, %v1170_v44  ;;  %v1147_v58 = vpop.f32.mrb[3].mxu0  ;;  %v1351_v59 = vpop.f32.mrb[3].mxu1  ;;  %v1427_v44 = vrot.slane %v1418_v42, %v2879_v40 }
 0x1a9   : > { %v1178_v60 = vadd.f32 %v1174_v47, %v1164_v52  ;;  %v1358_v61 = vadd.f32 %v1356_v53, %v1174_v47 }
 0x1aa   : > { %v1181_v62 = vmul.f32 1.442695, %v1177_v56  ;;  %v1361_v63 = vmul.f32 1.442695, %v1357_v57  ;;  %vm1179_vm0 = vcmp.gt.f32.partialorder %v1177_v56, 0.0  ;;  %vm1359_vm1 = vcmp.gt.f32.partialorder %v1357_v57, 0.0 }
 0x1ab   : > { %v1183_v1 = vmul.f32 1.442695, %v1178_v60  ;;  %v1363_v3 = vmul.f32 1.442695, %v1358_v61  ;;  %vm1180_vm2 = vcmp.gt.f32.partialorder %v1178_v60, 0.0  ;;  %vm1360_vm3 = vcmp.gt.f32.partialorder %v1358_v61, 0.0 }
 0x1ac   : > { %2574 = vpow2.f32 %v1181_v62 }
 0x1ad   : > { %2576 = vpow2.f32 %v1361_v63 }
 0x1ae   : > { %2578 = vpow2.f32 %v1183_v1 }
 0x1af   : > { %2580 = vpow2.f32 %v1363_v3  ;;  %v1679_v3 = vld [vmem:[%s408_s18] sm:$0x3] }
 0x1b6   : > { %v2575_v4 = vpop.eup %2574 }
 0x1b7   : > { %v2577_v5 = vpop.eup %2576  ;;  %v2229_v6 = vadd.f32 -1.0, %v2575_v4  ;;  %v1684_v4 = vrot.slane %v1679_v3, %v2877_v38 }
 0x1b8   : > { %v2579_v7 = vpop.eup %2578  ;;  %v2235_v8 = vadd.f32 -1.0, %v2577_v5  ;;  %v1688_v5 = vrot.slane %v1679_v3, %v2879_v40 }
 0x1b9   : > { %v2581_v9 = vpop.eup %2580  ;;  %v1187_v10 = vmul.f32 1.6732632, %v2229_v6  ;;  %v2230_v11 = vadd.f32 -1.0, %v2579_v7 }
 0x1ba   : > { %v1367_v12 = vmul.f32 1.6732632, %v2235_v8  ;;  %v2236_v13 = vadd.f32 -1.0, %v2581_v9 }
 0x1bb   : > { %v1188_v14 = vmul.f32 1.6732632, %v2230_v11  ;;  %v1189_v15 = vsel %vm1179_vm0, %v1177_v56, %v1187_v10 }
 0x1bc   : > { %v1369_v16 = vsel %vm1359_vm1, %v1357_v57, %v1367_v12  ;;  %v1368_v17 = vmul.f32 1.6732632, %v2236_v13  ;;  %v1191_v21 = vmul.f32 1.050701, %v1189_v15 }
 0x1bd   : > { %v1371_v18 = vmul.f32 1.050701, %v1369_v16  ;;  %v1190_v19 = vsel %vm1180_vm2, %v1178_v60, %v1188_v14 }
 0x1be   : > { %v1370_v20 = vsel %vm1360_vm3, %v1358_v61, %v1368_v17  ;;  %v1192_v22 = vmul.f32 1.050701, %v1190_v19 }
 0x1bf   : > { %v1377_v0 = vrot.slane %v1371_v18, 7  ;;  %v1372_v2 = vmul.f32 1.050701, %v1370_v20 }
 0x1c1   : > { %v1378_v23 = vrot.slane %v1372_v2, 7  ;;  %v1382_v24 = vsel %vm1381_vm4, %v1191_v21, %v1377_v0 }
 0x1c2   : > { %v1384_v27 = vpack.c.bf16 %v1382_v24, %v1382_v24 }
 0x1c3   : > { %v1383_v25 = vsel %vm1381_vm4, %v1192_v22, %v1378_v23 }
 0x1c4   : > { %v1385_v26 = vpack.c.bf16 %v1383_v25, %v1383_v25 }
 0x1c6   : > { %1622 = vmatprep.mubr.bf16.mxu0 %v1385_v26 }
 0x1c7   : > { %1623 = vmatmul.mubr.bf16.vlgmr.msra.gmra.mrb[4].mxu0 %v1384_v27 }
 0x29a   : > { %v1624_v45 = vpop.f32.mrb[4].mxu0 }
 0x29b   : > { %v1625_v46 = vadd.f32 %v1624_v45, %v1423_v43  ;;  %v1626_v47 = vpop.f32.mrb[5].mxu0 }
 0x29c   : > { %v1627_v48 = vadd.f32 %v1626_v47, %v1427_v44  ;;  %v1628_v49 = vpop.f32.mrb[6].mxu0 }
 0x29d   : > { %v1633_v50 = vmul.f32 1.442695, %v1625_v46  ;;  %v1629_v51 = vpop.f32.mrb[7].mxu0  ;;  %vm1631_vm5 = vcmp.gt.f32.partialorder %v1625_v46, 0.0 }
 0x29e   : > { %v1635_v52 = vmul.f32 1.442695, %v1627_v48  ;;  %vm1632_vm6 = vcmp.gt.f32.partialorder %v1627_v48, 0.0 }
 0x29f   : > { %2582 = vpow2.f32 %v1633_v50 }
 0x2a0   : > { %2584 = vpow2.f32 %v1635_v52 }
 0x2a9   : > { %v2583_v53 = vpop.eup %2582 }
 0x2aa   : > { %v2585_v54 = vpop.eup %2584  ;;  %v2269_v55 = vadd.f32 -1.0, %v2583_v53 }
 0x2ab   : > { %v2270_v56 = vadd.f32 -1.0, %v2585_v54 }
 0x2ac   : > { %v1639_v57 = vmul.f32 1.6732632, %v2269_v55 }
 0x2ad   : > { %v1640_v58 = vmul.f32 1.6732632, %v2270_v56 }
 0x2ae   : > { %v1641_v59 = vsel %vm1631_vm5, %v1625_v46, %v1639_v57 }
 0x2af   : > { %v1643_v60 = vmul.f32 1.050701, %v1641_v59  ;;  %v1642_v61 = vsel %vm1632_vm6, %v1627_v48, %v1640_v58 }
 0x2b0   : > { %v1644_v62 = vmul.f32 1.050701, %v1642_v61 }
 0x2b1   : > { %v1645_v1 = vpack.c.bf16 %v1643_v60, %v1643_v60 }
 0x2b2   : > { %v1646_v63 = vpack.c.bf16 %v1644_v62, %v1644_v62 }
 0x2b4   : > { %1883 = vmatprep.mubr.bf16.mxu1 %v1646_v63 }
 0x2b5   : > { %1884 = vmatmul.mubr.bf16.vlgmr.msra.gmra.mrb[4].mxu1 %v1645_v1 }
 0x388   : > { %v1885_v6 = vpop.f32.mrb[4].mxu1 }
 0x389   : > { %v1886_v7 = vadd.f32 %v1885_v6, %v1684_v4  ;;  %v1887_v8 = vpop.f32.mrb[5].mxu1 }
 0x38a   : > { %v1888_v9 = vadd.f32 %v1887_v8, %v1688_v5  ;;  %v1889_v10 = vpop.f32.mrb[6].mxu1 }
 0x38b   : > { %v1890_v11 = vpop.f32.mrb[7].mxu1  ;;  %v1893_v12 = vsel %vm1892_vm7, %v1886_v7, -inf }
 0x38c   : > { %v1894_v13 = vsel %vm1892_vm7, %v1888_v9, -inf }
 0x38d   : > { %v1895_v14 = vmax.f32 %v1893_v12, %v1894_v13 }
 0x38f   : > { %1896 = vmax.xlane.f32.xlu0 %v1895_v14 }
 0x41c   : > { %v1897_v15 = vpop.xlane.xlu0 %1896 }
 0x41d   : > { %v1898_v16 = vsub.f32 %v1886_v7, %v1897_v15  ;;  %v1899_v17 = vsub.f32 %v1888_v9, %v1897_v15 }
 0x41f   : > { %v1900_v38 = vmul.f32 1.442695, %v1898_v16  ;;  %v1902_v18 = vmul.f32 1.442695, %v1899_v17 }
 0x421   : > { %2586 = vpow2.f32 %v1900_v38 }
 0x422   : > { %2588 = vpow2.f32 %v1902_v18 }
 0x42b   : > { %v2587_v40 = vpop.eup %2586 }
 0x42c   : > { %v2589_v19 = vpop.eup %2588  ;;  %v1904_v20 = vsel %vm1892_vm7, %v2587_v40, 0.0 }
 0x42d   : > { %v1905_v21 = vsel %vm1892_vm7, %v2589_v19, 0.0 }
 0x42e   : > { %v1906_v0 = vadd.f32 %v1905_v21, %v1904_v20 }
 0x430   : > { %1907 = vadd.xlane.f32.xlu0 %v1906_v0 }
 0x4bd   : > { %v1908_v2 = vpop.xlane.xlu0 %1907 }
 0x4be   : > { %2590 = vrcp.f32 %v1908_v2 }
 0x4c8   : > { %v2591_v22 = vpop.eup %2590 }
 0x4c9   : > { %v1910_v23 = vmul.f32 %v2591_v22, %v2587_v40  ;;  %v1911_v24 = vmul.f32 %v2591_v22, %v2589_v19 }
 0x4cb   : > { %v1914_v25 = vcombine.low %v1910_v23, %v1911_v24 }
 0x4cd   : > { %2303 = vst.sshfl [vmem:[%s413_s22] sm:$0x33 pattern:$0x76325410] %v1914_v25 }
 0x4ce PF: > { %s18_s27 = sadd.s32 1, %s2598_s27  }
 0x4cf   : > { %p15_p4 = scmp.ge.s32.totalorder %s18_s27, 7  }
 0x4d1   :  { %17 = sbr.rel (!%p15_p4) target bundleno = 1 (0x1), region = 103 }

</bundles_post_ra>
